<compile_context>
chip_gen: v5e
topology: v5e:2x2
jax: 0.10.0
libtpu: 0.0.40
codegen_flags: <defaults>
</compile_context>

<pallas_src>
import functools
import math

import jax
import jax.numpy as jnp
from jax import lax
from jax.experimental import pallas as pl
from jax.experimental.pallas import tpu as pltpu

LANE = 128
BATCH_SUB = 16      # batch-tile granularity: multiple of 16 sublanes (bf16-safe tiling)
T_CHUNK = 32        # timesteps per streamed chunk (16-64 sweet spot)


def _round_up(x, m):
    return (x + m - 1) // m * m


def _device_kind():
    try:
        return jax.devices()[0].device_kind.lower()
    except Exception:
        return ""


def _vmem_capacity_bytes():
    try:
        cap = int(pltpu.get_tpu_info().vmem_capacity_bytes)
        if cap > 0:
            return cap
    except Exception:
        pass
    return 64 * 1024 * 1024          # conservative fallback (v7x per-core VMEM)


def _nbytes(shape, dtype):
    return math.prod(shape) * jnp.dtype(dtype).itemsize


def lstm_classifier_kernel(
    x_ref,        # (Tc, Bt, E_pad)    bf16  current time-chunk of embedded tokens
    wx_ref,       # (E_pad, 4*H_pad)   bf16  fused gate input weights  [i | f | g | o]
    wh_ref,       # (H_pad, 4*H_pad)   bf16  fused gate hidden weights [i | f | g | o]
    b_ref,        # (1, 4*H_pad)       f32   fused gate biases (b_ih + b_hh per gate)
    wup_ref,      # (H_pad, FF_pad)    bf16  FFN up
    bup_ref,      # (1, FF_pad)        f32
    wdn_ref,      # (FF_pad, H_pad)    bf16  FFN down
    bdn_ref,      # (1, H_pad)         f32
    gamma_ref,    # (1, H_pad)         f32   LayerNorm weight (zero in padded lanes)
    beta_ref,     # (1, H_pad)         f32   LayerNorm bias
    wd_ref,       # (H_pad, C_pad)     bf16  classifier dense
    bd_ref,       # (1, C_pad)         f32
    scores_ref,   # (Bt, C_pad)        f32   logits (written on the last chunk only)
    xproj_ref,    # (Tc, Bt, 4*H_pad)  bf16  scratch: per-chunk hoisted input projection
    h_ref,        # (Bt, H_pad)        f32   scratch: hidden state, carried across chunks
    c_ref,        # (Bt, H_pad)        f32   scratch: cell state, carried across chunks
    *, hidden_dim, seq_len, pad_tail, gates_bf16,
):
    t_idx = pl.program_id(1)
    n_t = pl.num_programs(1)
    Tc, Bt, _Ep = x_ref.shape
    Hp = wh_ref.shape[0]

    nl_dtype = jnp.bfloat16 if gates_bf16 else jnp.float32

    def sigmoid(v):
        # 0.5*tanh(0.5*x) + 0.5 == sigmoid(x): one EUP op instead of exp + reciprocal.
        return jnp.tanh(v * 0.5) * 0.5 + 0.5

    # ---- reset the carried state at the start of each batch tile's sequence ----
    @pl.when(t_idx == 0)
    def _():
        h_ref[...] = jnp.zeros_like(h_ref)
        c_ref[...] = jnp.zeros_like(c_ref)

    wx = wx_ref[...]          # bf16, resident for the whole chunk
    wh = wh_ref[...]
    b_gates = b_ref[...]      # f32

    def project(s):
        # x[s] @ Wx + (b_ih + b_hh); stored bf16 (upcasts when added to the f32 h @ Wh).
        p = jnp.dot(x_ref[s], wx, preferred_element_type=jnp.float32) + b_gates
        xproj_ref[s] = p.astype(jnp.bfloat16)

    # Prologue: project timestep 0 of this chunk.  The loop below always projects one
    # timestep ahead of the recurrence, so the projection MXU work overlaps the
    # EUP/VALU-bound gate math of the current step instead of serializing before it.
    project(0)

    def step(s, hc):
        h, c = hc
        z_x = xproj_ref[s]                           # load BEFORE the lookahead store
        project(jnp.minimum(s + 1, Tc - 1))          # lookahead (clamped; dup work on last step is negligible)
        z = z_x + jnp.dot(h.astype(jnp.bfloat16), wh,
                          preferred_element_type=jnp.float32)   # f32 (Bt, 4*Hp)
        zg = z.astype(nl_dtype)
        # Each gate occupies its own lane-aligned block of width H_pad.
        i_g = sigmoid(zg[:, 0 * Hp:1 * Hp]).astype(jnp.float32)
        f_g = sigmoid(zg[:, 1 * Hp:2 * Hp]).astype(jnp.float32)
        g_g = jnp.tanh(zg[:, 2 * Hp:3 * Hp]).astype(jnp.float32)
        o_g = sigmoid(zg[:, 3 * Hp:4 * Hp]).astype(jnp.float32)
        c_new = f_g * c + i_g * g_g
        h_new = o_g * jnp.tanh(c_new.astype(nl_dtype)).astype(jnp.float32)
        if pad_tail:
            # Timesteps beyond the true sequence length (T padding to a whole chunk)
            # must leave h/c untouched.
            valid = (t_idx * Tc + s) < seq_len
            h_new = jnp.where(valid, h_new, h)
            c_new = jnp.where(valid, c_new, c)
        return (h_new, c_new)

    h_last, c_last = lax.fori_loop(0, Tc, step, (h_ref[...], c_ref[...]),
                                   unroll=min(Tc, 8))
    h_ref[...] = h_last
    c_ref[...] = c_last
    # TODO(synk): if bundle dumps show vreg spills on the serial path for very large
    # H_pad, sub-tile the gate math along H in 128-256 lane chunks inside step().

    # ---- classifier head: only after the final chunk ----
    @pl.when(t_idx == n_t - 1)
    def _():
        # FFN: down(relu(up(h)))
        up = jnp.dot(h_last.astype(jnp.bfloat16), wup_ref[...],
                     preferred_element_type=jnp.float32) + bup_ref[...]
        up = jnp.maximum(up, 0.0)
        ffn = jnp.dot(up.astype(jnp.bfloat16), wdn_ref[...],
                      preferred_element_type=jnp.float32) + bdn_ref[...]
        # residual + LayerNorm over the real H lanes (eps=1e-12, biased variance)
        lane = lax.broadcasted_iota(jnp.int32, (Bt, Hp), 1)
        mask = (lane < hidden_dim).astype(jnp.float32)
        y = (h_last + ffn) * mask          # hard-zero padded lanes (robust to nonzero pads)
        inv_h = 1.0 / float(hidden_dim)
        mean = jnp.sum(y, axis=-1, keepdims=True) * inv_h
        centered = (y - mean) * mask
        var = jnp.sum(centered * centered, axis=-1, keepdims=True) * inv_h
        y_norm = centered * lax.rsqrt(var + 1e-12)   # module uses LayerNorm(eps=1e-12)
        y_norm = y_norm * gamma_ref[...] + beta_ref[...]
        # classifier (lane-dense padded logits, sliced in the wrapper)
        scores_ref[...] = jnp.dot(y_norm.astype(jnp.bfloat16), wd_ref[...],
                                  preferred_element_type=jnp.float32) + bd_ref[...]


@functools.partial(jax.jit, static_argnames=("hidden_dim", "num_classes"))
def lstm_classifier_forward(tokens, params, *, hidden_dim, num_classes):
    """tokens: (B, T) int32. Returns logits (B, num_classes) float32."""
    B, T = tokens.shape
    Ep = params["embedding"].shape[1]
    Hp = params["wh"].shape[0]
    FFp = params["w_up"].shape[1]
    Cp = params["w_dense"].shape[1]

    # Embedding gather stays in JAX (glue); x is shipped to the kernel in bf16 to
    # halve HBM DMA bytes and the double-buffered VMEM footprint.  Like the PyTorch
    # module, pad tokens get a zero embedding row; the recurrence still updates h/c
    # on those (real) timesteps.
    x_emb = jnp.take(params["embedding"], tokens, axis=0).astype(jnp.bfloat16)
    x_tbe = jnp.transpose(x_emb, (1, 0, 2))                  # (T, B, Ep) bf16

    kind = _device_kind()
    is_v7x = ("v7" in kind) or ("7x" in kind)
    gates_bf16 = ("v6" in kind) or is_v7x     # bf16 EUP/VPU on v6e/v7x; f32 on v5e/older

    # ---- batch tiling -------------------------------------------------------
    b_cap = 128 if is_v7x else 256            # 128 MiB VMEM on v5e/v6e allows fatter tiles
    b_tile = min(b_cap, _round_up(B, BATCH_SUB))
    # v7x: ensure >=2 steps on the "parallel" axis so both TensorCores engage.
    if is_v7x and B >= 16 and _round_up(B, b_tile) == b_tile:
        b_tile = _round_up(-(-B // 2), BATCH_SUB)
    B_pad = _round_up(B, b_tile)

    # ---- time chunking (VMEM is O(chunk), not O(T)) -------------------------
    t_chunk = min(T, T_CHUNK)
    T_pad = _round_up(T, t_chunk)
    n_chunks = T_pad // t_chunk
    pad_tail = (T_pad != T)

    x_tbe = jnp.pad(x_tbe, ((0, T_pad - T), (0, B_pad - B), (0, 0)))

    # ---- VMEM budget: derive the limit from actual block/scratch bytes ------
    vmem_need = (
        2 * _nbytes((t_chunk, b_tile, Ep), jnp.bfloat16)      # x chunk (double-buffered)
        + 2 * _nbytes((b_tile, Cp), jnp.float32)              # logits block
        + _nbytes((Ep, 4 * Hp), jnp.bfloat16)
        + _nbytes((Hp, 4 * Hp), jnp.bfloat16)
        + _nbytes((1, 4 * Hp), jnp.float32)
        + _nbytes((Hp, FFp), jnp.bfloat16) + _nbytes((1, FFp), jnp.float32)
        + _nbytes((FFp, Hp), jnp.bfloat16) + _nbytes((1, Hp), jnp.float32)
        + 2 * _nbytes((1, Hp), jnp.float32)
        + _nbytes((Hp, Cp), jnp.bfloat16) + _nbytes((1, Cp), jnp.float32)
        + _nbytes((t_chunk, b_tile, 4 * Hp), jnp.bfloat16)    # xproj scratch
        + 2 * _nbytes((b_tile, Hp), jnp.float32)              # h, c scratch
    )
    vmem_limit = int(min(max(int(vmem_need * 1.5) + (4 << 20), 32 << 20),
                         int(_vmem_capacity_bytes() * 0.8)))

    kernel = functools.partial(
        lstm_classifier_kernel,
        hidden_dim=hidden_dim, seq_len=T, pad_tail=pad_tail, gates_bf16=gates_bf16)

    # Grid-invariant operands: single resident VMEM copy, no per-step pipelining.
    wspec = pl.BlockSpec(memory_space=pltpu.MemorySpace.VMEM)
    grid_spec = pltpu.PrefetchScalarGridSpec(
        num_scalar_prefetch=0,
        grid=(B_pad // b_tile, n_chunks),
        in_specs=[
            pl.BlockSpec((t_chunk, b_tile, Ep), lambda i, t: (t, i, 0)),  # streamed x
            wspec, wspec, wspec,          # wx, wh, b_gates
            wspec, wspec,                 # w_up, b_up
            wspec, wspec,                 # w_down, b_down
            wspec, wspec,                 # ln_gamma, ln_beta
            wspec, wspec,                 # w_dense, b_dense
        ],
        out_specs=pl.BlockSpec((b_tile, Cp), lambda i, t: (i, 0)),
        scratch_shapes=[
            pltpu.VMEM((t_chunk, b_tile, 4 * Hp), jnp.bfloat16),   # xproj (bf16: half VMEM)
            pltpu.VMEM((b_tile, Hp), jnp.float32),                 # h carry
            pltpu.VMEM((b_tile, Hp), jnp.float32),                 # c carry
        ],
    )
    scores = pl.pallas_call(
        kernel,
        out_shape=jax.ShapeDtypeStruct((B_pad, Cp), jnp.float32),
        grid_spec=grid_spec,
        compiler_params=pltpu.CompilerParams(
            dimension_semantics=("parallel", "arbitrary"),   # batch tiles parallel, T serial
            vmem_limit_bytes=vmem_limit,
        ),
    )(
        x_tbe,
        params["wx"], params["wh"], params["b_gates"],
        params["w_up"], params["b_up"],
        params["w_down"], params["b_down"],
        params["ln_gamma"], params["ln_beta"],
        params["w_dense"], params["b_dense"],
    )
    return scores[:B, :num_classes]


def init_params(key, *, vocab_size, emb_dim, hidden_dim, ff_dim, num_classes,
                padding_idx):
    Ep = _round_up(emb_dim, LANE)
    Hp = _round_up(hidden_dim, LANE)
    FFp = _round_up(ff_dim, LANE)
    Cp = _round_up(num_classes, LANE)

    ks = jax.random.split(key, 32)
    s = 0.1

    def rn(k, shape):
        return (s * jax.random.normal(k, shape)).astype(jnp.float32)

    # Embedding with padding_idx row zeroed, zero-padded to Ep columns.
    emb = rn(ks[0], (vocab_size, emb_dim)).at[padding_idx].set(0.0)
    emb_p = jnp.zeros((vocab_size, Ep), jnp.float32).at[:, :emb_dim].set(emb)

    # Fused gate weights.  Gate order: input, forget, cell(candidate), output.  Each
    # gate owns a lane-aligned block of width Hp and gets its own folded
    # input-bias + hidden-bias (the two Linear biases simply add).
    wx = jnp.zeros((Ep, 4 * Hp), jnp.float32)
    wh = jnp.zeros((Hp, 4 * Hp), jnp.float32)
    b_gates = jnp.zeros((1, 4 * Hp), jnp.float32)
    for g in range(4):
        kx, kh, kbx, kbh = ks[1 + 4 * g: 5 + 4 * g]
        lo, hi = g * Hp, g * Hp + hidden_dim
        wx = wx.at[:emb_dim, lo:hi].set(rn(kx, (emb_dim, hidden_dim)))
        wh = wh.at[:hidden_dim, lo:hi].set(rn(kh, (hidden_dim, hidden_dim)))
        b_gates = b_gates.at[:, lo:hi].set(
            rn(kbx, (1, hidden_dim)) + rn(kbh, (1, hidden_dim)))

    w_up = jnp.zeros((Hp, FFp), jnp.float32).at[:hidden_dim, :ff_dim].set(
        rn(ks[17], (hidden_dim, ff_dim)))
    b_up = jnp.zeros((1, FFp), jnp.float32).at[:, :ff_dim].set(rn(ks[18], (1, ff_dim)))
    w_down = jnp.zeros((FFp, Hp), jnp.float32).at[:ff_dim, :hidden_dim].set(
        rn(ks[19], (ff_dim, hidden_dim)))
    b_down = jnp.zeros((1, Hp), jnp.float32).at[:, :hidden_dim].set(
        rn(ks[20], (1, hidden_dim)))
    ln_gamma = jnp.zeros((1, Hp), jnp.float32).at[:, :hidden_dim].set(1.0)
    ln_beta = jnp.zeros((1, Hp), jnp.float32)
    w_dense = jnp.zeros((Hp, Cp), jnp.float32).at[:hidden_dim, :num_classes].set(
        rn(ks[21], (hidden_dim, num_classes)))
    b_dense = jnp.zeros((1, Cp), jnp.float32)

    bf16 = jnp.bfloat16
    return {
        "embedding": emb_p,               # f32 gather table (cast to bf16 after gather)
        "wx": wx.astype(bf16),            # MXU operands in bf16 ...
        "wh": wh.astype(bf16),
        "w_up": w_up.astype(bf16),
        "w_down": w_down.astype(bf16),
        "w_dense": w_dense.astype(bf16),
        "b_gates": b_gates,               # ... biases / LayerNorm params stay f32
        "b_up": b_up,
        "b_down": b_down,
        "ln_gamma": ln_gamma,
        "ln_beta": ln_beta,
        "b_dense": b_dense,
    }


if __name__ == "__main__":
    B, T = 2, 8
    EMB, HID, FF = 16, 32, 64
    VOCAB, PAD, NCLS = 50, 0, 5

    key = jax.random.PRNGKey(0)
    k_tok, k_par = jax.random.split(key)
    tokens = jax.random.randint(k_tok, (B, T), 0, VOCAB, dtype=jnp.int32)
    params = init_params(
        k_par, vocab_size=VOCAB, emb_dim=EMB, hidden_dim=HID, ff_dim=FF,
        num_classes=NCLS, padding_idx=PAD,
    )

    scores = lstm_classifier_forward(tokens, params, hidden_dim=HID,
                                     num_classes=NCLS)
    jax.block_until_ready(scores)
    assert scores.shape == (B, NCLS)
    print("KERNEL_OK")
</pallas_src>

<mosaic_0001>
module attributes {stable_mosaic.version = 11 : i64} {
  func.func @lstm_classifier_kernel(%arg0: i32, %arg1: i32, %arg2: memref<8x16x128xbf16, #tpu.memory_space<vmem>>, %arg3: memref<128x512xbf16, #tpu.memory_space<vmem>>, %arg4: memref<128x512xbf16, #tpu.memory_space<vmem>>, %arg5: memref<1x512xf32, #tpu.memory_space<vmem>>, %arg6: memref<128x128xbf16, #tpu.memory_space<vmem>>, %arg7: memref<1x128xf32, #tpu.memory_space<vmem>>, %arg8: memref<128x128xbf16, #tpu.memory_space<vmem>>, %arg9: memref<1x128xf32, #tpu.memory_space<vmem>>, %arg10: memref<1x128xf32, #tpu.memory_space<vmem>>, %arg11: memref<1x128xf32, #tpu.memory_space<vmem>>, %arg12: memref<128x128xbf16, #tpu.memory_space<vmem>>, %arg13: memref<1x128xf32, #tpu.memory_space<vmem>>, %arg14: memref<16x128xf32, #tpu.memory_space<vmem>>, %arg15: memref<8x16x512xbf16, #tpu.memory_space<vmem>>, %arg16: memref<16x128xf32, #tpu.memory_space<vmem>>, %arg17: memref<16x128xf32, #tpu.memory_space<vmem>>) attributes {dimension_semantics = [#tpu.dimension_semantics<parallel>, #tpu.dimension_semantics<arbitrary>], iteration_bounds = array<i64: 1, 1>, scalar_prefetch = 0 : i64, scratch_operands = 3 : i64, tpu.core_type = #tpu.core_type<tc>, window_params = [{transform_indices = @transform_0, window_bounds = array<i64: 8, 16, 128>}, {pipeline_mode = #tpu.pipeline_mode<synchronous>, transform_indices = @transform_1, window_bounds = array<i64: 128, 512>}, {pipeline_mode = #tpu.pipeline_mode<synchronous>, transform_indices = @transform_2, window_bounds = array<i64: 128, 512>}, {pipeline_mode = #tpu.pipeline_mode<synchronous>, transform_indices = @transform_3, window_bounds = array<i64: 1, 512>}, {pipeline_mode = #tpu.pipeline_mode<synchronous>, transform_indices = @transform_4, window_bounds = array<i64: 128, 128>}, {pipeline_mode = #tpu.pipeline_mode<synchronous>, transform_indices = @transform_5, window_bounds = array<i64: 1, 128>}, {pipeline_mode = #tpu.pipeline_mode<synchronous>, transform_indices = @transform_6, window_bounds = array<i64: 128, 128>}, {pipeline_mode = #tpu.pipeline_mode<synchronous>, transform_indices = @transform_7, window_bounds = array<i64: 1, 128>}, {pipeline_mode = #tpu.pipeline_mode<synchronous>, transform_indices = @transform_8, window_bounds = array<i64: 1, 128>}, {pipeline_mode = #tpu.pipeline_mode<synchronous>, transform_indices = @transform_9, window_bounds = array<i64: 1, 128>}, {pipeline_mode = #tpu.pipeline_mode<synchronous>, transform_indices = @transform_10, window_bounds = array<i64: 128, 128>}, {pipeline_mode = #tpu.pipeline_mode<synchronous>, transform_indices = @transform_11, window_bounds = array<i64: 1, 128>}, {transform_indices = @transform_12, window_bounds = array<i64: 16, 128>}]} {
    %c0_i32 = arith.constant 0 : i32
    %0 = arith.cmpi eq, %arg1, %c0_i32 : i32
    %1 = arith.extui %0 : i1 to i32
    %c0_i32_0 = arith.constant 0 : i32
    %2 = arith.cmpi ne, %1, %c0_i32_0 : i32
    scf.if %2 {
      %cst_175 = arith.constant 0.000000e+00 : f32
      %430 = vector.broadcast %cst_175 : f32 to vector<16x128xf32>
      %c0_176 = arith.constant 0 : index
      %c0_177 = arith.constant 0 : index
      %431 = vector.load %arg16[%c0_176, %c0_177] : memref<16x128xf32, #tpu.memory_space<vmem>>, vector<16x128xf32>
      tpu.vector_store %arg16[%c0_176, %c0_177], %430 {strides = array<i32>} : memref<16x128xf32, #tpu.memory_space<vmem>>, vector<16x128xf32>,
      %cst_178 = arith.constant 0.000000e+00 : f32
      %432 = vector.broadcast %cst_178 : f32 to vector<16x128xf32>
      %c0_179 = arith.constant 0 : index
      %c0_180 = arith.constant 0 : index
      %433 = vector.load %arg17[%c0_179, %c0_180] : memref<16x128xf32, #tpu.memory_space<vmem>>, vector<16x128xf32>
      tpu.vector_store %arg17[%c0_179, %c0_180], %432 {strides = array<i32>} : memref<16x128xf32, #tpu.memory_space<vmem>>, vector<16x128xf32>,
    } else {
    }
    %c0 = arith.constant 0 : index
    %c0_1 = arith.constant 0 : index
    %3 = vector.load %arg3[%c0, %c0_1] : memref<128x512xbf16, #tpu.memory_space<vmem>>, vector<128x512xbf16>
    %c0_2 = arith.constant 0 : index
    %c0_3 = arith.constant 0 : index
    %4 = vector.load %arg4[%c0_2, %c0_3] : memref<128x512xbf16, #tpu.memory_space<vmem>>, vector<128x512xbf16>
    %c0_4 = arith.constant 0 : index
    %c0_5 = arith.constant 0 : index
    %5 = vector.load %arg5[%c0_4, %c0_5] : memref<1x512xf32, #tpu.memory_space<vmem>>, vector<1x512xf32>
    %c0_6 = arith.constant 0 : index
    %c0_7 = arith.constant 0 : index
    %c0_8 = arith.constant 0 : index
    %6 = vector.load %arg2[%c0_6, %c0_7, %c0_8] : memref<8x16x128xbf16, #tpu.memory_space<vmem>>, vector<1x16x128xbf16>
    %7 = vector.shape_cast %6 : vector<1x16x128xbf16> to vector<16x128xbf16>
    %cst = arith.constant dense<0.000000e+00> : vector<16x512xf32>
    %8 = tpu.matmul %7, %3, %cst {dimension_numbers = #tpu.dot_dimension_numbers<[1], [0], [0], [1], [0, 0, 1, 1], [], []>} : vector<16x128xbf16>, vector<128x512xbf16>, vector<16x512xf32> -> vector<16x512xf32>
    %9 = vector.broadcast %5 : vector<1x512xf32> to vector<16x512xf32>
    %10 = arith.addf %8, %9 : vector<16x512xf32>
    %11 = arith.truncf %10 : vector<16x512xf32> to vector<16x512xbf16>
    %c0_9 = arith.constant 0 : index
    %c0_10 = arith.constant 0 : index
    %c0_11 = arith.constant 0 : index
    %12 = vector.load %arg15[%c0_9, %c0_10, %c0_11] : memref<8x16x512xbf16, #tpu.memory_space<vmem>>, vector<1x16x512xbf16>
    %13 = vector.shape_cast %12 : vector<1x16x512xbf16> to vector<16x512xbf16>
    %14 = vector.shape_cast %11 : vector<16x512xbf16> to vector<1x16x512xbf16>
    tpu.vector_store %arg15[%c0_9, %c0_10, %c0_11], %14 {strides = array<i32>} : memref<8x16x512xbf16, #tpu.memory_space<vmem>>, vector<1x16x512xbf16>,
    %c0_12 = arith.constant 0 : index
    %c0_13 = arith.constant 0 : index
    %15 = vector.load %arg16[%c0_12, %c0_13] : memref<16x128xf32, #tpu.memory_space<vmem>>, vector<16x128xf32>
    %c0_14 = arith.constant 0 : index
    %c0_15 = arith.constant 0 : index
    %16 = vector.load %arg17[%c0_14, %c0_15] : memref<16x128xf32, #tpu.memory_space<vmem>>, vector<16x128xf32>
    %c0_i32_16 = arith.constant 0 : i32
    %17 = arith.index_cast %c0_i32_16 : i32 to index
    %c0_17 = arith.constant 0 : index
    %c0_18 = arith.constant 0 : index
    %18 = vector.load %arg15[%17, %c0_17, %c0_18] : memref<8x16x512xbf16, #tpu.memory_space<vmem>>, vector<1x16x512xbf16>
    %19 = vector.shape_cast %18 : vector<1x16x512xbf16> to vector<16x512xbf16>
    %c1_i32 = arith.constant 1 : i32
    %20 = arith.addi %c0_i32_16, %c1_i32 : i32
    %c7_i32 = arith.constant 7 : i32
    %21 = arith.minsi %20, %c7_i32 : i32
    %22 = arith.index_cast %21 : i32 to index
    %c0_19 = arith.constant 0 : index
    %c0_20 = arith.constant 0 : index
    %23 = vector.load %arg2[%22, %c0_19, %c0_20] : memref<8x16x128xbf16, #tpu.memory_space<vmem>>, vector<1x16x128xbf16>
    %24 = vector.shape_cast %23 : vector<1x16x128xbf16> to vector<16x128xbf16>
    %cst_21 = arith.constant dense<0.000000e+00> : vector<16x512xf32>
    %25 = tpu.matmul %24, %3, %cst_21 {dimension_numbers = #tpu.dot_dimension_numbers<[1], [0], [0], [1], [0, 0, 1, 1], [], []>} : vector<16x128xbf16>, vector<128x512xbf16>, vector<16x512xf32> -> vector<16x512xf32>
    %26 = vector.broadcast %5 : vector<1x512xf32> to vector<16x512xf32>
    %27 = arith.addf %25, %26 : vector<16x512xf32>
    %28 = arith.truncf %27 : vector<16x512xf32> to vector<16x512xbf16>
    %29 = arith.index_cast %21 : i32 to index
    %c0_22 = arith.constant 0 : index
    %c0_23 = arith.constant 0 : index
    %30 = vector.load %arg15[%29, %c0_22, %c0_23] : memref<8x16x512xbf16, #tpu.memory_space<vmem>>, vector<1x16x512xbf16>
    %31 = vector.shape_cast %30 : vector<1x16x512xbf16> to vector<16x512xbf16>
    %32 = vector.shape_cast %28 : vector<16x512xbf16> to vector<1x16x512xbf16>
    tpu.vector_store %arg15[%29, %c0_22, %c0_23], %32 {strides = array<i32>} : memref<8x16x512xbf16, #tpu.memory_space<vmem>>, vector<1x16x512xbf16>,
    %33 = arith.truncf %15 : vector<16x128xf32> to vector<16x128xbf16>
    %cst_24 = arith.constant dense<0.000000e+00> : vector<16x512xf32>
    %34 = tpu.matmul %33, %4, %cst_24 {dimension_numbers = #tpu.dot_dimension_numbers<[1], [0], [0], [1], [0, 0, 1, 1], [], []>} : vector<16x128xbf16>, vector<128x512xbf16>, vector<16x512xf32> -> vector<16x512xf32>
    %35 = arith.extf %19 : vector<16x512xbf16> to vector<16x512xf32>
    %36 = arith.addf %35, %34 : vector<16x512xf32>
    %37 = vector.extract_strided_slice %36 {offsets = [0, 0], sizes = [16, 128], strides = [1, 1]} : vector<16x512xf32> to vector<16x128xf32>
    %cst_25 = arith.constant 5.000000e-01 : f32
    %38 = vector.broadcast %cst_25 : f32 to vector<16x128xf32>
    %39 = arith.mulf %37, %38 : vector<16x128xf32>
    %40 = math.tanh %39 : vector<16x128xf32>
    %cst_26 = arith.constant 5.000000e-01 : f32
    %41 = vector.broadcast %cst_26 : f32 to vector<16x128xf32>
    %42 = arith.mulf %40, %41 : vector<16x128xf32>
    %cst_27 = arith.constant 5.000000e-01 : f32
    %43 = vector.broadcast %cst_27 : f32 to vector<16x128xf32>
    %44 = arith.addf %42, %43 : vector<16x128xf32>
    %45 = vector.extract_strided_slice %36 {offsets = [0, 128], sizes = [16, 128], strides = [1, 1]} : vector<16x512xf32> to vector<16x128xf32>
    %cst_28 = arith.constant 5.000000e-01 : f32
    %46 = vector.broadcast %cst_28 : f32 to vector<16x128xf32>
    %47 = arith.mulf %45, %46 : vector<16x128xf32>
    %48 = math.tanh %47 : vector<16x128xf32>
    %cst_29 = arith.constant 5.000000e-01 : f32
    %49 = vector.broadcast %cst_29 : f32 to vector<16x128xf32>
    %50 = arith.mulf %48, %49 : vector<16x128xf32>
    %cst_30 = arith.constant 5.000000e-01 : f32
    %51 = vector.broadcast %cst_30 : f32 to vector<16x128xf32>
    %52 = arith.addf %50, %51 : vector<16x128xf32>
    %53 = vector.extract_strided_slice %36 {offsets = [0, 256], sizes = [16, 128], strides = [1, 1]} : vector<16x512xf32> to vector<16x128xf32>
    %54 = math.tanh %53 : vector<16x128xf32>
    %55 = vector.extract_strided_slice %36 {offsets = [0, 384], sizes = [16, 128], strides = [1, 1]} : vector<16x512xf32> to vector<16x128xf32>
    %cst_31 = arith.constant 5.000000e-01 : f32
    %56 = vector.broadcast %cst_31 : f32 to vector<16x128xf32>
    %57 = arith.mulf %55, %56 : vector<16x128xf32>
    %58 = math.tanh %57 : vector<16x128xf32>
    %cst_32 = arith.constant 5.000000e-01 : f32
    %59 = vector.broadcast %cst_32 : f32 to vector<16x128xf32>
    %60 = arith.mulf %58, %59 : vector<16x128xf32>
    %cst_33 = arith.constant 5.000000e-01 : f32
    %61 = vector.broadcast %cst_33 : f32 to vector<16x128xf32>
    %62 = arith.addf %60, %61 : vector<16x128xf32>
    %63 = arith.mulf %52, %16 : vector<16x128xf32>
    %64 = arith.mulf %44, %54 : vector<16x128xf32>
    %65 = arith.addf %63, %64 : vector<16x128xf32>
    %66 = math.tanh %65 : vector<16x128xf32>
    %67 = arith.mulf %62, %66 : vector<16x128xf32>
    %c1_i32_34 = arith.constant 1 : i32
    %68 = arith.index_cast %c1_i32_34 : i32 to index
    %c0_35 = arith.constant 0 : index
    %c0_36 = arith.constant 0 : index
    %69 = vector.load %arg15[%68, %c0_35, %c0_36] : memref<8x16x512xbf16, #tpu.memory_space<vmem>>, vector<1x16x512xbf16>
    %70 = vector.shape_cast %69 : vector<1x16x512xbf16> to vector<16x512xbf16>
    %c1_i32_37 = arith.constant 1 : i32
    %71 = arith.addi %c1_i32_34, %c1_i32_37 : i32
    %c7_i32_38 = arith.constant 7 : i32
    %72 = arith.minsi %71, %c7_i32_38 : i32
    %73 = arith.index_cast %72 : i32 to index
    %c0_39 = arith.constant 0 : index
    %c0_40 = arith.constant 0 : index
    %74 = vector.load %arg2[%73, %c0_39, %c0_40] : memref<8x16x128xbf16, #tpu.memory_space<vmem>>, vector<1x16x128xbf16>
    %75 = vector.shape_cast %74 : vector<1x16x128xbf16> to vector<16x128xbf16>
    %cst_41 = arith.constant dense<0.000000e+00> : vector<16x512xf32>
    %76 = tpu.matmul %75, %3, %cst_41 {dimension_numbers = #tpu.dot_dimension_numbers<[1], [0], [0], [1], [0, 0, 1, 1], [], []>} : vector<16x128xbf16>, vector<128x512xbf16>, vector<16x512xf32> -> vector<16x512xf32>
    %77 = vector.broadcast %5 : vector<1x512xf32> to vector<16x512xf32>
    %78 = arith.addf %76, %77 : vector<16x512xf32>
    %79 = arith.truncf %78 : vector<16x512xf32> to vector<16x512xbf16>
    %80 = arith.index_cast %72 : i32 to index
    %c0_42 = arith.constant 0 : index
    %c0_43 = arith.constant 0 : index
    %81 = vector.load %arg15[%80, %c0_42, %c0_43] : memref<8x16x512xbf16, #tpu.memory_space<vmem>>, vector<1x16x512xbf16>
    %82 = vector.shape_cast %81 : vector<1x16x512xbf16> to vector<16x512xbf16>
    %83 = vector.shape_cast %79 : vector<16x512xbf16> to vector<1x16x512xbf16>
    tpu.vector_store %arg15[%80, %c0_42, %c0_43], %83 {strides = array<i32>} : memref<8x16x512xbf16, #tpu.memory_space<vmem>>, vector<1x16x512xbf16>,
    %84 = arith.truncf %67 : vector<16x128xf32> to vector<16x128xbf16>
    %cst_44 = arith.constant dense<0.000000e+00> : vector<16x512xf32>
    %85 = tpu.matmul %84, %4, %cst_44 {dimension_numbers = #tpu.dot_dimension_numbers<[1], [0], [0], [1], [0, 0, 1, 1], [], []>} : vector<16x128xbf16>, vector<128x512xbf16>, vector<16x512xf32> -> vector<16x512xf32>
    %86 = arith.extf %70 : vector<16x512xbf16> to vector<16x512xf32>
    %87 = arith.addf %86, %85 : vector<16x512xf32>
    %88 = vector.extract_strided_slice %87 {offsets = [0, 0], sizes = [16, 128], strides = [1, 1]} : vector<16x512xf32> to vector<16x128xf32>
    %cst_45 = arith.constant 5.000000e-01 : f32
    %89 = vector.broadcast %cst_45 : f32 to vector<16x128xf32>
    %90 = arith.mulf %88, %89 : vector<16x128xf32>
    %91 = math.tanh %90 : vector<16x128xf32>
    %cst_46 = arith.constant 5.000000e-01 : f32
    %92 = vector.broadcast %cst_46 : f32 to vector<16x128xf32>
    %93 = arith.mulf %91, %92 : vector<16x128xf32>
    %cst_47 = arith.constant 5.000000e-01 : f32
    %94 = vector.broadcast %cst_47 : f32 to vector<16x128xf32>
    %95 = arith.addf %93, %94 : vector<16x128xf32>
    %96 = vector.extract_strided_slice %87 {offsets = [0, 128], sizes = [16, 128], strides = [1, 1]} : vector<16x512xf32> to vector<16x128xf32>
    %cst_48 = arith.constant 5.000000e-01 : f32
    %97 = vector.broadcast %cst_48 : f32 to vector<16x128xf32>
    %98 = arith.mulf %96, %97 : vector<16x128xf32>
    %99 = math.tanh %98 : vector<16x128xf32>
    %cst_49 = arith.constant 5.000000e-01 : f32
    %100 = vector.broadcast %cst_49 : f32 to vector<16x128xf32>
    %101 = arith.mulf %99, %100 : vector<16x128xf32>
    %cst_50 = arith.constant 5.000000e-01 : f32
    %102 = vector.broadcast %cst_50 : f32 to vector<16x128xf32>
    %103 = arith.addf %101, %102 : vector<16x128xf32>
    %104 = vector.extract_strided_slice %87 {offsets = [0, 256], sizes = [16, 128], strides = [1, 1]} : vector<16x512xf32> to vector<16x128xf32>
    %105 = math.tanh %104 : vector<16x128xf32>
    %106 = vector.extract_strided_slice %87 {offsets = [0, 384], sizes = [16, 128], strides = [1, 1]} : vector<16x512xf32> to vector<16x128xf32>
    %cst_51 = arith.constant 5.000000e-01 : f32
    %107 = vector.broadcast %cst_51 : f32 to vector<16x128xf32>
    %108 = arith.mulf %106, %107 : vector<16x128xf32>
    %109 = math.tanh %108 : vector<16x128xf32>
    %cst_52 = arith.constant 5.000000e-01 : f32
    %110 = vector.broadcast %cst_52 : f32 to vector<16x128xf32>
    %111 = arith.mulf %109, %110 : vector<16x128xf32>
    %cst_53 = arith.constant 5.000000e-01 : f32
    %112 = vector.broadcast %cst_53 : f32 to vector<16x128xf32>
    %113 = arith.addf %111, %112 : vector<16x128xf32>
    %114 = arith.mulf %103, %65 : vector<16x128xf32>
    %115 = arith.mulf %95, %105 : vector<16x128xf32>
    %116 = arith.addf %114, %115 : vector<16x128xf32>
    %117 = math.tanh %116 : vector<16x128xf32>
    %118 = arith.mulf %113, %117 : vector<16x128xf32>
    %c2_i32 = arith.constant 2 : i32
    %119 = arith.index_cast %c2_i32 : i32 to index
    %c0_54 = arith.constant 0 : index
    %c0_55 = arith.constant 0 : index
    %120 = vector.load %arg15[%119, %c0_54, %c0_55] : memref<8x16x512xbf16, #tpu.memory_space<vmem>>, vector<1x16x512xbf16>
    %121 = vector.shape_cast %120 : vector<1x16x512xbf16> to vector<16x512xbf16>
    %c1_i32_56 = arith.constant 1 : i32
    %122 = arith.addi %c2_i32, %c1_i32_56 : i32
    %c7_i32_57 = arith.constant 7 : i32
    %123 = arith.minsi %122, %c7_i32_57 : i32
    %124 = arith.index_cast %123 : i32 to index
    %c0_58 = arith.constant 0 : index
    %c0_59 = arith.constant 0 : index
    %125 = vector.load %arg2[%124, %c0_58, %c0_59] : memref<8x16x128xbf16, #tpu.memory_space<vmem>>, vector<1x16x128xbf16>
    %126 = vector.shape_cast %125 : vector<1x16x128xbf16> to vector<16x128xbf16>
    %cst_60 = arith.constant dense<0.000000e+00> : vector<16x512xf32>
    %127 = tpu.matmul %126, %3, %cst_60 {dimension_numbers = #tpu.dot_dimension_numbers<[1], [0], [0], [1], [0, 0, 1, 1], [], []>} : vector<16x128xbf16>, vector<128x512xbf16>, vector<16x512xf32> -> vector<16x512xf32>
    %128 = vector.broadcast %5 : vector<1x512xf32> to vector<16x512xf32>
    %129 = arith.addf %127, %128 : vector<16x512xf32>
    %130 = arith.truncf %129 : vector<16x512xf32> to vector<16x512xbf16>
    %131 = arith.index_cast %123 : i32 to index
    %c0_61 = arith.constant 0 : index
    %c0_62 = arith.constant 0 : index
    %132 = vector.load %arg15[%131, %c0_61, %c0_62] : memref<8x16x512xbf16, #tpu.memory_space<vmem>>, vector<1x16x512xbf16>
    %133 = vector.shape_cast %132 : vector<1x16x512xbf16> to vector<16x512xbf16>
    %134 = vector.shape_cast %130 : vector<16x512xbf16> to vector<1x16x512xbf16>
    tpu.vector_store %arg15[%131, %c0_61, %c0_62], %134 {strides = array<i32>} : memref<8x16x512xbf16, #tpu.memory_space<vmem>>, vector<1x16x512xbf16>,
    %135 = arith.truncf %118 : vector<16x128xf32> to vector<16x128xbf16>
    %cst_63 = arith.constant dense<0.000000e+00> : vector<16x512xf32>
    %136 = tpu.matmul %135, %4, %cst_63 {dimension_numbers = #tpu.dot_dimension_numbers<[1], [0], [0], [1], [0, 0, 1, 1], [], []>} : vector<16x128xbf16>, vector<128x512xbf16>, vector<16x512xf32> -> vector<16x512xf32>
    %137 = arith.extf %121 : vector<16x512xbf16> to vector<16x512xf32>
    %138 = arith.addf %137, %136 : vector<16x512xf32>
    %139 = vector.extract_strided_slice %138 {offsets = [0, 0], sizes = [16, 128], strides = [1, 1]} : vector<16x512xf32> to vector<16x128xf32>
    %cst_64 = arith.constant 5.000000e-01 : f32
    %140 = vector.broadcast %cst_64 : f32 to vector<16x128xf32>
    %141 = arith.mulf %139, %140 : vector<16x128xf32>
    %142 = math.tanh %141 : vector<16x128xf32>
    %cst_65 = arith.constant 5.000000e-01 : f32
    %143 = vector.broadcast %cst_65 : f32 to vector<16x128xf32>
    %144 = arith.mulf %142, %143 : vector<16x128xf32>
    %cst_66 = arith.constant 5.000000e-01 : f32
    %145 = vector.broadcast %cst_66 : f32 to vector<16x128xf32>
    %146 = arith.addf %144, %145 : vector<16x128xf32>
    %147 = vector.extract_strided_slice %138 {offsets = [0, 128], sizes = [16, 128], strides = [1, 1]} : vector<16x512xf32> to vector<16x128xf32>
    %cst_67 = arith.constant 5.000000e-01 : f32
    %148 = vector.broadcast %cst_67 : f32 to vector<16x128xf32>
    %149 = arith.mulf %147, %148 : vector<16x128xf32>
    %150 = math.tanh %149 : vector<16x128xf32>
    %cst_68 = arith.constant 5.000000e-01 : f32
    %151 = vector.broadcast %cst_68 : f32 to vector<16x128xf32>
    %152 = arith.mulf %150, %151 : vector<16x128xf32>
    %cst_69 = arith.constant 5.000000e-01 : f32
    %153 = vector.broadcast %cst_69 : f32 to vector<16x128xf32>
    %154 = arith.addf %152, %153 : vector<16x128xf32>
    %155 = vector.extract_strided_slice %138 {offsets = [0, 256], sizes = [16, 128], strides = [1, 1]} : vector<16x512xf32> to vector<16x128xf32>
    %156 = math.tanh %155 : vector<16x128xf32>
    %157 = vector.extract_strided_slice %138 {offsets = [0, 384], sizes = [16, 128], strides = [1, 1]} : vector<16x512xf32> to vector<16x128xf32>
    %cst_70 = arith.constant 5.000000e-01 : f32
    %158 = vector.broadcast %cst_70 : f32 to vector<16x128xf32>
    %159 = arith.mulf %157, %158 : vector<16x128xf32>
    %160 = math.tanh %159 : vector<16x128xf32>
    %cst_71 = arith.constant 5.000000e-01 : f32
    %161 = vector.broadcast %cst_71 : f32 to vector<16x128xf32>
    %162 = arith.mulf %160, %161 : vector<16x128xf32>
    %cst_72 = arith.constant 5.000000e-01 : f32
    %163 = vector.broadcast %cst_72 : f32 to vector<16x128xf32>
    %164 = arith.addf %162, %163 : vector<16x128xf32>
    %165 = arith.mulf %154, %116 : vector<16x128xf32>
    %166 = arith.mulf %146, %156 : vector<16x128xf32>
    %167 = arith.addf %165, %166 : vector<16x128xf32>
    %168 = math.tanh %167 : vector<16x128xf32>
    %169 = arith.mulf %164, %168 : vector<16x128xf32>
    %c3_i32 = arith.constant 3 : i32
    %170 = arith.index_cast %c3_i32 : i32 to index
    %c0_73 = arith.constant 0 : index
    %c0_74 = arith.constant 0 : index
    %171 = vector.load %arg15[%170, %c0_73, %c0_74] : memref<8x16x512xbf16, #tpu.memory_space<vmem>>, vector<1x16x512xbf16>
    %172 = vector.shape_cast %171 : vector<1x16x512xbf16> to vector<16x512xbf16>
    %c1_i32_75 = arith.constant 1 : i32
    %173 = arith.addi %c3_i32, %c1_i32_75 : i32
    %c7_i32_76 = arith.constant 7 : i32
    %174 = arith.minsi %173, %c7_i32_76 : i32
    %175 = arith.index_cast %174 : i32 to index
    %c0_77 = arith.constant 0 : index
    %c0_78 = arith.constant 0 : index
    %176 = vector.load %arg2[%175, %c0_77, %c0_78] : memref<8x16x128xbf16, #tpu.memory_space<vmem>>, vector<1x16x128xbf16>
    %177 = vector.shape_cast %176 : vector<1x16x128xbf16> to vector<16x128xbf16>
    %cst_79 = arith.constant dense<0.000000e+00> : vector<16x512xf32>
    %178 = tpu.matmul %177, %3, %cst_79 {dimension_numbers = #tpu.dot_dimension_numbers<[1], [0], [0], [1], [0, 0, 1, 1], [], []>} : vector<16x128xbf16>, vector<128x512xbf16>, vector<16x512xf32> -> vector<16x512xf32>
    %179 = vector.broadcast %5 : vector<1x512xf32> to vector<16x512xf32>
    %180 = arith.addf %178, %179 : vector<16x512xf32>
    %181 = arith.truncf %180 : vector<16x512xf32> to vector<16x512xbf16>
    %182 = arith.index_cast %174 : i32 to index
    %c0_80 = arith.constant 0 : index
    %c0_81 = arith.constant 0 : index
    %183 = vector.load %arg15[%182, %c0_80, %c0_81] : memref<8x16x512xbf16, #tpu.memory_space<vmem>>, vector<1x16x512xbf16>
    %184 = vector.shape_cast %183 : vector<1x16x512xbf16> to vector<16x512xbf16>
    %185 = vector.shape_cast %181 : vector<16x512xbf16> to vector<1x16x512xbf16>
    tpu.vector_store %arg15[%182, %c0_80, %c0_81], %185 {strides = array<i32>} : memref<8x16x512xbf16, #tpu.memory_space<vmem>>, vector<1x16x512xbf16>,
    %186 = arith.truncf %169 : vector<16x128xf32> to vector<16x128xbf16>
    %cst_82 = arith.constant dense<0.000000e+00> : vector<16x512xf32>
    %187 = tpu.matmul %186, %4, %cst_82 {dimension_numbers = #tpu.dot_dimension_numbers<[1], [0], [0], [1], [0, 0, 1, 1], [], []>} : vector<16x128xbf16>, vector<128x512xbf16>, vector<16x512xf32> -> vector<16x512xf32>
    %188 = arith.extf %172 : vector<16x512xbf16> to vector<16x512xf32>
    %189 = arith.addf %188, %187 : vector<16x512xf32>
    %190 = vector.extract_strided_slice %189 {offsets = [0, 0], sizes = [16, 128], strides = [1, 1]} : vector<16x512xf32> to vector<16x128xf32>
    %cst_83 = arith.constant 5.000000e-01 : f32
    %191 = vector.broadcast %cst_83 : f32 to vector<16x128xf32>
    %192 = arith.mulf %190, %191 : vector<16x128xf32>
    %193 = math.tanh %192 : vector<16x128xf32>
    %cst_84 = arith.constant 5.000000e-01 : f32
    %194 = vector.broadcast %cst_84 : f32 to vector<16x128xf32>
    %195 = arith.mulf %193, %194 : vector<16x128xf32>
    %cst_85 = arith.constant 5.000000e-01 : f32
    %196 = vector.broadcast %cst_85 : f32 to vector<16x128xf32>
    %197 = arith.addf %195, %196 : vector<16x128xf32>
    %198 = vector.extract_strided_slice %189 {offsets = [0, 128], sizes = [16, 128], strides = [1, 1]} : vector<16x512xf32> to vector<16x128xf32>
    %cst_86 = arith.constant 5.000000e-01 : f32
    %199 = vector.broadcast %cst_86 : f32 to vector<16x128xf32>
    %200 = arith.mulf %198, %199 : vector<16x128xf32>
    %201 = math.tanh %200 : vector<16x128xf32>
    %cst_87 = arith.constant 5.000000e-01 : f32
    %202 = vector.broadcast %cst_87 : f32 to vector<16x128xf32>
    %203 = arith.mulf %201, %202 : vector<16x128xf32>
    %cst_88 = arith.constant 5.000000e-01 : f32
    %204 = vector.broadcast %cst_88 : f32 to vector<16x128xf32>
    %205 = arith.addf %203, %204 : vector<16x128xf32>
    %206 = vector.extract_strided_slice %189 {offsets = [0, 256], sizes = [16, 128], strides = [1, 1]} : vector<16x512xf32> to vector<16x128xf32>
    %207 = math.tanh %206 : vector<16x128xf32>
    %208 = vector.extract_strided_slice %189 {offsets = [0, 384], sizes = [16, 128], strides = [1, 1]} : vector<16x512xf32> to vector<16x128xf32>
    %cst_89 = arith.constant 5.000000e-01 : f32
    %209 = vector.broadcast %cst_89 : f32 to vector<16x128xf32>
    %210 = arith.mulf %208, %209 : vector<16x128xf32>
    %211 = math.tanh %210 : vector<16x128xf32>
    %cst_90 = arith.constant 5.000000e-01 : f32
    %212 = vector.broadcast %cst_90 : f32 to vector<16x128xf32>
    %213 = arith.mulf %211, %212 : vector<16x128xf32>
    %cst_91 = arith.constant 5.000000e-01 : f32
    %214 = vector.broadcast %cst_91 : f32 to vector<16x128xf32>
    %215 = arith.addf %213, %214 : vector<16x128xf32>
    %216 = arith.mulf %205, %167 : vector<16x128xf32>
    %217 = arith.mulf %197, %207 : vector<16x128xf32>
    %218 = arith.addf %216, %217 : vector<16x128xf32>
    %219 = math.tanh %218 : vector<16x128xf32>
    %220 = arith.mulf %215, %219 : vector<16x128xf32>
    %c4_i32 = arith.constant 4 : i32
    %221 = arith.index_cast %c4_i32 : i32 to index
    %c0_92 = arith.constant 0 : index
    %c0_93 = arith.constant 0 : index
    %222 = vector.load %arg15[%221, %c0_92, %c0_93] : memref<8x16x512xbf16, #tpu.memory_space<vmem>>, vector<1x16x512xbf16>
    %223 = vector.shape_cast %222 : vector<1x16x512xbf16> to vector<16x512xbf16>
    %c1_i32_94 = arith.constant 1 : i32
    %224 = arith.addi %c4_i32, %c1_i32_94 : i32
    %c7_i32_95 = arith.constant 7 : i32
    %225 = arith.minsi %224, %c7_i32_95 : i32
    %226 = arith.index_cast %225 : i32 to index
    %c0_96 = arith.constant 0 : index
    %c0_97 = arith.constant 0 : index
    %227 = vector.load %arg2[%226, %c0_96, %c0_97] : memref<8x16x128xbf16, #tpu.memory_space<vmem>>, vector<1x16x128xbf16>
    %228 = vector.shape_cast %227 : vector<1x16x128xbf16> to vector<16x128xbf16>
    %cst_98 = arith.constant dense<0.000000e+00> : vector<16x512xf32>
    %229 = tpu.matmul %228, %3, %cst_98 {dimension_numbers = #tpu.dot_dimension_numbers<[1], [0], [0], [1], [0, 0, 1, 1], [], []>} : vector<16x128xbf16>, vector<128x512xbf16>, vector<16x512xf32> -> vector<16x512xf32>
    %230 = vector.broadcast %5 : vector<1x512xf32> to vector<16x512xf32>
    %231 = arith.addf %229, %230 : vector<16x512xf32>
    %232 = arith.truncf %231 : vector<16x512xf32> to vector<16x512xbf16>
    %233 = arith.index_cast %225 : i32 to index
    %c0_99 = arith.constant 0 : index
    %c0_100 = arith.constant 0 : index
    %234 = vector.load %arg15[%233, %c0_99, %c0_100] : memref<8x16x512xbf16, #tpu.memory_space<vmem>>, vector<1x16x512xbf16>
    %235 = vector.shape_cast %234 : vector<1x16x512xbf16> to vector<16x512xbf16>
    %236 = vector.shape_cast %232 : vector<16x512xbf16> to vector<1x16x512xbf16>
    tpu.vector_store %arg15[%233, %c0_99, %c0_100], %236 {strides = array<i32>} : memref<8x16x512xbf16, #tpu.memory_space<vmem>>, vector<1x16x512xbf16>,
    %237 = arith.truncf %220 : vector<16x128xf32> to vector<16x128xbf16>
    %cst_101 = arith.constant dense<0.000000e+00> : vector<16x512xf32>
    %238 = tpu.matmul %237, %4, %cst_101 {dimension_numbers = #tpu.dot_dimension_numbers<[1], [0], [0], [1], [0, 0, 1, 1], [], []>} : vector<16x128xbf16>, vector<128x512xbf16>, vector<16x512xf32> -> vector<16x512xf32>
    %239 = arith.extf %223 : vector<16x512xbf16> to vector<16x512xf32>
    %240 = arith.addf %239, %238 : vector<16x512xf32>
    %241 = vector.extract_strided_slice %240 {offsets = [0, 0], sizes = [16, 128], strides = [1, 1]} : vector<16x512xf32> to vector<16x128xf32>
    %cst_102 = arith.constant 5.000000e-01 : f32
    %242 = vector.broadcast %cst_102 : f32 to vector<16x128xf32>
    %243 = arith.mulf %241, %242 : vector<16x128xf32>
    %244 = math.tanh %243 : vector<16x128xf32>
    %cst_103 = arith.constant 5.000000e-01 : f32
    %245 = vector.broadcast %cst_103 : f32 to vector<16x128xf32>
    %246 = arith.mulf %244, %245 : vector<16x128xf32>
    %cst_104 = arith.constant 5.000000e-01 : f32
    %247 = vector.broadcast %cst_104 : f32 to vector<16x128xf32>
    %248 = arith.addf %246, %247 : vector<16x128xf32>
    %249 = vector.extract_strided_slice %240 {offsets = [0, 128], sizes = [16, 128], strides = [1, 1]} : vector<16x512xf32> to vector<16x128xf32>
    %cst_105 = arith.constant 5.000000e-01 : f32
    %250 = vector.broadcast %cst_105 : f32 to vector<16x128xf32>
    %251 = arith.mulf %249, %250 : vector<16x128xf32>
    %252 = math.tanh %251 : vector<16x128xf32>
    %cst_106 = arith.constant 5.000000e-01 : f32
    %253 = vector.broadcast %cst_106 : f32 to vector<16x128xf32>
    %254 = arith.mulf %252, %253 : vector<16x128xf32>
    %cst_107 = arith.constant 5.000000e-01 : f32
    %255 = vector.broadcast %cst_107 : f32 to vector<16x128xf32>
    %256 = arith.addf %254, %255 : vector<16x128xf32>
    %257 = vector.extract_strided_slice %240 {offsets = [0, 256], sizes = [16, 128], strides = [1, 1]} : vector<16x512xf32> to vector<16x128xf32>
    %258 = math.tanh %257 : vector<16x128xf32>
    %259 = vector.extract_strided_slice %240 {offsets = [0, 384], sizes = [16, 128], strides = [1, 1]} : vector<16x512xf32> to vector<16x128xf32>
    %cst_108 = arith.constant 5.000000e-01 : f32
    %260 = vector.broadcast %cst_108 : f32 to vector<16x128xf32>
    %261 = arith.mulf %259, %260 : vector<16x128xf32>
    %262 = math.tanh %261 : vector<16x128xf32>
    %cst_109 = arith.constant 5.000000e-01 : f32
    %263 = vector.broadcast %cst_109 : f32 to vector<16x128xf32>
    %264 = arith.mulf %262, %263 : vector<16x128xf32>
    %cst_110 = arith.constant 5.000000e-01 : f32
    %265 = vector.broadcast %cst_110 : f32 to vector<16x128xf32>
    %266 = arith.addf %264, %265 : vector<16x128xf32>
    %267 = arith.mulf %256, %218 : vector<16x128xf32>
    %268 = arith.mulf %248, %258 : vector<16x128xf32>
    %269 = arith.addf %267, %268 : vector<16x128xf32>
    %270 = math.tanh %269 : vector<16x128xf32>
    %271 = arith.mulf %266, %270 : vector<16x128xf32>
    %c5_i32 = arith.constant 5 : i32
    %272 = arith.index_cast %c5_i32 : i32 to index
    %c0_111 = arith.constant 0 : index
    %c0_112 = arith.constant 0 : index
    %273 = vector.load %arg15[%272, %c0_111, %c0_112] : memref<8x16x512xbf16, #tpu.memory_space<vmem>>, vector<1x16x512xbf16>
    %274 = vector.shape_cast %273 : vector<1x16x512xbf16> to vector<16x512xbf16>
    %c1_i32_113 = arith.constant 1 : i32
    %275 = arith.addi %c5_i32, %c1_i32_113 : i32
    %c7_i32_114 = arith.constant 7 : i32
    %276 = arith.minsi %275, %c7_i32_114 : i32
    %277 = arith.index_cast %276 : i32 to index
    %c0_115 = arith.constant 0 : index
    %c0_116 = arith.constant 0 : index
    %278 = vector.load %arg2[%277, %c0_115, %c0_116] : memref<8x16x128xbf16, #tpu.memory_space<vmem>>, vector<1x16x128xbf16>
    %279 = vector.shape_cast %278 : vector<1x16x128xbf16> to vector<16x128xbf16>
    %cst_117 = arith.constant dense<0.000000e+00> : vector<16x512xf32>
    %280 = tpu.matmul %279, %3, %cst_117 {dimension_numbers = #tpu.dot_dimension_numbers<[1], [0], [0], [1], [0, 0, 1, 1], [], []>} : vector<16x128xbf16>, vector<128x512xbf16>, vector<16x512xf32> -> vector<16x512xf32>
    %281 = vector.broadcast %5 : vector<1x512xf32> to vector<16x512xf32>
    %282 = arith.addf %280, %281 : vector<16x512xf32>
    %283 = arith.truncf %282 : vector<16x512xf32> to vector<16x512xbf16>
    %284 = arith.index_cast %276 : i32 to index
    %c0_118 = arith.constant 0 : index
    %c0_119 = arith.constant 0 : index
    %285 = vector.load %arg15[%284, %c0_118, %c0_119] : memref<8x16x512xbf16, #tpu.memory_space<vmem>>, vector<1x16x512xbf16>
    %286 = vector.shape_cast %285 : vector<1x16x512xbf16> to vector<16x512xbf16>
    %287 = vector.shape_cast %283 : vector<16x512xbf16> to vector<1x16x512xbf16>
    tpu.vector_store %arg15[%284, %c0_118, %c0_119], %287 {strides = array<i32>} : memref<8x16x512xbf16, #tpu.memory_space<vmem>>, vector<1x16x512xbf16>,
    %288 = arith.truncf %271 : vector<16x128xf32> to vector<16x128xbf16>
    %cst_120 = arith.constant dense<0.000000e+00> : vector<16x512xf32>
    %289 = tpu.matmul %288, %4, %cst_120 {dimension_numbers = #tpu.dot_dimension_numbers<[1], [0], [0], [1], [0, 0, 1, 1], [], []>} : vector<16x128xbf16>, vector<128x512xbf16>, vector<16x512xf32> -> vector<16x512xf32>
    %290 = arith.extf %274 : vector<16x512xbf16> to vector<16x512xf32>
    %291 = arith.addf %290, %289 : vector<16x512xf32>
    %292 = vector.extract_strided_slice %291 {offsets = [0, 0], sizes = [16, 128], strides = [1, 1]} : vector<16x512xf32> to vector<16x128xf32>
    %cst_121 = arith.constant 5.000000e-01 : f32
    %293 = vector.broadcast %cst_121 : f32 to vector<16x128xf32>
    %294 = arith.mulf %292, %293 : vector<16x128xf32>
    %295 = math.tanh %294 : vector<16x128xf32>
    %cst_122 = arith.constant 5.000000e-01 : f32
    %296 = vector.broadcast %cst_122 : f32 to vector<16x128xf32>
    %297 = arith.mulf %295, %296 : vector<16x128xf32>
    %cst_123 = arith.constant 5.000000e-01 : f32
    %298 = vector.broadcast %cst_123 : f32 to vector<16x128xf32>
    %299 = arith.addf %297, %298 : vector<16x128xf32>
    %300 = vector.extract_strided_slice %291 {offsets = [0, 128], sizes = [16, 128], strides = [1, 1]} : vector<16x512xf32> to vector<16x128xf32>
    %cst_124 = arith.constant 5.000000e-01 : f32
    %301 = vector.broadcast %cst_124 : f32 to vector<16x128xf32>
    %302 = arith.mulf %300, %301 : vector<16x128xf32>
    %303 = math.tanh %302 : vector<16x128xf32>
    %cst_125 = arith.constant 5.000000e-01 : f32
    %304 = vector.broadcast %cst_125 : f32 to vector<16x128xf32>
    %305 = arith.mulf %303, %304 : vector<16x128xf32>
    %cst_126 = arith.constant 5.000000e-01 : f32
    %306 = vector.broadcast %cst_126 : f32 to vector<16x128xf32>
    %307 = arith.addf %305, %306 : vector<16x128xf32>
    %308 = vector.extract_strided_slice %291 {offsets = [0, 256], sizes = [16, 128], strides = [1, 1]} : vector<16x512xf32> to vector<16x128xf32>
    %309 = math.tanh %308 : vector<16x128xf32>
    %310 = vector.extract_strided_slice %291 {offsets = [0, 384], sizes = [16, 128], strides = [1, 1]} : vector<16x512xf32> to vector<16x128xf32>
    %cst_127 = arith.constant 5.000000e-01 : f32
    %311 = vector.broadcast %cst_127 : f32 to vector<16x128xf32>
    %312 = arith.mulf %310, %311 : vector<16x128xf32>
    %313 = math.tanh %312 : vector<16x128xf32>
    %cst_128 = arith.constant 5.000000e-01 : f32
    %314 = vector.broadcast %cst_128 : f32 to vector<16x128xf32>
    %315 = arith.mulf %313, %314 : vector<16x128xf32>
    %cst_129 = arith.constant 5.000000e-01 : f32
    %316 = vector.broadcast %cst_129 : f32 to vector<16x128xf32>
    %317 = arith.addf %315, %316 : vector<16x128xf32>
    %318 = arith.mulf %307, %269 : vector<16x128xf32>
    %319 = arith.mulf %299, %309 : vector<16x128xf32>
    %320 = arith.addf %318, %319 : vector<16x128xf32>
    %321 = math.tanh %320 : vector<16x128xf32>
    %322 = arith.mulf %317, %321 : vector<16x128xf32>
    %c6_i32 = arith.constant 6 : i32
    %323 = arith.index_cast %c6_i32 : i32 to index
    %c0_130 = arith.constant 0 : index
    %c0_131 = arith.constant 0 : index
    %324 = vector.load %arg15[%323, %c0_130, %c0_131] : memref<8x16x512xbf16, #tpu.memory_space<vmem>>, vector<1x16x512xbf16>
    %325 = vector.shape_cast %324 : vector<1x16x512xbf16> to vector<16x512xbf16>
    %c1_i32_132 = arith.constant 1 : i32
    %326 = arith.addi %c6_i32, %c1_i32_132 : i32
    %c7_i32_133 = arith.constant 7 : i32
    %327 = arith.minsi %326, %c7_i32_133 : i32
    %328 = arith.index_cast %327 : i32 to index
    %c0_134 = arith.constant 0 : index
    %c0_135 = arith.constant 0 : index
    %329 = vector.load %arg2[%328, %c0_134, %c0_135] : memref<8x16x128xbf16, #tpu.memory_space<vmem>>, vector<1x16x128xbf16>
    %330 = vector.shape_cast %329 : vector<1x16x128xbf16> to vector<16x128xbf16>
    %cst_136 = arith.constant dense<0.000000e+00> : vector<16x512xf32>
    %331 = tpu.matmul %330, %3, %cst_136 {dimension_numbers = #tpu.dot_dimension_numbers<[1], [0], [0], [1], [0, 0, 1, 1], [], []>} : vector<16x128xbf16>, vector<128x512xbf16>, vector<16x512xf32> -> vector<16x512xf32>
    %332 = vector.broadcast %5 : vector<1x512xf32> to vector<16x512xf32>
    %333 = arith.addf %331, %332 : vector<16x512xf32>
    %334 = arith.truncf %333 : vector<16x512xf32> to vector<16x512xbf16>
    %335 = arith.index_cast %327 : i32 to index
    %c0_137 = arith.constant 0 : index
    %c0_138 = arith.constant 0 : index
    %336 = vector.load %arg15[%335, %c0_137, %c0_138] : memref<8x16x512xbf16, #tpu.memory_space<vmem>>, vector<1x16x512xbf16>
    %337 = vector.shape_cast %336 : vector<1x16x512xbf16> to vector<16x512xbf16>
    %338 = vector.shape_cast %334 : vector<16x512xbf16> to vector<1x16x512xbf16>
    tpu.vector_store %arg15[%335, %c0_137, %c0_138], %338 {strides = array<i32>} : memref<8x16x512xbf16, #tpu.memory_space<vmem>>, vector<1x16x512xbf16>,
    %339 = arith.truncf %322 : vector<16x128xf32> to vector<16x128xbf16>
    %cst_139 = arith.constant dense<0.000000e+00> : vector<16x512xf32>
    %340 = tpu.matmul %339, %4, %cst_139 {dimension_numbers = #tpu.dot_dimension_numbers<[1], [0], [0], [1], [0, 0, 1, 1], [], []>} : vector<16x128xbf16>, vector<128x512xbf16>, vector<16x512xf32> -> vector<16x512xf32>
    %341 = arith.extf %325 : vector<16x512xbf16> to vector<16x512xf32>
    %342 = arith.addf %341, %340 : vector<16x512xf32>
    %343 = vector.extract_strided_slice %342 {offsets = [0, 0], sizes = [16, 128], strides = [1, 1]} : vector<16x512xf32> to vector<16x128xf32>
    %cst_140 = arith.constant 5.000000e-01 : f32
    %344 = vector.broadcast %cst_140 : f32 to vector<16x128xf32>
    %345 = arith.mulf %343, %344 : vector<16x128xf32>
    %346 = math.tanh %345 : vector<16x128xf32>
    %cst_141 = arith.constant 5.000000e-01 : f32
    %347 = vector.broadcast %cst_141 : f32 to vector<16x128xf32>
    %348 = arith.mulf %346, %347 : vector<16x128xf32>
    %cst_142 = arith.constant 5.000000e-01 : f32
    %349 = vector.broadcast %cst_142 : f32 to vector<16x128xf32>
    %350 = arith.addf %348, %349 : vector<16x128xf32>
    %351 = vector.extract_strided_slice %342 {offsets = [0, 128], sizes = [16, 128], strides = [1, 1]} : vector<16x512xf32> to vector<16x128xf32>
    %cst_143 = arith.constant 5.000000e-01 : f32
    %352 = vector.broadcast %cst_143 : f32 to vector<16x128xf32>
    %353 = arith.mulf %351, %352 : vector<16x128xf32>
    %354 = math.tanh %353 : vector<16x128xf32>
    %cst_144 = arith.constant 5.000000e-01 : f32
    %355 = vector.broadcast %cst_144 : f32 to vector<16x128xf32>
    %356 = arith.mulf %354, %355 : vector<16x128xf32>
    %cst_145 = arith.constant 5.000000e-01 : f32
    %357 = vector.broadcast %cst_145 : f32 to vector<16x128xf32>
    %358 = arith.addf %356, %357 : vector<16x128xf32>
    %359 = vector.extract_strided_slice %342 {offsets = [0, 256], sizes = [16, 128], strides = [1, 1]} : vector<16x512xf32> to vector<16x128xf32>
    %360 = math.tanh %359 : vector<16x128xf32>
    %361 = vector.extract_strided_slice %342 {offsets = [0, 384], sizes = [16, 128], strides = [1, 1]} : vector<16x512xf32> to vector<16x128xf32>
    %cst_146 = arith.constant 5.000000e-01 : f32
    %362 = vector.broadcast %cst_146 : f32 to vector<16x128xf32>
    %363 = arith.mulf %361, %362 : vector<16x128xf32>
    %364 = math.tanh %363 : vector<16x128xf32>
    %cst_147 = arith.constant 5.000000e-01 : f32
    %365 = vector.broadcast %cst_147 : f32 to vector<16x128xf32>
    %366 = arith.mulf %364, %365 : vector<16x128xf32>
    %cst_148 = arith.constant 5.000000e-01 : f32
    %367 = vector.broadcast %cst_148 : f32 to vector<16x128xf32>
    %368 = arith.addf %366, %367 : vector<16x128xf32>
    %369 = arith.mulf %358, %320 : vector<16x128xf32>
    %370 = arith.mulf %350, %360 : vector<16x128xf32>
    %371 = arith.addf %369, %370 : vector<16x128xf32>
    %372 = math.tanh %371 : vector<16x128xf32>
    %373 = arith.mulf %368, %372 : vector<16x128xf32>
    %c7_i32_149 = arith.constant 7 : i32
    %374 = arith.index_cast %c7_i32_149 : i32 to index
    %c0_150 = arith.constant 0 : index
    %c0_151 = arith.constant 0 : index
    %375 = vector.load %arg15[%374, %c0_150, %c0_151] : memref<8x16x512xbf16, #tpu.memory_space<vmem>>, vector<1x16x512xbf16>
    %376 = vector.shape_cast %375 : vector<1x16x512xbf16> to vector<16x512xbf16>
    %c1_i32_152 = arith.constant 1 : i32
    %377 = arith.addi %c7_i32_149, %c1_i32_152 : i32
    %c7_i32_153 = arith.constant 7 : i32
    %378 = arith.minsi %377, %c7_i32_153 : i32
    %379 = arith.index_cast %378 : i32 to index
    %c0_154 = arith.constant 0 : index
    %c0_155 = arith.constant 0 : index
    %380 = vector.load %arg2[%379, %c0_154, %c0_155] : memref<8x16x128xbf16, #tpu.memory_space<vmem>>, vector<1x16x128xbf16>
    %381 = vector.shape_cast %380 : vector<1x16x128xbf16> to vector<16x128xbf16>
    %cst_156 = arith.constant dense<0.000000e+00> : vector<16x512xf32>
    %382 = tpu.matmul %381, %3, %cst_156 {dimension_numbers = #tpu.dot_dimension_numbers<[1], [0], [0], [1], [0, 0, 1, 1], [], []>} : vector<16x128xbf16>, vector<128x512xbf16>, vector<16x512xf32> -> vector<16x512xf32>
    %383 = vector.broadcast %5 : vector<1x512xf32> to vector<16x512xf32>
    %384 = arith.addf %382, %383 : vector<16x512xf32>
    %385 = arith.truncf %384 : vector<16x512xf32> to vector<16x512xbf16>
    %386 = arith.index_cast %378 : i32 to index
    %c0_157 = arith.constant 0 : index
    %c0_158 = arith.constant 0 : index
    %387 = vector.load %arg15[%386, %c0_157, %c0_158] : memref<8x16x512xbf16, #tpu.memory_space<vmem>>, vector<1x16x512xbf16>
    %388 = vector.shape_cast %387 : vector<1x16x512xbf16> to vector<16x512xbf16>
    %389 = vector.shape_cast %385 : vector<16x512xbf16> to vector<1x16x512xbf16>
    tpu.vector_store %arg15[%386, %c0_157, %c0_158], %389 {strides = array<i32>} : memref<8x16x512xbf16, #tpu.memory_space<vmem>>, vector<1x16x512xbf16>,
    %390 = arith.truncf %373 : vector<16x128xf32> to vector<16x128xbf16>
    %cst_159 = arith.constant dense<0.000000e+00> : vector<16x512xf32>
    %391 = tpu.matmul %390, %4, %cst_159 {dimension_numbers = #tpu.dot_dimension_numbers<[1], [0], [0], [1], [0, 0, 1, 1], [], []>} : vector<16x128xbf16>, vector<128x512xbf16>, vector<16x512xf32> -> vector<16x512xf32>
    %392 = arith.extf %376 : vector<16x512xbf16> to vector<16x512xf32>
    %393 = arith.addf %392, %391 : vector<16x512xf32>
    %394 = vector.extract_strided_slice %393 {offsets = [0, 0], sizes = [16, 128], strides = [1, 1]} : vector<16x512xf32> to vector<16x128xf32>
    %cst_160 = arith.constant 5.000000e-01 : f32
    %395 = vector.broadcast %cst_160 : f32 to vector<16x128xf32>
    %396 = arith.mulf %394, %395 : vector<16x128xf32>
    %397 = math.tanh %396 : vector<16x128xf32>
    %cst_161 = arith.constant 5.000000e-01 : f32
    %398 = vector.broadcast %cst_161 : f32 to vector<16x128xf32>
    %399 = arith.mulf %397, %398 : vector<16x128xf32>
    %cst_162 = arith.constant 5.000000e-01 : f32
    %400 = vector.broadcast %cst_162 : f32 to vector<16x128xf32>
    %401 = arith.addf %399, %400 : vector<16x128xf32>
    %402 = vector.extract_strided_slice %393 {offsets = [0, 128], sizes = [16, 128], strides = [1, 1]} : vector<16x512xf32> to vector<16x128xf32>
    %cst_163 = arith.constant 5.000000e-01 : f32
    %403 = vector.broadcast %cst_163 : f32 to vector<16x128xf32>
    %404 = arith.mulf %402, %403 : vector<16x128xf32>
    %405 = math.tanh %404 : vector<16x128xf32>
    %cst_164 = arith.constant 5.000000e-01 : f32
    %406 = vector.broadcast %cst_164 : f32 to vector<16x128xf32>
    %407 = arith.mulf %405, %406 : vector<16x128xf32>
    %cst_165 = arith.constant 5.000000e-01 : f32
    %408 = vector.broadcast %cst_165 : f32 to vector<16x128xf32>
    %409 = arith.addf %407, %408 : vector<16x128xf32>
    %410 = vector.extract_strided_slice %393 {offsets = [0, 256], sizes = [16, 128], strides = [1, 1]} : vector<16x512xf32> to vector<16x128xf32>
    %411 = math.tanh %410 : vector<16x128xf32>
    %412 = vector.extract_strided_slice %393 {offsets = [0, 384], sizes = [16, 128], strides = [1, 1]} : vector<16x512xf32> to vector<16x128xf32>
    %cst_166 = arith.constant 5.000000e-01 : f32
    %413 = vector.broadcast %cst_166 : f32 to vector<16x128xf32>
    %414 = arith.mulf %412, %413 : vector<16x128xf32>
    %415 = math.tanh %414 : vector<16x128xf32>
    %cst_167 = arith.constant 5.000000e-01 : f32
    %416 = vector.broadcast %cst_167 : f32 to vector<16x128xf32>
    %417 = arith.mulf %415, %416 : vector<16x128xf32>
    %cst_168 = arith.constant 5.000000e-01 : f32
    %418 = vector.broadcast %cst_168 : f32 to vector<16x128xf32>
    %419 = arith.addf %417, %418 : vector<16x128xf32>
    %420 = arith.mulf %409, %371 : vector<16x128xf32>
    %421 = arith.mulf %401, %411 : vector<16x128xf32>
    %422 = arith.addf %420, %421 : vector<16x128xf32>
    %423 = math.tanh %422 : vector<16x128xf32>
    %424 = arith.mulf %419, %423 : vector<16x128xf32>
    %c8_i32 = arith.constant 8 : i32
    %c0_169 = arith.constant 0 : index
    %c0_170 = arith.constant 0 : index
    %425 = vector.load %arg16[%c0_169, %c0_170] : memref<16x128xf32, #tpu.memory_space<vmem>>, vector<16x128xf32>
    tpu.vector_store %arg16[%c0_169, %c0_170], %424 {strides = array<i32>} : memref<16x128xf32, #tpu.memory_space<vmem>>, vector<16x128xf32>,
    %c0_171 = arith.constant 0 : index
    %c0_172 = arith.constant 0 : index
    %426 = vector.load %arg17[%c0_171, %c0_172] : memref<16x128xf32, #tpu.memory_space<vmem>>, vector<16x128xf32>
    tpu.vector_store %arg17[%c0_171, %c0_172], %422 {strides = array<i32>} : memref<16x128xf32, #tpu.memory_space<vmem>>, vector<16x128xf32>,
    %c0_i32_173 = arith.constant 0 : i32
    %427 = arith.cmpi eq, %arg1, %c0_i32_173 : i32
    %428 = arith.extui %427 : i1 to i32
    %c0_i32_174 = arith.constant 0 : i32
    %429 = arith.cmpi ne, %428, %c0_i32_174 : i32
    scf.if %429 {
      %430 = arith.truncf %424 : vector<16x128xf32> to vector<16x128xbf16>
      %c0_175 = arith.constant 0 : index
      %c0_176 = arith.constant 0 : index
      %431 = vector.load %arg6[%c0_175, %c0_176] : memref<128x128xbf16, #tpu.memory_space<vmem>>, vector<128x128xbf16>
      %cst_177 = arith.constant dense<0.000000e+00> : vector<16x128xf32>
      %432 = tpu.matmul %430, %431, %cst_177 {dimension_numbers = #tpu.dot_dimension_numbers<[1], [0], [0], [1], [0, 0, 1, 1], [], []>} : vector<16x128xbf16>, vector<128x128xbf16>, vector<16x128xf32> -> vector<16x128xf32>
      %c0_178 = arith.constant 0 : index
      %c0_179 = arith.constant 0 : index
      %433 = vector.load %arg7[%c0_178, %c0_179] : memref<1x128xf32, #tpu.memory_space<vmem>>, vector<1x128xf32>
      %434 = vector.broadcast %433 : vector<1x128xf32> to vector<16x128xf32>
      %435 = arith.addf %432, %434 : vector<16x128xf32>
      %cst_180 = arith.constant 0.000000e+00 : f32
      %436 = vector.broadcast %cst_180 : f32 to vector<16x128xf32>
      %437 = arith.maximumf %435, %436 : vector<16x128xf32>
      %438 = arith.truncf %437 : vector<16x128xf32> to vector<16x128xbf16>
      %c0_181 = arith.constant 0 : index
      %c0_182 = arith.constant 0 : index
      %439 = vector.load %arg8[%c0_181, %c0_182] : memref<128x128xbf16, #tpu.memory_space<vmem>>, vector<128x128xbf16>
      %cst_183 = arith.constant dense<0.000000e+00> : vector<16x128xf32>
      %440 = tpu.matmul %438, %439, %cst_183 {dimension_numbers = #tpu.dot_dimension_numbers<[1], [0], [0], [1], [0, 0, 1, 1], [], []>} : vector<16x128xbf16>, vector<128x128xbf16>, vector<16x128xf32> -> vector<16x128xf32>
      %c0_184 = arith.constant 0 : index
      %c0_185 = arith.constant 0 : index
      %441 = vector.load %arg9[%c0_184, %c0_185] : memref<1x128xf32, #tpu.memory_space<vmem>>, vector<1x128xf32>
      %442 = vector.broadcast %441 : vector<1x128xf32> to vector<16x128xf32>
      %443 = arith.addf %440, %442 : vector<16x128xf32>
      %444 = tpu.iota {dimensions = array<i32: 1>} : vector<16x128xi32>
      %c32_i32 = arith.constant 32 : i32
      %445 = vector.broadcast %c32_i32 : i32 to vector<16x128xi32>
      %446 = arith.cmpi slt, %444, %445 : vector<16x128xi32>
      %447 = arith.extui %446 : vector<16x128xi1> to vector<16x128xi32>
      %448 = arith.sitofp %447 : vector<16x128xi32> to vector<16x128xf32>
      %449 = arith.addf %424, %443 : vector<16x128xf32>
      %450 = arith.mulf %449, %448 : vector<16x128xf32>
      %cst_186 = arith.constant dense<0.000000e+00> : vector<16xf32>
      %451 = vector.multi_reduction <add>, %450, %cst_186 [1] : vector<16x128xf32> to vector<16xf32>
      %452 = vector.shape_cast %451 : vector<16xf32> to vector<16x1xf32>
      %cst_187 = arith.constant 3.125000e-02 : f32
      %453 = vector.broadcast %cst_187 : f32 to vector<16x1xf32>
      %454 = arith.mulf %452, %453 : vector<16x1xf32>
      %455 = vector.broadcast %454 : vector<16x1xf32> to vector<16x128xf32>
      %456 = arith.subf %450, %455 : vector<16x128xf32>
      %457 = arith.mulf %456, %448 : vector<16x128xf32>
      %458 = arith.mulf %457, %457 : vector<16x128xf32>
      %cst_188 = arith.constant dense<0.000000e+00> : vector<16xf32>
      %459 = vector.multi_reduction <add>, %458, %cst_188 [1] : vector<16x128xf32> to vector<16xf32>
      %460 = vector.shape_cast %459 : vector<16xf32> to vector<16x1xf32>
      %cst_189 = arith.constant 3.125000e-02 : f32
      %461 = vector.broadcast %cst_189 : f32 to vector<16x1xf32>
      %462 = arith.mulf %460, %461 : vector<16x1xf32>
      %cst_190 = arith.constant 9.99999996E-13 : f32
      %463 = vector.broadcast %cst_190 : f32 to vector<16x1xf32>
      %464 = arith.addf %462, %463 : vector<16x1xf32>
      %465 = math.rsqrt %464 : vector<16x1xf32>
      %466 = vector.broadcast %465 : vector<16x1xf32> to vector<16x128xf32>
      %467 = arith.mulf %457, %466 : vector<16x128xf32>
      %c0_191 = arith.constant 0 : index
      %c0_192 = arith.constant 0 : index
      %468 = vector.load %arg10[%c0_191, %c0_192] : memref<1x128xf32, #tpu.memory_space<vmem>>, vector<1x128xf32>
      %469 = vector.broadcast %468 : vector<1x128xf32> to vector<16x128xf32>
      %470 = arith.mulf %467, %469 : vector<16x128xf32>
      %c0_193 = arith.constant 0 : index
      %c0_194 = arith.constant 0 : index
      %471 = vector.load %arg11[%c0_193, %c0_194] : memref<1x128xf32, #tpu.memory_space<vmem>>, vector<1x128xf32>
      %472 = vector.broadcast %471 : vector<1x128xf32> to vector<16x128xf32>
      %473 = arith.addf %470, %472 : vector<16x128xf32>
      %474 = arith.truncf %473 : vector<16x128xf32> to vector<16x128xbf16>
      %c0_195 = arith.constant 0 : index
      %c0_196 = arith.constant 0 : index
      %475 = vector.load %arg12[%c0_195, %c0_196] : memref<128x128xbf16, #tpu.memory_space<vmem>>, vector<128x128xbf16>
      %cst_197 = arith.constant dense<0.000000e+00> : vector<16x128xf32>
      %476 = tpu.matmul %474, %475, %cst_197 {dimension_numbers = #tpu.dot_dimension_numbers<[1], [0], [0], [1], [0, 0, 1, 1], [], []>} : vector<16x128xbf16>, vector<128x128xbf16>, vector<16x128xf32> -> vector<16x128xf32>
      %c0_198 = arith.constant 0 : index
      %c0_199 = arith.constant 0 : index
      %477 = vector.load %arg13[%c0_198, %c0_199] : memref<1x128xf32, #tpu.memory_space<vmem>>, vector<1x128xf32>
      %478 = vector.broadcast %477 : vector<1x128xf32> to vector<16x128xf32>
      %479 = arith.addf %476, %478 : vector<16x128xf32>
      %c0_200 = arith.constant 0 : index
      %c0_201 = arith.constant 0 : index
      %480 = vector.load %arg14[%c0_200, %c0_201] : memref<16x128xf32, #tpu.memory_space<vmem>>, vector<16x128xf32>
      tpu.vector_store %arg14[%c0_200, %c0_201], %479 {strides = array<i32>} : memref<16x128xf32, #tpu.memory_space<vmem>>, vector<16x128xf32>,
    } else {
    }
    return
  }
  func.func @transform_0(%arg0: i32, %arg1: i32) -> (i32, i32, i32) {
    %c0_i32 = arith.constant 0 : i32
    %c0_i32_0 = arith.constant 0 : i32
    return %arg1, %arg0, %c0_i32 : i32, i32, i32
  }
  func.func @transform_1(%arg0: i32, %arg1: i32) -> (i32, i32) {
    %c0_i32 = arith.constant 0 : i32
    %c0_i32_0 = arith.constant 0 : i32
    %c0_i32_1 = arith.constant 0 : i32
    return %c0_i32, %c0_i32_0 : i32, i32
  }
  func.func @transform_2(%arg0: i32, %arg1: i32) -> (i32, i32) {
    %c0_i32 = arith.constant 0 : i32
    %c0_i32_0 = arith.constant 0 : i32
    %c0_i32_1 = arith.constant 0 : i32
    return %c0_i32, %c0_i32_0 : i32, i32
  }
  func.func @transform_3(%arg0: i32, %arg1: i32) -> (i32, i32) {
    %c0_i32 = arith.constant 0 : i32
    %c0_i32_0 = arith.constant 0 : i32
    %c0_i32_1 = arith.constant 0 : i32
    return %c0_i32, %c0_i32_0 : i32, i32
  }
  func.func @transform_4(%arg0: i32, %arg1: i32) -> (i32, i32) {
    %c0_i32 = arith.constant 0 : i32
    %c0_i32_0 = arith.constant 0 : i32
    %c0_i32_1 = arith.constant 0 : i32
    return %c0_i32, %c0_i32_0 : i32, i32
  }
  func.func @transform_5(%arg0: i32, %arg1: i32) -> (i32, i32) {
    %c0_i32 = arith.constant 0 : i32
    %c0_i32_0 = arith.constant 0 : i32
    %c0_i32_1 = arith.constant 0 : i32
    return %c0_i32, %c0_i32_0 : i32, i32
  }
  func.func @transform_6(%arg0: i32, %arg1: i32) -> (i32, i32) {
    %c0_i32 = arith.constant 0 : i32
    %c0_i32_0 = arith.constant 0 : i32
    %c0_i32_1 = arith.constant 0 : i32
    return %c0_i32, %c0_i32_0 : i32, i32
  }
  func.func @transform_7(%arg0: i32, %arg1: i32) -> (i32, i32) {
    %c0_i32 = arith.constant 0 : i32
    %c0_i32_0 = arith.constant 0 : i32
    %c0_i32_1 = arith.constant 0 : i32
    return %c0_i32, %c0_i32_0 : i32, i32
  }
  func.func @transform_8(%arg0: i32, %arg1: i32) -> (i32, i32) {
    %c0_i32 = arith.constant 0 : i32
    %c0_i32_0 = arith.constant 0 : i32
    %c0_i32_1 = arith.constant 0 : i32
    return %c0_i32, %c0_i32_0 : i32, i32
  }
  func.func @transform_9(%arg0: i32, %arg1: i32) -> (i32, i32) {
    %c0_i32 = arith.constant 0 : i32
    %c0_i32_0 = arith.constant 0 : i32
    %c0_i32_1 = arith.constant 0 : i32
    return %c0_i32, %c0_i32_0 : i32, i32
  }
  func.func @transform_10(%arg0: i32, %arg1: i32) -> (i32, i32) {
    %c0_i32 = arith.constant 0 : i32
    %c0_i32_0 = arith.constant 0 : i32
    %c0_i32_1 = arith.constant 0 : i32
    return %c0_i32, %c0_i32_0 : i32, i32
  }
  func.func @transform_11(%arg0: i32, %arg1: i32) -> (i32, i32) {
    %c0_i32 = arith.constant 0 : i32
    %c0_i32_0 = arith.constant 0 : i32
    %c0_i32_1 = arith.constant 0 : i32
    return %c0_i32, %c0_i32_0 : i32, i32
  }
  func.func @transform_12(%arg0: i32, %arg1: i32) -> (i32, i32) {
    %c0_i32 = arith.constant 0 : i32
    %c0_i32_0 = arith.constant 0 : i32
    return %arg0, %c0_i32 : i32, i32
  }
}

</mosaic_0001>

<bundles_post_ra>
// kernel: lstm_classifier_forward.1
= control target key start
LH: loop header
LB: loop body
LE: loop exit
PB: predicated region body
PF: predicated region fallthrough
CT: control target
= control target key end

     0   :  { %17 = vsyncpa [#allocation6], 0  ;;  %s4257_s0 = inlined_call_operand.vmem [shape: bf16[8,16,128], index: 0, kind: input, shape index: {}]   ;;  %s4258_s1 = inlined_call_operand.hbm [shape: bf16[128,512], index: 1, kind: input, shape index: {}]   ;;  %s4259_s2 = inlined_call_operand.hbm [shape: bf16[128,512], index: 2, kind: input, shape index: {}]   ;;  %s4260_s3 = inlined_call_operand.vmem [shape: f32[1,512], index: 3, kind: input, shape index: {}]   ;;  %s4261_s4 = inlined_call_operand.vmem [shape: bf16[128,128], index: 4, kind: input, shape index: {}]   ;;  %s4262_s5 = inlined_call_operand.vmem [shape: f32[1,128], index: 5, kind: input, shape index: {}]   ;;  %s4263_s6 = inlined_call_operand.vmem [shape: bf16[128,128], index: 6, kind: input, shape index: {}]   ;;  %s4264_s7 = inlined_call_operand.vmem [shape: f32[1,128], index: 7, kind: input, shape index: {}]   ;;  %s4265_s8 = inlined_call_operand.vmem [shape: f32[1,128], index: 8, kind: input, shape index: {}]   ;;  %s4266_s9 = inlined_call_operand.vmem [shape: f32[1,128], index: 9, kind: input, shape index: {}]   ;;  %s4267_s10 = inlined_call_operand.hbm [shape: bf16[128,128], index: 10, kind: input, shape index: {}]   ;;  %s4268_s11 = inlined_call_operand.vmem [shape: f32[1,128], index: 11, kind: input, shape index: {}]   ;;  %s4269_s12 = inlined_call_operand.vmem [shape: f32[16,128], index: 12, kind: output, shape index: {}]  }
   0x1   :  { %18 = vsyncpa [#allocation8], 0  ;;  %s38_s23 = sshll.u32 %s4259_s2, 4  ;;  %s3145_s24 = smov [#allocation7]   ;;  %s39_s23 = int_to_ptr.hbm [resolvable:$true] %s38_s23 }
   0x2   :  { %s40_s25 = sshll.u32 %s3145_s24, 4  ;;  %s25_s28 = sshll.u32 %s4258_s1, 4  ;;  %s41_s25 = int_to_ptr.vmem [resolvable:$true] %s40_s25  ;;  %s26_s28 = int_to_ptr.hbm [resolvable:$true] %s25_s28 }
   0x3   :  { %s3146_s29 = smov 256   ;;  %s3147_s30 = smov 16  }
   0x4   :  { %46 = dma.hbm_to_vmem [thread:$0]  %s39_s23, 4096, %s41_s25, [#allocation8], %s3146_s29, %s3146_s29, %s3147_s30  }
   0x5   :  { %s3148_s13 = smov [#allocation5]   ;;  %s65_s17 = sshll.u32 %s4267_s10, 4  ;;  %s66_s17 = int_to_ptr.hbm [resolvable:$true] %s65_s17 }
   0x6   :  { %s27_s14 = sshll.u32 %s3148_s13, 4  ;;  %s3149_s2 = smov [#allocation9]   ;;  %s28_s14 = int_to_ptr.vmem [resolvable:$true] %s27_s14 }
   0x7   :  { %33 = dma.hbm_to_vmem [thread:$0]  %s26_s28, 4096, %s28_s14, [#allocation6], %s3146_s29, %s3146_s29, %s3147_s30  }
   0x8   :  { %s67_s18 = sshll.u32 %s3149_s2, 4  ;;  %s3150_s19 = smov 64   ;;  %s68_s18 = int_to_ptr.vmem [resolvable:$true] %s67_s18 }
   0x9   :  { %s3151_s20 = smov 4  }
   0xa   :  { %73 = dma.hbm_to_vmem [thread:$0]  %s66_s17, 1024, %s68_s18, [#allocation8], %s3150_s19, %s3150_s19, %s3151_s20  }
   0xb   :  { %3141 = dma.done.wait [#allocation6], 4096  }
   0xc   :  { %3142 = vsyncadd [#allocation6], 4294963200 }
   0xd   :  { %3143 = dma.done.wait [#allocation8], 5120  }
   0xe   :  { %3144 = vsyncadd [#allocation8], 4294962176  ;;  %v2507_v0 = vld [vmem:[#allocation5 + $0xe0] sm:$0xf]  ;;  %v2824_v1 = vld [vmem:[#allocation5 + $0xec] sm:$0xf0] }
   0xf   :  { %v2822_v2 = vld [vmem:[#allocation5 + $0xe4] sm:$0xf]  ;;  %v3228_v3 = vor.u32 %v2824_v1, %v2507_v0  ;;  %v2509_v4 = vld [vmem:[#allocation5 + $0xf0] sm:$0xf0]  ;;  %v2515_v5 = vld [vmem:[#allocation5 + $0xe8] sm:$0xf] }
  0x10   :  { %v2825_v6 = vld [vmem:[#allocation5 + $0xf4] sm:$0xf0]  ;;  %v3230_v7 = vor.u32 %v2822_v2, %v2509_v4  ;;  %v2823_v9 = vld [vmem:[#allocation5 + $0xec] sm:$0xf]  ;;  %v2517_v10 = vld [vmem:[#allocation5 + $0xf8] sm:$0xf0] }
  0x11   :  { %v3232_v8 = vor.u32 %v2825_v6, %v2515_v5  ;;  %v2491_v11 = vld [vmem:[#allocation5 + $0xc0] sm:$0xf]  ;;  %338 = vmatpush.bf16.msra.mxu0 %v3228_v3  ;;  %v3235_v12 = vor.u32 %v2823_v9, %v2517_v10  ;;  %v2820_v13 = vld [vmem:[#allocation5 + $0xcc] sm:$0xf0]  ;;  %v2818_v14 = vld [vmem:[#allocation5 + $0xc4] sm:$0xf] }
  0x12   :  { %v2493_v15 = vld [vmem:[#allocation5 + $0xd0] sm:$0xf0]  ;;  %352 = vmatpush.bf16.msra.mxu1 %v3230_v7  ;;  %v3239_v16 = vor.u32 %v2820_v13, %v2491_v11  ;;  %v2499_v18 = vld [vmem:[#allocation5 + $0xc8] sm:$0xf]  ;;  %v2821_v19 = vld [vmem:[#allocation5 + $0xd4] sm:$0xf0] }
  0x13   :  { %4387 = vst [vmem:[#allocation12_spill] sm:$0xff] %v3235_v12  ;;  %366 = vmatpush.bf16.msra.mxu2 %v3232_v8  ;;  %v3241_v17 = vor.u32 %v2818_v14, %v2493_v15  ;;  %v2819_v20 = vld [vmem:[#allocation5 + $0xcc] sm:$0xf]  ;;  %380 = vmatpush.bf16.msra.mxu3 %v3235_v12  ;;  %v3244_v21 = vor.u32 %v2821_v19, %v2499_v18  ;;  %v2501_v22 = vld [vmem:[#allocation5 + $0xd8] sm:$0xf0] }
  0x14   :  { %4388 = vst [vmem:[#allocation13_spill] sm:$0xff] %v3239_v16  ;;  %v2475_v23 = vld [vmem:[#allocation5 + $0xa0] sm:$0xf]  ;;  %v2816_v24 = vld [vmem:[#allocation5 + $0xac] sm:$0xf0]  ;;  %v3246_v25 = vor.u32 %v2819_v20, %v2501_v22 }
  0x15   :  { %4389 = vst [vmem:[#allocation14_spill] sm:$0xff] %v3241_v17  ;;  %v2814_v26 = vld [vmem:[#allocation5 + $0xa4] sm:$0xf]  ;;  %v2477_v27 = vld [vmem:[#allocation5 + $0xb0] sm:$0xf0]  ;;  %339 = vmatpush.bf16.msra.mxu0 %v3239_v16  ;;  %v3249_v29 = vor.u32 %v2816_v24, %v2475_v23 }
  0x16   :  { %4390 = vst [vmem:[#allocation15_spill] sm:$0xff] %v3244_v21  ;;  %v2483_v28 = vld [vmem:[#allocation5 + $0xa8] sm:$0xf]  ;;  %v2817_v30 = vld [vmem:[#allocation5 + $0xb4] sm:$0xf0]  ;;  %353 = vmatpush.bf16.msra.mxu1 %v3241_v17  ;;  %v3253_v33 = vor.u32 %v2814_v26, %v2477_v27 }
  0x17   :  { %4391 = vst [vmem:[#allocation16_spill] sm:$0xff] %v3246_v25  ;;  %v2815_v31 = vld [vmem:[#allocation5 + $0xac] sm:$0xf]  ;;  %v2485_v32 = vld [vmem:[#allocation5 + $0xb8] sm:$0xf0]  ;;  %367 = vmatpush.bf16.msra.mxu2 %v3244_v21  ;;  %v3255_v34 = vor.u32 %v2817_v30, %v2483_v28  ;;  %381 = vmatpush.bf16.msra.mxu3 %v3246_v25 }
  0x18   :  { %4392 = vst [vmem:[#allocation17_spill] sm:$0xff] %v3249_v29  ;;  %v2459_v35 = vld [vmem:[#allocation5 + $0x80] sm:$0xf]  ;;  %v2812_v36 = vld [vmem:[#allocation5 + $0x8c] sm:$0xf0]  ;;  %v3258_v38 = vor.u32 %v2815_v31, %v2485_v32 }
  0x19   :  { %4393 = vst [vmem:[#allocation18_spill] sm:$0xff] %v3253_v33  ;;  %v2810_v37 = vld [vmem:[#allocation5 + $0x84] sm:$0xf]  ;;  %v2461_v39 = vld [vmem:[#allocation5 + $0x90] sm:$0xf0]  ;;  %340 = vmatpush.bf16.msra.mxu0 %v3249_v29  ;;  %v3261_v44 = vor.u32 %v2812_v36, %v2459_v35 }
  0x1a   :  { %4394 = vst [vmem:[#allocation19_spill] sm:$0xff] %v3255_v34  ;;  %v2467_v40 = vld [vmem:[#allocation5 + $0x88] sm:$0xf]  ;;  %v2813_v41 = vld [vmem:[#allocation5 + $0x94] sm:$0xf0]  ;;  %354 = vmatpush.bf16.msra.mxu1 %v3253_v33  ;;  %v3265_v45 = vor.u32 %v2810_v37, %v2461_v39 }
  0x1b   :  { %4395 = vst [vmem:[#allocation20_spill] sm:$0xff] %v3258_v38  ;;  %v2811_v42 = vld [vmem:[#allocation5 + $0x8c] sm:$0xf]  ;;  %v2469_v43 = vld [vmem:[#allocation5 + $0x98] sm:$0xf0]  ;;  %368 = vmatpush.bf16.msra.mxu2 %v3255_v34  ;;  %v3267_v46 = vor.u32 %v2813_v41, %v2467_v40  ;;  %382 = vmatpush.bf16.msra.mxu3 %v3258_v38 }
  0x1c   :  { %4396 = vst [vmem:[#allocation21_spill] sm:$0xff] %v3261_v44  ;;  %v2443_v47 = vld [vmem:[#allocation5 + $0x60] sm:$0xf]  ;;  %v2808_v48 = vld [vmem:[#allocation5 + $0x6c] sm:$0xf0]  ;;  %v3270_v50 = vor.u32 %v2811_v42, %v2469_v43 }
  0x1d   :  { %4397 = vst [vmem:[#allocation22_spill] sm:$0xff] %v3265_v45  ;;  %v2806_v49 = vld [vmem:[#allocation5 + $0x64] sm:$0xf]  ;;  %v2445_v51 = vld [vmem:[#allocation5 + $0x70] sm:$0xf0]  ;;  %341 = vmatpush.bf16.msra.mxu0 %v3261_v44  ;;  %v3273_v56 = vor.u32 %v2808_v48, %v2443_v47 }
  0x1e   :  { %4398 = vst [vmem:[#allocation23_spill] sm:$0xff] %v3267_v46  ;;  %v2451_v52 = vld [vmem:[#allocation5 + $0x68] sm:$0xf]  ;;  %v2809_v53 = vld [vmem:[#allocation5 + $0x74] sm:$0xf0]  ;;  %355 = vmatpush.bf16.msra.mxu1 %v3265_v45  ;;  %v3277_v57 = vor.u32 %v2806_v49, %v2445_v51  ;;  %v2858_v47 = vld [vmem:[%s4257_s0] sm:$0xff] }
  0x1f   :  { %4399 = vst [vmem:[#allocation24_spill] sm:$0xff] %v3270_v50  ;;  %v2807_v54 = vld [vmem:[#allocation5 + $0x6c] sm:$0xf]  ;;  %v2453_v55 = vld [vmem:[#allocation5 + $0x78] sm:$0xf0]  ;;  %369 = vmatpush.bf16.msra.mxu2 %v3267_v46  ;;  %v3279_v58 = vor.u32 %v2809_v53, %v2451_v52  ;;  %383 = vmatpush.bf16.msra.mxu3 %v3270_v50 }
  0x20   :  { %4400 = vst [vmem:[#allocation25_spill] sm:$0xff] %v3273_v56  ;;  %v2427_v59 = vld [vmem:[#allocation5 + $0x40] sm:$0xf]  ;;  %v2804_v60 = vld [vmem:[#allocation5 + $0x4c] sm:$0xf0]  ;;  %v3282_v62 = vor.u32 %v2807_v54, %v2453_v55 }
  0x21   :  { %4401 = vst [vmem:[#allocation26_spill] sm:$0xff] %v3277_v57  ;;  %v2802_v61 = vld [vmem:[#allocation5 + $0x44] sm:$0xf]  ;;  %v2429_v63 = vld [vmem:[#allocation5 + $0x50] sm:$0xf0]  ;;  %342 = vmatpush.bf16.msra.mxu0 %v3273_v56  ;;  %v3285_v5 = vor.u32 %v2804_v60, %v2427_v59 }
  0x22   :  { %4402 = vst [vmem:[#allocation27_spill] sm:$0xff] %v3279_v58  ;;  %v2435_v0 = vld [vmem:[#allocation5 + $0x48] sm:$0xf]  ;;  %v2805_v1 = vld [vmem:[#allocation5 + $0x54] sm:$0xf0]  ;;  %356 = vmatpush.bf16.msra.mxu1 %v3277_v57  ;;  %v3289_v11 = vor.u32 %v2802_v61, %v2429_v63 }
  0x23   :  { %4403 = vst [vmem:[#allocation28_spill] sm:$0xff] %v3282_v62  ;;  %v2803_v2 = vld [vmem:[#allocation5 + $0x4c] sm:$0xf]  ;;  %v2437_v4 = vld [vmem:[#allocation5 + $0x58] sm:$0xf0]  ;;  %370 = vmatpush.bf16.msra.mxu2 %v3279_v58  ;;  %v3291_v13 = vor.u32 %v2805_v1, %v2435_v0  ;;  %384 = vmatpush.bf16.msra.mxu3 %v3282_v62 }
  0x24   :  { %4404 = vst [vmem:[#allocation29_spill] sm:$0xff] %v3285_v5  ;;  %v2411_v6 = vld [vmem:[#allocation5 + $0x20] sm:$0xf]  ;;  %v2800_v9 = vld [vmem:[#allocation5 + $0x2c] sm:$0xf0]  ;;  %v3294_v19 = vor.u32 %v2803_v2, %v2437_v4 }
  0x25   :  { %v2798_v10 = vld [vmem:[#allocation5 + $0x24] sm:$0xf]  ;;  %4405 = vst [vmem:[#allocation30_spill] sm:$0xff] %v3289_v11  ;;  %v2413_v14 = vld [vmem:[#allocation5 + $0x30] sm:$0xf0]  ;;  %343 = vmatpush.bf16.msra.mxu0 %v3285_v5  ;;  %v3297_v23 = vor.u32 %v2800_v9, %v2411_v6 }
  0x26   :  { %4406 = vst [vmem:[#allocation31_spill] sm:$0xff] %v3291_v13  ;;  %v2419_v15 = vld [vmem:[#allocation5 + $0x28] sm:$0xf]  ;;  %v2801_v18 = vld [vmem:[#allocation5 + $0x34] sm:$0xf0]  ;;  %357 = vmatpush.bf16.msra.mxu1 %v3289_v11  ;;  %v3301_v24 = vor.u32 %v2798_v10, %v2413_v14 }
  0x27   :  { %4407 = vst [vmem:[#allocation32_spill] sm:$0xff] %v3294_v19  ;;  %v2799_v20 = vld [vmem:[#allocation5 + $0x2c] sm:$0xf]  ;;  %v2421_v22 = vld [vmem:[#allocation5 + $0x38] sm:$0xf0]  ;;  %371 = vmatpush.bf16.msra.mxu2 %v3291_v13  ;;  %v3303_v26 = vor.u32 %v2801_v18, %v2419_v15  ;;  %385 = vmatpush.bf16.msra.mxu3 %v3294_v19 }
  0x28   :  { %4408 = vst [vmem:[#allocation33_spill] sm:$0xff] %v3297_v23  ;;  %v2395_v27 = vld [vmem:[#allocation5] sm:$0xf]  ;;  %v2796_v28 = vld [vmem:[#allocation5 + $0xc] sm:$0xf0]  ;;  %v3306_v31 = vor.u32 %v2799_v20, %v2421_v22  ;;  %v2859_v14 = vld [vmem:[%s4257_s0 + $0x8] sm:$0xff] }
  0x29   :  { %4409 = vst [vmem:[#allocation34_spill] sm:$0xff] %v3301_v24  ;;  %v2794_v30 = vld [vmem:[#allocation5 + $0x4] sm:$0xf]  ;;  %v2397_v32 = vld [vmem:[#allocation5 + $0x10] sm:$0xf0]  ;;  %344 = vmatpush.bf16.msra.mxu0 %v3297_v23  ;;  %v3309_v40 = vor.u32 %v2796_v28, %v2395_v27 }
  0x2a   :  { %4410 = vst [vmem:[#allocation35_spill] sm:$0xff] %v3303_v26  ;;  %v2403_v35 = vld [vmem:[#allocation5 + $0x8] sm:$0xf]  ;;  %v2797_v36 = vld [vmem:[#allocation5 + $0x14] sm:$0xf0]  ;;  %358 = vmatpush.bf16.msra.mxu1 %v3301_v24  ;;  %v3313_v41 = vor.u32 %v2794_v30, %v2397_v32 }
  0x2b   :  { %4411 = vst [vmem:[#allocation36_spill] sm:$0xff] %v3306_v31  ;;  %v2795_v37 = vld [vmem:[#allocation5 + $0xc] sm:$0xf]  ;;  %v2405_v39 = vld [vmem:[#allocation5 + $0x18] sm:$0xf0]  ;;  %372 = vmatpush.bf16.msra.mxu2 %v3303_v26  ;;  %v3315_v42 = vor.u32 %v2797_v36, %v2403_v35  ;;  %386 = vmatpush.bf16.msra.mxu3 %v3306_v31 }
  0x2c   :  { %4412 = vst [vmem:[#allocation37_spill] sm:$0xff] %v3309_v40  ;;  %v3318_v43 = vor.u32 %v2795_v37, %v2405_v39  ;;  %v2641_v48 = vld [vmem:[#allocation7 + $0xe0] sm:$0xf]  ;;  %v2856_v49 = vld [vmem:[#allocation7 + $0xec] sm:$0xf0] }
  0x2d   :  { %4413 = vst [vmem:[#allocation38_spill] sm:$0xff] %v3313_v41  ;;  %345 = vmatpush.bf16.msra.mxu0 %v3309_v40  ;;  %v2854_v51 = vld [vmem:[#allocation7 + $0xe4] sm:$0xf]  ;;  %v2643_v52 = vld [vmem:[#allocation7 + $0xf0] sm:$0xf0]  ;;  %v3355_v60 = vor.u32 %v2856_v49, %v2641_v48 }
  0x2e   :  { %4414 = vst [vmem:[#allocation39_spill] sm:$0xff] %v3315_v42  ;;  %359 = vmatpush.bf16.msra.mxu1 %v3313_v41  ;;  %v2649_v53 = vld [vmem:[#allocation7 + $0xe8] sm:$0xf]  ;;  %v2857_v54 = vld [vmem:[#allocation7 + $0xf4] sm:$0xf0]  ;;  %v3357_v63 = vor.u32 %v2854_v51, %v2643_v52 }
  0x2f   :  { %4415 = vst [vmem:[#allocation40_spill] sm:$0xff] %v3318_v43  ;;  %373 = vmatpush.bf16.msra.mxu2 %v3315_v42  ;;  %387 = vmatpush.bf16.msra.mxu3 %v3318_v43  ;;  %v2855_v55 = vld [vmem:[#allocation7 + $0xec] sm:$0xf]  ;;  %v2651_v59 = vld [vmem:[#allocation7 + $0xf8] sm:$0xf0]  ;;  %v3359_v0 = vor.u32 %v2857_v54, %v2649_v53 }
  0x30   :  { %346 = vmatmul.bf16.vlgmr.msra.gmra.mxu0 %v2858_v47  ;;  %v2625_v61 = vld [vmem:[#allocation7 + $0xc0] sm:$0xf]  ;;  %v2852_v1 = vld [vmem:[#allocation7 + $0xcc] sm:$0xf0]  ;;  %v2850_v2 = vld [vmem:[#allocation7 + $0xc4] sm:$0xf]  ;;  %v3362_v6 = vor.u32 %v2855_v55, %v2651_v59 }
  0x31   :  { %419 = vmatpush.bf16.msrb.mxu0 %v3228_v3  ;;  %360 = vmatmul.bf16.vlgmr.msra.gmra.mxu1 %v2858_v47  ;;  %v2627_v4 = vld [vmem:[#allocation7 + $0xd0] sm:$0xf0]  ;;  %v2633_v9 = vld [vmem:[#allocation7 + $0xc8] sm:$0xf]  ;;  %v2853_v10 = vld [vmem:[#allocation7 + $0xd4] sm:$0xf0]  ;;  %v3371_v20 = vor.u32 %v2852_v1, %v2625_v61 }
  0x32   :  { %433 = vmatpush.bf16.msrb.mxu1 %v3230_v7  ;;  %374 = vmatmul.bf16.vlgmr.msra.gmra.mxu2 %v2858_v47  ;;  %v2851_v15 = vld [vmem:[#allocation7 + $0xcc] sm:$0xf]  ;;  %v2635_v18 = vld [vmem:[#allocation7 + $0xd8] sm:$0xf0]  ;;  %v3375_v22 = vor.u32 %v2850_v2, %v2627_v4  ;;  %v3377_v27 = vor.u32 %v2853_v10, %v2633_v9  ;;  %v2609_v28 = vld [vmem:[#allocation7 + $0xa0] sm:$0xf] }
  0x33   :  { %447 = vmatpush.bf16.msrb.mxu2 %v3232_v8  ;;  %461 = vmatpush.bf16.msrb.mxu3 %v3235_v12  ;;  %v2848_v30 = vld [vmem:[#allocation7 + $0xac] sm:$0xf0]  ;;  %v2846_v32 = vld [vmem:[#allocation7 + $0xa4] sm:$0xf]  ;;  %v3380_v35 = vor.u32 %v2851_v15, %v2635_v18  ;;  %v2611_v36 = vld [vmem:[#allocation7 + $0xb0] sm:$0xf0] }
  0x34   :  { %388 = vmatmul.bf16.vlgmr.msra.gmra.mxu3 %v2858_v47  ;;  %v2617_v37 = vld [vmem:[#allocation7 + $0xa8] sm:$0xf]  ;;  %v2849_v39 = vld [vmem:[#allocation7 + $0xb4] sm:$0xf0]  ;;  %v2847_v47 = vld [vmem:[#allocation7 + $0xac] sm:$0xf]  ;;  %v3383_v49 = vor.u32 %v2848_v30, %v2609_v28  ;;  %v3387_v51 = vor.u32 %v2846_v32, %v2611_v36 }
  0x35   :  { %420 = vmatpush.bf16.msrb.mxu0 %v3239_v16  ;;  %v2619_v48 = vld [vmem:[#allocation7 + $0xb8] sm:$0xf0]  ;;  %v3389_v52 = vor.u32 %v2849_v39, %v2617_v37  ;;  %v2593_v53 = vld [vmem:[#allocation7 + $0x80] sm:$0xf]  ;;  %v2844_v54 = vld [vmem:[#allocation7 + $0x8c] sm:$0xf0] }
  0x36   :  { %434 = vmatpush.bf16.msrb.mxu1 %v3241_v17  ;;  %4416 = vst [vmem:[#allocation41_spill] sm:$0xff] %v3387_v51  ;;  %v2842_v55 = vld [vmem:[#allocation7 + $0x84] sm:$0xf]  ;;  %v3392_v59 = vor.u32 %v2847_v47, %v2619_v48  ;;  %v2595_v61 = vld [vmem:[#allocation7 + $0x90] sm:$0xf0]  ;;  %v3395_v10 = vor.u32 %v2844_v54, %v2593_v53 }
  0x37   :  { %448 = vmatpush.bf16.msrb.mxu2 %v3244_v21  ;;  %462 = vmatpush.bf16.msrb.mxu3 %v3246_v25  ;;  %4417 = vst [vmem:[#allocation42_spill] sm:$0xff] %v3389_v52  ;;  %v2601_v1 = vld [vmem:[#allocation7 + $0x88] sm:$0xf]  ;;  %v2845_v2 = vld [vmem:[#allocation7 + $0x94] sm:$0xf0] }
  0x38   :  { %4418 = vst [vmem:[#allocation43_spill] sm:$0xff] %v3392_v59  ;;  %v2843_v4 = vld [vmem:[#allocation7 + $0x8c] sm:$0xf]  ;;  %v2603_v9 = vld [vmem:[#allocation7 + $0x98] sm:$0xf0]  ;;  %v3401_v15 = vor.u32 %v2845_v2, %v2601_v1 }
  0x39   :  { %421 = vmatpush.bf16.msrb.mxu0 %v3249_v29  ;;  %4419 = vst [vmem:[#allocation44_spill] sm:$0xff] %v3395_v10  ;;  %v2577_v18 = vld [vmem:[#allocation7 + $0x60] sm:$0xf]  ;;  %v2840_v28 = vld [vmem:[#allocation7 + $0x6c] sm:$0xf0]  ;;  %v3404_v32 = vor.u32 %v2843_v4, %v2603_v9 }
  0x3a   :  { %435 = vmatpush.bf16.msrb.mxu1 %v3253_v33  ;;  %4421 = vst [vmem:[#allocation46_spill] sm:$0xff] %v3401_v15  ;;  %v2838_v30 = vld [vmem:[#allocation7 + $0x64] sm:$0xf]  ;;  %v2579_v36 = vld [vmem:[#allocation7 + $0x70] sm:$0xf0]  ;;  %v3407_v53 = vor.u32 %v2840_v28, %v2577_v18 }
  0x3b   :  { %449 = vmatpush.bf16.msrb.mxu2 %v3255_v34  ;;  %463 = vmatpush.bf16.msrb.mxu3 %v3258_v38  ;;  %4422 = vst [vmem:[#allocation47_spill] sm:$0xff] %v3404_v32  ;;  %v2585_v37 = vld [vmem:[#allocation7 + $0x68] sm:$0xf]  ;;  %v2841_v39 = vld [vmem:[#allocation7 + $0x74] sm:$0xf0]  ;;  %v3411_v54 = vor.u32 %v2838_v30, %v2579_v36 }
  0x3c   :  { %v2839_v47 = vld [vmem:[#allocation7 + $0x6c] sm:$0xf]  ;;  %v2587_v48 = vld [vmem:[#allocation7 + $0x78] sm:$0xf0]  ;;  %4423 = vst [vmem:[#allocation48_spill] sm:$0xff] %v3407_v53 }
  0x3d   :  { %422 = vmatpush.bf16.msrb.mxu0 %v3261_v44  ;;  %4424 = vst [vmem:[#allocation49_spill] sm:$0xff] %v3411_v54  ;;  %v2836_v1 = vld [vmem:[#allocation7 + $0x4c] sm:$0xf0]  ;;  %v2834_v2 = vld [vmem:[#allocation7 + $0x44] sm:$0xf]  ;;  %v3416_v4 = vor.u32 %v2839_v47, %v2587_v48 }
  0x3e   :  { %436 = vmatpush.bf16.msrb.mxu1 %v3265_v45  ;;  %v2563_v9 = vld [vmem:[#allocation7 + $0x50] sm:$0xf0]  ;;  %v2835_v18 = vld [vmem:[#allocation7 + $0x4c] sm:$0xf]  ;;  %v2571_v28 = vld [vmem:[#allocation7 + $0x58] sm:$0xf0] }
  0x3f   :  { %450 = vmatpush.bf16.msrb.mxu2 %v3267_v46  ;;  %464 = vmatpush.bf16.msrb.mxu3 %v3270_v50  ;;  %4426 = vst [vmem:[#allocation51_spill] sm:$0xff] %v3416_v4  ;;  %v3423_v30 = vor.u32 %v2834_v2, %v2563_v9  ;;  %v2830_v47 = vld [vmem:[#allocation7 + $0x24] sm:$0xf]  ;;  %v3428_v48 = vor.u32 %v2835_v18, %v2571_v28  ;;  %v2529_v2 = vld [vmem:[#allocation7] sm:$0xf] }
  0x40   :  { %v2828_v9 = vld [vmem:[#allocation7 + $0xc] sm:$0xf0]  ;;  %v2826_v18 = vld [vmem:[#allocation7 + $0x4] sm:$0xf] }
  0x41   :  { %423 = vmatpush.bf16.msrb.mxu0 %v3273_v56  ;;  %4428 = vst [vmem:[#allocation53_spill] sm:$0xff] %v3423_v30 }
  0x42   :  { %437 = vmatpush.bf16.msrb.mxu1 %v3277_v57  ;;  %4430 = vst [vmem:[#allocation55_spill] sm:$0xff] %v3428_v48 }
  0x43   :  { %451 = vmatpush.bf16.msrb.mxu2 %v3279_v58  ;;  %465 = vmatpush.bf16.msrb.mxu3 %v3282_v62 }
  0x45   :  { %424 = vmatpush.bf16.msrb.mxu0 %v3285_v5 }
  0x46   :  { %438 = vmatpush.bf16.msrb.mxu1 %v3289_v11 }
  0x47   :  { %452 = vmatpush.bf16.msrb.mxu2 %v3291_v13  ;;  %466 = vmatpush.bf16.msrb.mxu3 %v3294_v19 }
  0x49   :  { %425 = vmatpush.bf16.msrb.mxu0 %v3297_v23 }
  0x4a   :  { %439 = vmatpush.bf16.msrb.mxu1 %v3301_v24 }
  0x4b   :  { %453 = vmatpush.bf16.msrb.mxu2 %v3303_v26  ;;  %467 = vmatpush.bf16.msrb.mxu3 %v3306_v31 }
  0x4d   :  { %426 = vmatpush.bf16.msrb.mxu0 %v3309_v40 }
  0x4e   :  { %440 = vmatpush.bf16.msrb.mxu1 %v3313_v41 }
  0x4f   :  { %454 = vmatpush.bf16.msrb.mxu2 %v3315_v42  ;;  %468 = vmatpush.bf16.msrb.mxu3 %v3318_v43 }
  0x50   :  { %427 = vmatmul.bf16.vlgmr.msrb.gmra.mxu0 %v2859_v14 }
  0x51   :  { %645 = vmatpush.bf16.msra.mxu0 %v3355_v60  ;;  %441 = vmatmul.bf16.vlgmr.msrb.gmra.mxu1 %v2859_v14 }
  0x52   :  { %659 = vmatpush.bf16.msra.mxu1 %v3357_v63  ;;  %455 = vmatmul.bf16.vlgmr.msrb.gmra.mxu2 %v2859_v14 }
  0x53   :  { %673 = vmatpush.bf16.msra.mxu2 %v3359_v0  ;;  %687 = vmatpush.bf16.msra.mxu3 %v3362_v6 }
  0x54   :  { %469 = vmatmul.bf16.vlgmr.msrb.gmra.mxu3 %v2859_v14  ;;  %v3399_v14 = vor.u32 %v2842_v55, %v2595_v61  ;;  %v3413_v55 = vor.u32 %v2841_v39, %v2585_v37  ;;  %v2561_v61 = vld [vmem:[#allocation7 + $0x40] sm:$0xf]  ;;  %v2832_v39 = vld [vmem:[#allocation7 + $0x2c] sm:$0xf0] }
  0x55   :  { %646 = vmatpush.bf16.msra.mxu0 %v3371_v20  ;;  %v2545_v37 = vld [vmem:[#allocation7 + $0x20] sm:$0xf] }
  0x56   :  { %660 = vmatpush.bf16.msra.mxu1 %v3375_v22  ;;  %4420 = vst [vmem:[#allocation45_spill] sm:$0xff] %v3399_v14 }
  0x57   :  { %674 = vmatpush.bf16.msra.mxu2 %v3377_v27  ;;  %688 = vmatpush.bf16.msra.mxu3 %v3380_v35  ;;  %4425 = vst [vmem:[#allocation50_spill] sm:$0xff] %v3413_v55 }
  0x59   :  { %647 = vmatpush.bf16.msra.mxu0 %v3383_v49 }
  0x5a   :  { %661 = vmatpush.bf16.msra.mxu1 %v3387_v51 }
  0x5b   :  { %675 = vmatpush.bf16.msra.mxu2 %v3389_v52  ;;  %689 = vmatpush.bf16.msra.mxu3 %v3392_v59  ;;  %v2569_v59 = vld [vmem:[#allocation7 + $0x48] sm:$0xf] }
  0x5d   :  { %648 = vmatpush.bf16.msra.mxu0 %v3395_v10  ;;  %v2837_v10 = vld [vmem:[#allocation7 + $0x54] sm:$0xf0] }
  0x5e   :  { %662 = vmatpush.bf16.msra.mxu1 %v3399_v14  ;;  %v3419_v14 = vor.u32 %v2836_v1, %v2561_v61  ;;  %v3425_v36 = vor.u32 %v2837_v10, %v2569_v59  ;;  %v2831_v61 = vld [vmem:[#allocation7 + $0x2c] sm:$0xf]  ;;  %v2555_v1 = vld [vmem:[#allocation7 + $0x38] sm:$0xf0] }
  0x5f   :  { %676 = vmatpush.bf16.msra.mxu2 %v3401_v15  ;;  %690 = vmatpush.bf16.msra.mxu3 %v3404_v32  ;;  %v2547_v32 = vld [vmem:[#allocation7 + $0x30] sm:$0xf0]  ;;  %v2553_v15 = vld [vmem:[#allocation7 + $0x28] sm:$0xf]  ;;  %v3440_v28 = vor.u32 %v2831_v61, %v2555_v1  ;;  %v4443_v1 = vld [vmem:[#allocation47_spill] sm:$0xff] }
  0x60   :  { %4427 = vst [vmem:[#allocation52_spill] sm:$0xff] %v3419_v14  ;;  %v3435_v59 = vor.u32 %v2830_v47, %v2547_v32  ;;  %v3152_v47 = vmov 0.0|0.0   ;;  %v4442_v61 = vld [vmem:[#allocation46_spill] sm:$0xff] }
  0x61   :  { %649 = vmatpush.bf16.msra.mxu0 %v3407_v53  ;;  %4429 = vst [vmem:[#allocation54_spill] sm:$0xff] %v3425_v36  ;;  %v2833_v53 = vld [vmem:[#allocation7 + $0x34] sm:$0xf0] }
  0x62   :  { %663 = vmatpush.bf16.msra.mxu1 %v3411_v54  ;;  %v3431_v54 = vor.u32 %v2832_v39, %v2545_v37  ;;  %4432 = vst [vmem:[#allocation57_spill] sm:$0xff] %v3435_v59  ;;  %v3437_v10 = vor.u32 %v2833_v53, %v2553_v15  ;;  %v2827_v37 = vld [vmem:[#allocation7 + $0xc] sm:$0xf]  ;;  %v2539_v39 = vld [vmem:[#allocation7 + $0x18] sm:$0xf0] }
  0x63   :  { %677 = vmatpush.bf16.msra.mxu2 %v3413_v55  ;;  %691 = vmatpush.bf16.msra.mxu3 %v3416_v4  ;;  %4434 = vst [vmem:[#allocation59_spill] sm:$0xff] %v3440_v28  ;;  %v2531_v4 = vld [vmem:[#allocation7 + $0x10] sm:$0xf0]  ;;  %v2537_v55 = vld [vmem:[#allocation7 + $0x8] sm:$0xf]  ;;  %v3452_v53 = vor.u32 %v2827_v37, %v2539_v39  ;;  %v4447_v37 = vld [vmem:[#allocation51_spill] sm:$0xff] }
  0x64   :  { %4431 = vst [vmem:[#allocation56_spill] sm:$0xff] %v3431_v54  ;;  %v3447_v15 = vor.u32 %v2826_v18, %v2531_v4  ;;  %v4441_v4 = vld [vmem:[#allocation45_spill] sm:$0xff]  ;;  %v4446_v18 = vld [vmem:[#allocation50_spill] sm:$0xff] }
  0x65   :  { %650 = vmatpush.bf16.msra.mxu0 %v3419_v14  ;;  %4433 = vst [vmem:[#allocation58_spill] sm:$0xff] %v3437_v10  ;;  %v2829_v14 = vld [vmem:[#allocation7 + $0x14] sm:$0xf0] }
  0x66   :  { %664 = vmatpush.bf16.msra.mxu1 %v3423_v30  ;;  %v3443_v30 = vor.u32 %v2828_v9, %v2529_v2  ;;  %4436 = vst [vmem:[#allocation61_spill] sm:$0xff] %v3447_v15  ;;  %v3449_v32 = vor.u32 %v2829_v14, %v2537_v55  ;;  %v4439_v14 = vld [vmem:[#allocation43_spill] sm:$0xff]  ;;  %v4440_v55 = vld [vmem:[#allocation44_spill] sm:$0xff]  ;;  %v4445_v9 = vld [vmem:[#allocation49_spill] sm:$0xff] }
  0x67   :  { %678 = vmatpush.bf16.msra.mxu2 %v3425_v36  ;;  %692 = vmatpush.bf16.msra.mxu3 %v3428_v48  ;;  %4438 = vst [vmem:[#allocation63_spill] sm:$0xff] %v3452_v53  ;;  %v4444_v2 = vld [vmem:[#allocation48_spill] sm:$0xff] }
  0x68   :  { %4435 = vst [vmem:[#allocation60_spill] sm:$0xff] %v3443_v30  ;;  %v4448_v39 = vld [vmem:[#allocation52_spill] sm:$0xff] }
  0x69   :  { %651 = vmatpush.bf16.msra.mxu0 %v3431_v54  ;;  %4437 = vst [vmem:[#allocation62_spill] sm:$0xff] %v3449_v32 }
  0x6a   :  { %665 = vmatpush.bf16.msra.mxu1 %v3435_v59 }
  0x6b   :  { %679 = vmatpush.bf16.msra.mxu2 %v3437_v10  ;;  %693 = vmatpush.bf16.msra.mxu3 %v3440_v28 }
  0x6d   :  { %652 = vmatpush.bf16.msra.mxu0 %v3443_v30 }
  0x6e   :  { %666 = vmatpush.bf16.msra.mxu1 %v3447_v15 }
  0x6f   :  { %680 = vmatpush.bf16.msra.mxu2 %v3449_v32  ;;  %694 = vmatpush.bf16.msra.mxu3 %v3452_v53 }
  0x70   :  { %653 = vmatmul.bf16.vlgmr.msra.gmra.mxu0 %v3152_v47 }
  0x71   :  { %766 = vmatpush.bf16.msrb.mxu0 %v3228_v3  ;;  %667 = vmatmul.bf16.vlgmr.msra.gmra.mxu1 %v3152_v47 }
  0x72   :  { %780 = vmatpush.bf16.msrb.mxu1 %v3230_v7  ;;  %681 = vmatmul.bf16.vlgmr.msra.gmra.mxu2 %v3152_v47 }
  0x73   :  { %695 = vmatmul.bf16.vlgmr.msra.gmra.mxu3 %v3152_v47  ;;  %794 = vmatpush.bf16.msrb.mxu2 %v3232_v8  ;;  %v4449_v47 = vld [vmem:[#allocation53_spill] sm:$0xff] }
  0x74   :  { %808 = vmatpush.bf16.msrb.mxu3 %v3235_v12 }
  0x75   :  { %767 = vmatpush.bf16.msrb.mxu0 %v3239_v16 }
  0x76   :  { %781 = vmatpush.bf16.msrb.mxu1 %v3241_v17 }
  0x77   :  { %795 = vmatpush.bf16.msrb.mxu2 %v3244_v21 }
  0x78   :  { %809 = vmatpush.bf16.msrb.mxu3 %v3246_v25 }
  0x79   :  { %768 = vmatpush.bf16.msrb.mxu0 %v3249_v29 }
  0x7a   :  { %782 = vmatpush.bf16.msrb.mxu1 %v3253_v33 }
  0x7b   :  { %796 = vmatpush.bf16.msrb.mxu2 %v3255_v34 }
  0x7c   :  { %810 = vmatpush.bf16.msrb.mxu3 %v3258_v38 }
  0x7d   :  { %769 = vmatpush.bf16.msrb.mxu0 %v3261_v44 }
  0x7e   :  { %783 = vmatpush.bf16.msrb.mxu1 %v3265_v45 }
  0x7f   :  { %797 = vmatpush.bf16.msrb.mxu2 %v3267_v46 }
  0x80   :  { %811 = vmatpush.bf16.msrb.mxu3 %v3270_v50 }
  0x81   :  { %770 = vmatpush.bf16.msrb.mxu0 %v3273_v56 }
  0x82   :  { %784 = vmatpush.bf16.msrb.mxu1 %v3277_v57 }
  0x83   :  { %798 = vmatpush.bf16.msrb.mxu2 %v3279_v58 }
  0x84   :  { %812 = vmatpush.bf16.msrb.mxu3 %v3282_v62 }
  0x85   :  { %771 = vmatpush.bf16.msrb.mxu0 %v3285_v5 }
  0x86   :  { %785 = vmatpush.bf16.msrb.mxu1 %v3289_v11 }
  0x87   :  { %799 = vmatpush.bf16.msrb.mxu2 %v3291_v13 }
  0x88   :  { %813 = vmatpush.bf16.msrb.mxu3 %v3294_v19 }
  0x89   :  { %772 = vmatpush.bf16.msrb.mxu0 %v3297_v23 }
  0x8a   :  { %786 = vmatpush.bf16.msrb.mxu1 %v3301_v24 }
  0x8b   :  { %800 = vmatpush.bf16.msrb.mxu2 %v3303_v26 }
  0x8c   :  { %814 = vmatpush.bf16.msrb.mxu3 %v3306_v31 }
  0x8d   :  { %773 = vmatpush.bf16.msrb.mxu0 %v3309_v40 }
  0x8e   :  { %787 = vmatpush.bf16.msrb.mxu1 %v3313_v41 }
  0x8f   :  { %801 = vmatpush.bf16.msrb.mxu2 %v3315_v42 }
  0x90   :  { %815 = vmatpush.bf16.msrb.mxu3 %v3318_v43 }
  0x91   :  { %832 = vmatpush.bf16.msra.mxu0 %v3355_v60 }
  0x92   :  { %846 = vmatpush.bf16.msra.mxu1 %v3357_v63 }
  0x93   :  { %860 = vmatpush.bf16.msra.mxu2 %v3359_v0 }
  0x94   :  { %874 = vmatpush.bf16.msra.mxu3 %v3362_v6 }
  0x95   :  { %833 = vmatpush.bf16.msra.mxu0 %v3371_v20 }
  0x96   :  { %847 = vmatpush.bf16.msra.mxu1 %v3375_v22 }
  0x97   :  { %861 = vmatpush.bf16.msra.mxu2 %v3377_v27 }
  0x98   :  { %875 = vmatpush.bf16.msra.mxu3 %v3380_v35 }
  0x99   :  { %834 = vmatpush.bf16.msra.mxu0 %v3383_v49 }
  0x9a   :  { %848 = vmatpush.bf16.msra.mxu1 %v3387_v51 }
  0x9b   :  { %862 = vmatpush.bf16.msra.mxu2 %v3389_v52 }
  0x9c   :  { %876 = vmatpush.bf16.msra.mxu3 %v4439_v14 }
  0x9d   :  { %835 = vmatpush.bf16.msra.mxu0 %v4440_v55 }
  0x9e   :  { %849 = vmatpush.bf16.msra.mxu1 %v4441_v4 }
  0x9f   :  { %863 = vmatpush.bf16.msra.mxu2 %v4442_v61 }
  0xa0   :  { %877 = vmatpush.bf16.msra.mxu3 %v4443_v1 }
  0xa1   :  { %836 = vmatpush.bf16.msra.mxu0 %v4444_v2 }
  0xa2   :  { %850 = vmatpush.bf16.msra.mxu1 %v4445_v9 }
  0xa3   :  { %864 = vmatpush.bf16.msra.mxu2 %v4446_v18 }
  0xa4   :  { %878 = vmatpush.bf16.msra.mxu3 %v4447_v37 }
  0xa5   :  { %837 = vmatpush.bf16.msra.mxu0 %v4448_v39 }
  0xa6   :  { %851 = vmatpush.bf16.msra.mxu1 %v4449_v47 }
  0xa7   :  { %865 = vmatpush.bf16.msra.mxu2 %v3425_v36 }
  0xa8   :  { %879 = vmatpush.bf16.msra.mxu3 %v3428_v48 }
  0xa9   :  { %838 = vmatpush.bf16.msra.mxu0 %v3431_v54 }
  0xaa   :  { %852 = vmatpush.bf16.msra.mxu1 %v3435_v59 }
  0xab   :  { %866 = vmatpush.bf16.msra.mxu2 %v3437_v10  ;;  %v160_v10 = vld [vmem:[%s4260_s3] sm:$0xf] }
  0xac   :  { %880 = vmatpush.bf16.msra.mxu3 %v3440_v28  ;;  %v3537_v1 = vperm.slane %v160_v10, 2  ;;  %v3539_v61 = vperm.slane %v160_v10, 3 }
  0xad   :  { %839 = vmatpush.bf16.msra.mxu0 %v3443_v30  ;;  %v347_v47 = vpop.f32.mrf.mxu0  ;;  %v3529_v30 = vperm.slane %v160_v10, 0 }
  0xae   :  { %853 = vmatpush.bf16.msra.mxu1 %v3447_v15  ;;  %v361_v36 = vpop.f32.mrf.mxu1  ;;  %v3531_v15 = vperm.slane %v160_v10, 1 }
  0xaf   :  { %867 = vmatpush.bf16.msra.mxu2 %v3449_v32  ;;  %v348_v10 = vadd.f32 %v347_v47, %v3529_v30 }
  0xb0   :  { %881 = vmatpush.bf16.msra.mxu3 %v3452_v53 }
  0xb5   :  { %v375_v39 = vpop.f32.mrf.mxu2  ;;  %v349_v37 = vpop.f32.mrf.mxu0 }
  0xb6   :  { %v363_v54 = vpop.f32.mrf.mxu1 }
  0xb7   :  { %v389_v48 = vpop.f32.mrf.mxu3 }
  0xbd   :  { %v3525_v59 = vpop.f32.mrf.mxu2 }
  0xbf   :  { %v3527_v28 = vpop.f32.mrf.mxu3 }
  0xcd   :  { %v428_v32 = vpop.f32.mrf.mxu0 }
  0xce   :  { %v429_v53 = vadd.f32 %v428_v32, %v3529_v30  ;;  %v442_v18 = vpop.f32.mrf.mxu1  ;;  %v2860_v32 = vld [vmem:[%s4257_s0 + $0x10] sm:$0xff] }
  0xcf   :  { %v443_v9 = vadd.f32 %v442_v18, %v3531_v15  ;;  %774 = vmatmul.bf16.vlgmr.msrb.gmra.mxu0 %v2860_v32  ;;  %788 = vmatmul.bf16.vlgmr.msrb.gmra.mxu1 %v2860_v32  ;;  %v364_v18 = vadd.f32 %v363_v54, %v3531_v15 }
  0xd0   :  { %802 = vmatmul.bf16.vlgmr.msrb.gmra.mxu2 %v2860_v32  ;;  %816 = vmatmul.bf16.vlgmr.msrb.gmra.mxu3 %v2860_v32 }
  0xd1   :  { %v3535_v2 = vpack.c.bf16 %v443_v9, %v429_v53  ;;  %953 = vmatpush.bf16.msrb.mxu0 %v3228_v3  ;;  %967 = vmatpush.bf16.msrb.mxu1 %v3230_v7  ;;  %v350_v9 = vadd.f32 %v349_v37, %v3529_v30 }
  0xd2   :  { %981 = vmatpush.bf16.msrb.mxu2 %v3232_v8  ;;  %995 = vmatpush.bf16.msrb.mxu3 %v3235_v12 }
  0xd3   :  { %4450 = vst [vmem:[#allocation64_spill] sm:$0xff] %v3535_v2  ;;  %v396_v54 = vpack.c.bf16 %v364_v18, %v350_v9 }
  0xd5   :  { %v456_v4 = vpop.f32.mrf.mxu2  ;;  %v3554_v53 = vpop.f32.mrf.mxu0  ;;  %954 = vmatpush.bf16.msrb.mxu0 %v3239_v16  ;;  %968 = vmatpush.bf16.msrb.mxu1 %v3241_v17  ;;  %v706_v18 = vunpack.c.h.bf16 %v396_v54 }
  0xd6   :  { %v457_v55 = vadd.f32 %v456_v4, %v3537_v1  ;;  %982 = vmatpush.bf16.msrb.mxu2 %v3244_v21  ;;  %996 = vmatpush.bf16.msrb.mxu3 %v3246_v25  ;;  %v390_v4 = vadd.f32 %v389_v48, %v3539_v61 }
  0xd7   :  { %v470_v14 = vpop.f32.mrf.mxu3 }
  0xd8   :  { %v471_v52 = vadd.f32 %v470_v14, %v3539_v61  ;;  %v3558_v14 = vpop.f32.mrf.mxu1 }
  0xd9   :  { %4452 = vst [vmem:[#allocation66_spill] sm:$0xff] %v3558_v14  ;;  %955 = vmatpush.bf16.msrb.mxu0 %v3249_v29  ;;  %969 = vmatpush.bf16.msrb.mxu1 %v3253_v33 }
  0xda   :  { %v3543_v51 = vpack.c.bf16 %v471_v52, %v457_v55  ;;  %v362_v52 = vadd.f32 %v361_v36, %v3531_v15  ;;  %983 = vmatpush.bf16.msrb.mxu2 %v3255_v34  ;;  %997 = vmatpush.bf16.msrb.mxu3 %v3258_v38  ;;  %v376_v36 = vadd.f32 %v375_v39, %v3537_v1 }
  0xdc   :  { %4451 = vst [vmem:[#allocation65_spill] sm:$0xff] %v3543_v51  ;;  %v394_v55 = vpack.c.bf16 %v362_v52, %v348_v10  ;;  %v395_v48 = vpack.c.bf16 %v390_v4, %v376_v36 }
  0xdd   :  { %v3570_v47 = vpop.f32.mrf.mxu2  ;;  %956 = vmatpush.bf16.msrb.mxu0 %v3261_v44  ;;  %970 = vmatpush.bf16.msrb.mxu1 %v3265_v45 }
  0xde   :  { %4453 = vst [vmem:[#allocation67_spill] sm:$0xff] %v3570_v47  ;;  %v701_v32 = vunpack.c.l.bf16 %v394_v55  ;;  %v702_v51 = vunpack.c.h.bf16 %v394_v55  ;;  %984 = vmatpush.bf16.msrb.mxu2 %v3267_v46  ;;  %998 = vmatpush.bf16.msrb.mxu3 %v3270_v50  ;;  %v378_v55 = vadd.f32 %v3525_v59, %v3537_v1 }
  0xdf   :  { %v3572_v10 = vpop.f32.mrf.mxu3 }
  0xe0   :  { %4454 = vst [vmem:[#allocation68_spill] sm:$0xff] %v3572_v10 }
  0xe1   :  { %957 = vmatpush.bf16.msrb.mxu0 %v3273_v56  ;;  %971 = vmatpush.bf16.msrb.mxu1 %v3277_v57 }
  0xe2   :  { %985 = vmatpush.bf16.msrb.mxu2 %v3279_v58  ;;  %999 = vmatpush.bf16.msrb.mxu3 %v3282_v62 }
  0xe5   :  { %958 = vmatpush.bf16.msrb.mxu0 %v3285_v5  ;;  %972 = vmatpush.bf16.msrb.mxu1 %v3289_v11 }
  0xe6   :  { %986 = vmatpush.bf16.msrb.mxu2 %v3291_v13  ;;  %1000 = vmatpush.bf16.msrb.mxu3 %v3294_v19 }
  0xe9   :  { %959 = vmatpush.bf16.msrb.mxu0 %v3297_v23  ;;  %973 = vmatpush.bf16.msrb.mxu1 %v3301_v24 }
  0xea   :  { %987 = vmatpush.bf16.msrb.mxu2 %v3303_v26  ;;  %1001 = vmatpush.bf16.msrb.mxu3 %v3306_v31 }
  0xed   :  { %v654_v52 = vpop.f32.mrf.mxu0  ;;  %960 = vmatpush.bf16.msrb.mxu0 %v3309_v40  ;;  %974 = vmatpush.bf16.msrb.mxu1 %v3313_v41 }
  0xee   :  { %v709_v2 = vadd.f32 %v701_v32, %v654_v52  ;;  %v668_v14 = vpop.f32.mrf.mxu1  ;;  %v392_v32 = vadd.f32 %v3527_v28, %v3539_v61  ;;  %988 = vmatpush.bf16.msrb.mxu2 %v3315_v42  ;;  %1002 = vmatpush.bf16.msrb.mxu3 %v3318_v43 }
  0xef   :  { %v710_v37 = vadd.f32 %v702_v51, %v668_v14  ;;  %v703_v51 = vunpack.c.l.bf16 %v395_v48 }
  0xf0   :  { %v717_v39 = vmul.f32 0.5, %v709_v2  ;;  %v705_v2 = vunpack.c.l.bf16 %v396_v54  ;;  %v397_v59 = vpack.c.bf16 %v392_v32, %v378_v55 }
  0xf1   :  { %v725_v47 = vmul.f32 0.5, %v710_v37 }
  0xf2   :  { %2905 = vtanh.f32 %v717_v39  ;;  %v704_v39 = vunpack.c.h.bf16 %v395_v48  ;;  %v707_v55 = vunpack.c.l.bf16 %v397_v59 }
  0xf3   :  { %2907 = vtanh.f32 %v725_v47 }
  0xf5   :  { %v682_v14 = vpop.f32.mrf.mxu2  ;;  %v656_v9 = vpop.f32.mrf.mxu0 }
  0xf6   :  { %v711_v36 = vadd.f32 %v703_v51, %v682_v14  ;;  %v696_v4 = vpop.f32.mrf.mxu3  ;;  %v713_v52 = vadd.f32 %v705_v2, %v656_v9  ;;  %v670_v37 = vpop.f32.mrf.mxu1 }
  0xf7   :  { %v714_v28 = vadd.f32 %v706_v18, %v670_v37  ;;  %v712_v2 = vadd.f32 %v704_v39, %v696_v4 }
  0xf8   :  { %v2906_v47 = vpop.eup %2905  ;;  %2909 = vtanh.f32 %v711_v36  ;;  %v718_v10 = vmul.f32 0.5, %v713_v52  ;;  %v708_v36 = vunpack.c.h.bf16 %v397_v59 }
  0xf9   :  { %v2908_v51 = vpop.eup %2907  ;;  %v721_v14 = vmul.f32 0.5, %v2906_v47  ;;  %v726_v62 = vmul.f32 0.5, %v714_v28  ;;  %v735_v28 = vmul.f32 0.5, %v712_v2 }
  0xfa   :  { %v729_v54 = vmul.f32 0.5, %v2908_v51  ;;  %2911 = vtanh.f32 %v718_v10 }
  0xfb   :  { %2913 = vtanh.f32 %v726_v62  ;;  %v723_v48 = vadd.f32 0.5, %v721_v14 }
  0xfc   :  { %v731_v9 = vadd.f32 0.5, %v729_v54 }
  0xfd   :  { %v684_v32 = vpop.f32.mrf.mxu2 }
  0xfe   :  { %v715_v18 = vadd.f32 %v707_v55, %v684_v32  ;;  %v698_v52 = vpop.f32.mrf.mxu3  ;;  %v2910_v37 = vpop.eup %2909  ;;  %v743_v47 = vmul.f32 0.0, %v731_v9 }
  0xff   :  { %v716_v4 = vadd.f32 %v708_v36, %v698_v52  ;;  %v745_v59 = vmul.f32 %v2910_v37, %v723_v48 }
 0x100   :  { %2915 = vtanh.f32 %v715_v18  ;;  %v2912_v62 = vpop.eup %2911 }
 0x101   :  { %v736_v10 = vmul.f32 0.5, %v716_v4  ;;  %v2914_v39 = vpop.eup %2913  ;;  %2917 = vtanh.f32 %v735_v28  ;;  %v722_v51 = vmul.f32 0.5, %v2912_v62  ;;  %v3598_v32 = vadd.f32 %v745_v59, %v743_v47 }
 0x102   :  { %v730_v14 = vmul.f32 0.5, %v2914_v39  ;;  %v4457_v39 = vld [vmem:[#allocation43_spill] sm:$0xff] }
 0x103   :  { %2919 = vtanh.f32 %v736_v10  ;;  %v724_v54 = vadd.f32 0.5, %v722_v51  ;;  %v4458_v51 = vld [vmem:[#allocation44_spill] sm:$0xff] }
 0x104   :  { %v732_v2 = vadd.f32 0.5, %v730_v14  ;;  %2921 = vtanh.f32 %v3598_v32  ;;  %v4459_v14 = vld [vmem:[#allocation45_spill] sm:$0xff] }
 0x106   :  { %v2916_v55 = vpop.eup %2915  ;;  %v744_v52 = vmul.f32 0.0, %v732_v2  ;;  %v4462_v2 = vld [vmem:[#allocation48_spill] sm:$0xff] }
 0x107   :  { %v746_v36 = vmul.f32 %v2916_v55, %v724_v54  ;;  %v2918_v42 = vpop.eup %2917  ;;  %v4460_v54 = vld [vmem:[#allocation46_spill] sm:$0xff]  ;;  %v4461_v55 = vld [vmem:[#allocation47_spill] sm:$0xff] }
 0x108   :  { %v739_v48 = vmul.f32 0.5, %v2918_v42  ;;  %v4456_v42 = vld [vmem:[#allocation42_spill] sm:$0xff] }
 0x109   :  { %v2920_v41 = vpop.eup %2919  ;;  %v3601_v18 = vadd.f32 %v746_v36, %v744_v52  ;;  %v4463_v36 = vld [vmem:[#allocation49_spill] sm:$0xff]  ;;  %v4464_v52 = vld [vmem:[#allocation50_spill] sm:$0xff] }
 0x10a   :  { %v740_v9 = vmul.f32 0.5, %v2920_v41  ;;  %v2922_v37 = vpop.eup %2921  ;;  %v741_v28 = vadd.f32 0.5, %v739_v48  ;;  %v4455_v41 = vld [vmem:[#allocation41_spill] sm:$0xff]  ;;  %v4465_v48 = vld [vmem:[#allocation51_spill] sm:$0xff] }
 0x10b   :  { %2923 = vtanh.f32 %v3601_v18 }
 0x10c   :  { %v742_v4 = vadd.f32 0.5, %v740_v9  ;;  %v751_v62 = vmul.f32 %v2922_v37, %v741_v28  ;;  %v4466_v9 = vld [vmem:[#allocation52_spill] sm:$0xff]  ;;  %v4467_v37 = vld [vmem:[#allocation53_spill] sm:$0xff]  ;;  %v4468_v28 = vld [vmem:[#allocation54_spill] sm:$0xff] }
 0x111   :  { %v2924_v10 = vpop.eup %2923 }
 0x112   :  { %v752_v47 = vmul.f32 %v2924_v10, %v742_v4  ;;  %v4469_v4 = vld [vmem:[#allocation55_spill] sm:$0xff]  ;;  %v4470_v10 = vld [vmem:[#allocation56_spill] sm:$0xff] }
 0x114   :  { %v831_v59 = vpack.c.bf16 %v752_v47, %v751_v62  ;;  %v4471_v62 = vld [vmem:[#allocation57_spill] sm:$0xff]  ;;  %v4472_v47 = vld [vmem:[#allocation58_spill] sm:$0xff] }
 0x116   :  { %840 = vmatmul.bf16.vlgmr.msra.gmra.mxu0 %v831_v59  ;;  %854 = vmatmul.bf16.vlgmr.msra.gmra.mxu1 %v831_v59 }
 0x117   :  { %868 = vmatmul.bf16.vlgmr.msra.gmra.mxu2 %v831_v59  ;;  %882 = vmatmul.bf16.vlgmr.msra.gmra.mxu3 %v831_v59  ;;  %v4473_v59 = vld [vmem:[#allocation59_spill] sm:$0xff] }
 0x118   :  { %1019 = vmatpush.bf16.msra.mxu0 %v3355_v60  ;;  %1033 = vmatpush.bf16.msra.mxu1 %v3357_v63 }
 0x119   :  { %1047 = vmatpush.bf16.msra.mxu2 %v3359_v0  ;;  %1061 = vmatpush.bf16.msra.mxu3 %v3362_v6 }
 0x11c   :  { %1020 = vmatpush.bf16.msra.mxu0 %v3371_v20  ;;  %1034 = vmatpush.bf16.msra.mxu1 %v3375_v22 }
 0x11d   :  { %1048 = vmatpush.bf16.msra.mxu2 %v3377_v27  ;;  %1062 = vmatpush.bf16.msra.mxu3 %v3380_v35 }
 0x120   :  { %1021 = vmatpush.bf16.msra.mxu0 %v3383_v49  ;;  %1035 = vmatpush.bf16.msra.mxu1 %v4455_v41 }
 0x121   :  { %1049 = vmatpush.bf16.msra.mxu2 %v4456_v42  ;;  %1063 = vmatpush.bf16.msra.mxu3 %v4457_v39 }
 0x124   :  { %1022 = vmatpush.bf16.msra.mxu0 %v4458_v51  ;;  %1036 = vmatpush.bf16.msra.mxu1 %v4459_v14 }
 0x125   :  { %1050 = vmatpush.bf16.msra.mxu2 %v4460_v54  ;;  %1064 = vmatpush.bf16.msra.mxu3 %v4461_v55 }
 0x128   :  { %1023 = vmatpush.bf16.msra.mxu0 %v4462_v2  ;;  %1037 = vmatpush.bf16.msra.mxu1 %v4463_v36  ;;  %v4474_v36 = vld [vmem:[#allocation60_spill] sm:$0xff] }
 0x129   :  { %1051 = vmatpush.bf16.msra.mxu2 %v4464_v52  ;;  %1065 = vmatpush.bf16.msra.mxu3 %v4465_v48  ;;  %v4475_v52 = vld [vmem:[#allocation61_spill] sm:$0xff]  ;;  %v4476_v48 = vld [vmem:[#allocation62_spill] sm:$0xff] }
 0x12c   :  { %1024 = vmatpush.bf16.msra.mxu0 %v4466_v9  ;;  %1038 = vmatpush.bf16.msra.mxu1 %v4467_v37  ;;  %v4477_v9 = vld [vmem:[#allocation63_spill] sm:$0xff] }
 0x12d   :  { %1052 = vmatpush.bf16.msra.mxu2 %v4468_v28  ;;  %1066 = vmatpush.bf16.msra.mxu3 %v4469_v4 }
 0x130   :  { %1025 = vmatpush.bf16.msra.mxu0 %v4470_v10  ;;  %1039 = vmatpush.bf16.msra.mxu1 %v4471_v62 }
 0x131   :  { %1053 = vmatpush.bf16.msra.mxu2 %v4472_v47  ;;  %1067 = vmatpush.bf16.msra.mxu3 %v4473_v59 }
 0x134   :  { %1026 = vmatpush.bf16.msra.mxu0 %v4474_v36  ;;  %1040 = vmatpush.bf16.msra.mxu1 %v4475_v52 }
 0x135   :  { %1054 = vmatpush.bf16.msra.mxu2 %v4476_v48  ;;  %1068 = vmatpush.bf16.msra.mxu3 %v4477_v9  ;;  %v2861_v9 = vld [vmem:[%s4257_s0 + $0x18] sm:$0xff] }
 0x136   :  { %961 = vmatmul.bf16.vlgmr.msrb.gmra.mxu0 %v2861_v9  ;;  %975 = vmatmul.bf16.vlgmr.msrb.gmra.mxu1 %v2861_v9 }
 0x137   :  { %989 = vmatmul.bf16.vlgmr.msrb.gmra.mxu2 %v2861_v9  ;;  %1003 = vmatmul.bf16.vlgmr.msrb.gmra.mxu3 %v2861_v9  ;;  %v431_v9 = vadd.f32 %v3554_v53, %v3529_v30 }
 0x138   :  { %1140 = vmatpush.bf16.msrb.mxu0 %v3228_v3  ;;  %1154 = vmatpush.bf16.msrb.mxu1 %v3230_v7 }
 0x139   :  { %1168 = vmatpush.bf16.msrb.mxu2 %v3232_v8  ;;  %1182 = vmatpush.bf16.msrb.mxu3 %v3235_v12 }
 0x13c   :  { %1141 = vmatpush.bf16.msrb.mxu0 %v3239_v16  ;;  %1155 = vmatpush.bf16.msrb.mxu1 %v3241_v17 }
 0x13d   :  { %1169 = vmatpush.bf16.msrb.mxu2 %v3244_v21  ;;  %1183 = vmatpush.bf16.msrb.mxu3 %v3246_v25 }
 0x140   :  { %1142 = vmatpush.bf16.msrb.mxu0 %v3249_v29  ;;  %1156 = vmatpush.bf16.msrb.mxu1 %v3253_v33 }
 0x141   :  { %1170 = vmatpush.bf16.msrb.mxu2 %v3255_v34  ;;  %1184 = vmatpush.bf16.msrb.mxu3 %v3258_v38 }
 0x144   :  { %1143 = vmatpush.bf16.msrb.mxu0 %v3261_v44  ;;  %1157 = vmatpush.bf16.msrb.mxu1 %v3265_v45 }
 0x145   :  { %1171 = vmatpush.bf16.msrb.mxu2 %v3267_v46  ;;  %1185 = vmatpush.bf16.msrb.mxu3 %v3270_v50  ;;  %v4488_v50 = vld [vmem:[#allocation68_spill] sm:$0xff] }
 0x146   :  { %v473_v44 = vadd.f32 %v4488_v50, %v3539_v61 }
 0x148   :  { %1144 = vmatpush.bf16.msrb.mxu0 %v3273_v56  ;;  %1158 = vmatpush.bf16.msrb.mxu1 %v3277_v57 }
 0x149   :  { %1172 = vmatpush.bf16.msrb.mxu2 %v3279_v58 }
 0x14c   :  { %v775_v37 = vpop.f32.mrf.mxu0  ;;  %v789_v28 = vpop.f32.mrf.mxu1  ;;  %1145 = vmatpush.bf16.msrb.mxu0 %v3285_v5  ;;  %1159 = vmatpush.bf16.msrb.mxu1 %v3289_v11 }
 0x14d   :  { %v776_v4 = vadd.f32 %v775_v37, %v3529_v30  ;;  %v790_v10 = vadd.f32 %v789_v28, %v3531_v15  ;;  %v4482_v28 = vld [vmem:[#allocation66_spill] sm:$0xff]  ;;  %1173 = vmatpush.bf16.msrb.mxu2 %v3291_v13 }
 0x14f   :  { %v3638_v2 = vpack.c.bf16 %v790_v10, %v776_v4  ;;  %v445_v4 = vadd.f32 %v4482_v28, %v3531_v15 }
 0x150   :  { %1146 = vmatpush.bf16.msrb.mxu0 %v3297_v23  ;;  %1160 = vmatpush.bf16.msrb.mxu1 %v3301_v24 }
 0x151   :  { %4478 = vst [vmem:[#allocation41_spill] sm:$0xff] %v3638_v2  ;;  %v477_v53 = vpack.c.bf16 %v445_v4, %v431_v9  ;;  %1174 = vmatpush.bf16.msrb.mxu2 %v3303_v26 }
 0x153   :  { %v803_v62 = vpop.f32.mrf.mxu2  ;;  %v817_v47 = vpop.f32.mrf.mxu3  ;;  %v893_v9 = vunpack.c.h.bf16 %v477_v53 }
 0x154   :  { %v804_v59 = vadd.f32 %v803_v62, %v3537_v1  ;;  %v818_v36 = vadd.f32 %v817_v47, %v3539_v61  ;;  %v3657_v37 = vpop.f32.mrf.mxu1  ;;  %v4485_v47 = vld [vmem:[#allocation64_spill] sm:$0xff]  ;;  %1147 = vmatpush.bf16.msrb.mxu0 %v3309_v40 }
 0x155   :  { %4481 = vst [vmem:[#allocation44_spill] sm:$0xff] %v3657_v37 }
 0x156   :  { %v3642_v55 = vpack.c.bf16 %v818_v36, %v804_v59  ;;  %v3655_v36 = vpop.f32.mrf.mxu0  ;;  %v888_v59 = vunpack.c.l.bf16 %v4485_v47 }
 0x157   :  { %4480 = vst [vmem:[#allocation43_spill] sm:$0xff] %v3655_v36 }
 0x158   :  { %4479 = vst [vmem:[#allocation42_spill] sm:$0xff] %v3642_v55  ;;  %v889_v55 = vunpack.c.h.bf16 %v4485_v47  ;;  %v4487_v47 = vld [vmem:[#allocation67_spill] sm:$0xff] }
 0x159   :  { %v459_v46 = vadd.f32 %v4487_v47, %v3537_v1 }
 0x15b   :  { %v3669_v10 = vpop.f32.mrf.mxu2  ;;  %v3671_v62 = vpop.f32.mrf.mxu3 }
 0x15c   :  { %4483 = vst [vmem:[#allocation45_spill] sm:$0xff] %v3669_v10 }
 0x15d   :  { %4484 = vst [vmem:[#allocation46_spill] sm:$0xff] %v3671_v62  ;;  %v4486_v62 = vld [vmem:[#allocation28_spill] sm:$0xff] }
 0x15e   :  { %1186 = vmatpush.bf16.msrb.mxu3 %v4486_v62 }
 0x162   :  { %1187 = vmatpush.bf16.msrb.mxu3 %v3294_v19 }
 0x166   :  { %1188 = vmatpush.bf16.msrb.mxu3 %v3306_v31 }
 0x16a   :  { %1189 = vmatpush.bf16.msrb.mxu3 %v3318_v43 }
 0x193   :  { %v841_v2 = vpop.f32.mrf.mxu0  ;;  %v855_v37 = vpop.f32.mrf.mxu1 }
 0x194   :  { %v896_v36 = vadd.f32 %v888_v59, %v841_v2  ;;  %v897_v45 = vadd.f32 %v889_v55, %v855_v37  ;;  %v4489_v55 = vld [vmem:[#allocation65_spill] sm:$0xff]  ;;  %v892_v37 = vunpack.c.l.bf16 %v477_v53 }
 0x195   :  { %v890_v2 = vunpack.c.l.bf16 %v4489_v55  ;;  %v891_v62 = vunpack.c.h.bf16 %v4489_v55 }
 0x196   :  { %v904_v28 = vmul.f32 0.5, %v896_v36  ;;  %v912_v10 = vmul.f32 0.5, %v897_v45 }
 0x198   :  { %2925 = vtanh.f32 %v904_v28 }
 0x199   :  { %2927 = vtanh.f32 %v912_v10  ;;  %v478_v10 = vpack.c.bf16 %v473_v44, %v459_v46 }
 0x19a   :  { %v869_v36 = vpop.f32.mrf.mxu2  ;;  %v883_v45 = vpop.f32.mrf.mxu3 }
 0x19b   :  { %v898_v4 = vadd.f32 %v890_v2, %v869_v36  ;;  %v843_v59 = vpop.f32.mrf.mxu0  ;;  %v857_v28 = vpop.f32.mrf.mxu1  ;;  %v899_v19 = vadd.f32 %v891_v62, %v883_v45  ;;  %v894_v46 = vunpack.c.l.bf16 %v478_v10  ;;  %v895_v55 = vunpack.c.h.bf16 %v478_v10 }
 0x19c   :  { %v900_v47 = vadd.f32 %v892_v37, %v843_v59  ;;  %v901_v50 = vadd.f32 %v893_v9, %v857_v28  ;;  %v4490_v9 = vld [vmem:[#allocation38_spill] sm:$0xff] }
 0x19d   :  { %2929 = vtanh.f32 %v898_v4  ;;  %1161 = vmatpush.bf16.msrb.mxu1 %v4490_v9 }
 0x19e   :  { %v2926_v11 = vpop.eup %2925  ;;  %v905_v5 = vmul.f32 0.5, %v900_v47  ;;  %v913_v53 = vmul.f32 0.5, %v901_v50  ;;  %v4491_v47 = vld [vmem:[#allocation39_spill] sm:$0xff] }
 0x19f   :  { %v2928_v2 = vpop.eup %2927  ;;  %v908_v36 = vmul.f32 0.5, %v2926_v11  ;;  %1175 = vmatpush.bf16.msrb.mxu2 %v4491_v47  ;;  %v922_v11 = vmul.f32 0.5, %v899_v19 }
 0x1a0   :  { %v916_v37 = vmul.f32 0.5, %v2928_v2  ;;  %2931 = vtanh.f32 %v905_v5 }
 0x1a1   :  { %v910_v44 = vadd.f32 0.5, %v908_v36  ;;  %2933 = vtanh.f32 %v913_v53 }
 0x1a2   :  { %v918_v4 = vadd.f32 0.5, %v916_v37  ;;  %v871_v59 = vpop.f32.mrf.mxu2  ;;  %v885_v28 = vpop.f32.mrf.mxu3 }
 0x1a3   :  { %v2930_v50 = vpop.eup %2929  ;;  %v902_v62 = vadd.f32 %v894_v46, %v871_v59  ;;  %v903_v45 = vadd.f32 %v895_v55, %v885_v28 }
 0x1a4   :  { %v930_v5 = vmul.f32 %v918_v4, %v3598_v32  ;;  %v932_v53 = vmul.f32 %v2930_v50, %v910_v44 }
 0x1a5   :  { %2935 = vtanh.f32 %v902_v62  ;;  %v923_v10 = vmul.f32 0.5, %v903_v45 }
 0x1a6   :  { %v2932_v2 = vpop.eup %2931  ;;  %v3700_v36 = vadd.f32 %v932_v53, %v930_v5  ;;  %2937 = vtanh.f32 %v922_v11  ;;  %v4496_v5 = vld [vmem:[#allocation51_spill] sm:$0xff]  ;;  %v4497_v53 = vld [vmem:[#allocation52_spill] sm:$0xff] }
 0x1a7   :  { %v2934_v9 = vpop.eup %2933  ;;  %v909_v37 = vmul.f32 0.5, %v2932_v2  ;;  %2939 = vtanh.f32 %v923_v10  ;;  %v4498_v10 = vld [vmem:[#allocation53_spill] sm:$0xff]  ;;  %v4499_v2 = vld [vmem:[#allocation54_spill] sm:$0xff] }
 0x1a8   :  { %v917_v40 = vmul.f32 0.5, %v2934_v9  ;;  %2941 = vtanh.f32 %v3700_v36 }
 0x1a9   :  { %v911_v47 = vadd.f32 0.5, %v909_v37  ;;  %v4500_v37 = vld [vmem:[#allocation55_spill] sm:$0xff] }
 0x1aa   :  { %v919_v31 = vadd.f32 0.5, %v917_v40 }
 0x1ab   :  { %v2936_v43 = vpop.eup %2935 }
 0x1ac   :  { %v931_v19 = vmul.f32 %v919_v31, %v3601_v18  ;;  %v933_v46 = vmul.f32 %v2936_v43, %v911_v47  ;;  %v2938_v55 = vpop.eup %2937  ;;  %v4492_v31 = vld [vmem:[#allocation47_spill] sm:$0xff]  ;;  %v4493_v43 = vld [vmem:[#allocation48_spill] sm:$0xff]  ;;  %v4494_v18 = vld [vmem:[#allocation49_spill] sm:$0xff] }
 0x1ad   :  { %v2940_v59 = vpop.eup %2939  ;;  %v926_v44 = vmul.f32 0.5, %v2938_v55  ;;  %v4495_v47 = vld [vmem:[#allocation50_spill] sm:$0xff] }
 0x1ae   :  { %v3704_v32 = vadd.f32 %v933_v46, %v931_v19  ;;  %v927_v4 = vmul.f32 0.5, %v2940_v59  ;;  %v2942_v28 = vpop.eup %2941  ;;  %v4501_v19 = vld [vmem:[#allocation56_spill] sm:$0xff]  ;;  %v4502_v46 = vld [vmem:[#allocation57_spill] sm:$0xff]  ;;  %v4503_v55 = vld [vmem:[#allocation58_spill] sm:$0xff] }
 0x1af   :  { %v928_v50 = vadd.f32 0.5, %v926_v44  ;;  %v4504_v59 = vld [vmem:[#allocation59_spill] sm:$0xff]  ;;  %v4505_v44 = vld [vmem:[#allocation60_spill] sm:$0xff] }
 0x1b0   :  { %2943 = vtanh.f32 %v3704_v32  ;;  %v929_v9 = vadd.f32 0.5, %v927_v4  ;;  %v4506_v4 = vld [vmem:[#allocation63_spill] sm:$0xff] }
 0x1b1   :  { %v938_v62 = vmul.f32 %v2942_v28, %v928_v50 }
 0x1b3   :  { %v962_v28 = vpop.f32.mrf.mxu0  ;;  %v976_v50 = vpop.f32.mrf.mxu1 }
 0x1b6   :  { %v2944_v11 = vpop.eup %2943 }
 0x1b7   :  { %v939_v40 = vmul.f32 %v2944_v11, %v929_v9  ;;  %v963_v9 = vadd.f32 %v962_v28, %v3529_v30  ;;  %v977_v11 = vadd.f32 %v976_v50, %v3531_v15  ;;  %v4512_v28 = vld [vmem:[#allocation22_spill] sm:$0xff]  ;;  %v4513_v50 = vld [vmem:[#allocation43_spill] sm:$0xff] }
 0x1b9   :  { %v1018_v45 = vpack.c.bf16 %v939_v40, %v938_v62  ;;  %v3741_v62 = vpack.c.bf16 %v977_v11, %v963_v9  ;;  %v778_v9 = vadd.f32 %v4513_v50, %v3529_v30  ;;  %v4514_v11 = vld [vmem:[#allocation44_spill] sm:$0xff] }
 0x1ba   :  { %v990_v40 = vpop.f32.mrf.mxu2 }
 0x1bb   :  { %1027 = vmatmul.bf16.vlgmr.msra.gmra.mxu0 %v1018_v45  ;;  %1041 = vmatmul.bf16.vlgmr.msra.gmra.mxu1 %v1018_v45  ;;  %4507 = vst [vmem:[#allocation61_spill] sm:$0xff] %v3741_v62  ;;  %v4517_v62 = vld [vmem:[#allocation41_spill] sm:$0xff] }
 0x1bc   :  { %1055 = vmatmul.bf16.vlgmr.msra.gmra.mxu2 %v1018_v45  ;;  %1069 = vmatmul.bf16.vlgmr.msra.gmra.mxu3 %v1018_v45  ;;  %v1004_v45 = vpop.f32.mrf.mxu3 }
 0x1bd   :  { %1206 = vmatpush.bf16.msra.mxu0 %v3355_v60  ;;  %1220 = vmatpush.bf16.msra.mxu1 %v3357_v63 }
 0x1be   :  { %1234 = vmatpush.bf16.msra.mxu2 %v3359_v0  ;;  %1248 = vmatpush.bf16.msra.mxu3 %v3362_v6 }
 0x1c1   :  { %1207 = vmatpush.bf16.msra.mxu0 %v3371_v20  ;;  %1221 = vmatpush.bf16.msra.mxu1 %v3375_v22 }
 0x1c2   :  { %1235 = vmatpush.bf16.msra.mxu2 %v3377_v27  ;;  %1249 = vmatpush.bf16.msra.mxu3 %v3380_v35 }
 0x1c5   :  { %1208 = vmatpush.bf16.msra.mxu0 %v3383_v49  ;;  %1222 = vmatpush.bf16.msra.mxu1 %v4455_v41 }
 0x1c6   :  { %1236 = vmatpush.bf16.msra.mxu2 %v4456_v42  ;;  %1250 = vmatpush.bf16.msra.mxu3 %v4457_v39 }
 0x1c9   :  { %1209 = vmatpush.bf16.msra.mxu0 %v4458_v51  ;;  %1223 = vmatpush.bf16.msra.mxu1 %v4459_v14 }
 0x1ca   :  { %1237 = vmatpush.bf16.msra.mxu2 %v4460_v54  ;;  %1251 = vmatpush.bf16.msra.mxu3 %v4492_v31 }
 0x1cd   :  { %1210 = vmatpush.bf16.msra.mxu0 %v4493_v43  ;;  %1224 = vmatpush.bf16.msra.mxu1 %v4494_v18 }
 0x1ce   :  { %1238 = vmatpush.bf16.msra.mxu2 %v4495_v47  ;;  %1252 = vmatpush.bf16.msra.mxu3 %v4496_v5 }
 0x1d1   :  { %1211 = vmatpush.bf16.msra.mxu0 %v4497_v53  ;;  %1225 = vmatpush.bf16.msra.mxu1 %v4498_v10 }
 0x1d2   :  { %1239 = vmatpush.bf16.msra.mxu2 %v4499_v2  ;;  %1253 = vmatpush.bf16.msra.mxu3 %v4500_v37 }
 0x1d5   :  { %1212 = vmatpush.bf16.msra.mxu0 %v4501_v19  ;;  %1226 = vmatpush.bf16.msra.mxu1 %v4502_v46 }
 0x1d6   :  { %1240 = vmatpush.bf16.msra.mxu2 %v4503_v55  ;;  %1254 = vmatpush.bf16.msra.mxu3 %v4504_v59  ;;  %v991_v59 = vadd.f32 %v990_v40, %v3537_v1  ;;  %v792_v40 = vadd.f32 %v4514_v11, %v3531_v15 }
 0x1d8   :  { %v824_v50 = vpack.c.bf16 %v792_v40, %v778_v9 }
 0x1d9   :  { %1213 = vmatpush.bf16.msra.mxu0 %v4505_v44  ;;  %1227 = vmatpush.bf16.msra.mxu1 %v4475_v52  ;;  %v1005_v44 = vadd.f32 %v1004_v45, %v3539_v61  ;;  %v3772_v45 = vpop.f32.mrf.mxu2 }
 0x1da   :  { %1241 = vmatpush.bf16.msra.mxu2 %v4476_v48  ;;  %1255 = vmatpush.bf16.msra.mxu3 %v4506_v4  ;;  %v2862_v4 = vld [vmem:[%s4257_s0 + $0x20] sm:$0xff]  ;;  %4515 = vst [vmem:[#allocation67_spill] sm:$0xff] %v3772_v45  ;;  %v1079_v9 = vunpack.c.l.bf16 %v824_v50  ;;  %v1080_v40 = vunpack.c.h.bf16 %v824_v50 }
 0x1db   :  { %v3745_v55 = vpack.c.bf16 %v1005_v44, %v991_v59  ;;  %1148 = vmatmul.bf16.vlgmr.msrb.gmra.mxu0 %v2862_v4  ;;  %1162 = vmatmul.bf16.vlgmr.msrb.gmra.mxu1 %v2862_v4  ;;  %v3758_v59 = vpop.f32.mrf.mxu0  ;;  %v3760_v44 = vpop.f32.mrf.mxu1 }
 0x1dc   :  { %1176 = vmatmul.bf16.vlgmr.msrb.gmra.mxu2 %v2862_v4  ;;  %1190 = vmatmul.bf16.vlgmr.msrb.gmra.mxu3 %v2862_v4  ;;  %4509 = vst [vmem:[#allocation66_spill] sm:$0xff] %v3758_v59  ;;  %v4511_v4 = vld [vmem:[#allocation21_spill] sm:$0xff]  ;;  %v1076_v59 = vunpack.c.h.bf16 %v4517_v62 }
 0x1dd   :  { %4508 = vst [vmem:[#allocation62_spill] sm:$0xff] %v3745_v55  ;;  %1327 = vmatpush.bf16.msrb.mxu0 %v3228_v3  ;;  %1341 = vmatpush.bf16.msrb.mxu1 %v3230_v7  ;;  %v3774_v55 = vpop.f32.mrf.mxu3 }
 0x1de   :  { %1355 = vmatpush.bf16.msrb.mxu2 %v3232_v8  ;;  %1369 = vmatpush.bf16.msrb.mxu3 %v3235_v12  ;;  %4510 = vst [vmem:[#allocation64_spill] sm:$0xff] %v3760_v44  ;;  %v1075_v44 = vunpack.c.l.bf16 %v4517_v62  ;;  %v4521_v62 = vld [vmem:[#allocation45_spill] sm:$0xff] }
 0x1df   :  { %4516 = vst [vmem:[#allocation68_spill] sm:$0xff] %v3774_v55  ;;  %v4520_v55 = vld [vmem:[#allocation28_spill] sm:$0xff] }
 0x1e1   :  { %1328 = vmatpush.bf16.msrb.mxu0 %v3239_v16  ;;  %1342 = vmatpush.bf16.msrb.mxu1 %v3241_v17 }
 0x1e2   :  { %1356 = vmatpush.bf16.msrb.mxu2 %v3244_v21  ;;  %1370 = vmatpush.bf16.msrb.mxu3 %v3246_v25 }
 0x1e5   :  { %1329 = vmatpush.bf16.msrb.mxu0 %v3249_v29  ;;  %1343 = vmatpush.bf16.msrb.mxu1 %v3253_v33 }
 0x1e6   :  { %1357 = vmatpush.bf16.msrb.mxu2 %v3255_v34  ;;  %1371 = vmatpush.bf16.msrb.mxu3 %v3258_v38  ;;  %v4518_v34 = vld [vmem:[#allocation23_spill] sm:$0xff]  ;;  %v4519_v38 = vld [vmem:[#allocation24_spill] sm:$0xff] }
 0x1e9   :  { %1330 = vmatpush.bf16.msrb.mxu0 %v4511_v4  ;;  %1344 = vmatpush.bf16.msrb.mxu1 %v4512_v28 }
 0x1ea   :  { %1358 = vmatpush.bf16.msrb.mxu2 %v4518_v34  ;;  %1372 = vmatpush.bf16.msrb.mxu3 %v4519_v38  ;;  %v806_v34 = vadd.f32 %v4521_v62, %v3537_v1  ;;  %v4522_v38 = vld [vmem:[#allocation46_spill] sm:$0xff] }
 0x1eb   :  { %v820_v25 = vadd.f32 %v4522_v38, %v3539_v61 }
 0x1ed   :  { %1331 = vmatpush.bf16.msrb.mxu0 %v3273_v56  ;;  %1345 = vmatpush.bf16.msrb.mxu1 %v3277_v57 }
 0x1ee   :  { %1359 = vmatpush.bf16.msrb.mxu2 %v3279_v58  ;;  %1373 = vmatpush.bf16.msrb.mxu3 %v4520_v55 }
 0x1f2   :  { %1360 = vmatpush.bf16.msrb.mxu2 %v3291_v13  ;;  %v4527_v13 = vld [vmem:[#allocation36_spill] sm:$0xff] }
 0x1f6   :  { %1361 = vmatpush.bf16.msrb.mxu2 %v3303_v26  ;;  %v4531_v26 = vld [vmem:[#allocation40_spill] sm:$0xff] }
 0x238   :  { %v1028_v4 = vpop.f32.mrf.mxu0  ;;  %v1042_v28 = vpop.f32.mrf.mxu1 }
 0x239   :  { %v1083_v33 = vadd.f32 %v1075_v44, %v1028_v4  ;;  %v1084_v29 = vadd.f32 %v1076_v59, %v1042_v28  ;;  %v4523_v59 = vld [vmem:[#allocation42_spill] sm:$0xff]  ;;  %v4524_v4 = vld [vmem:[#allocation29_spill] sm:$0xff] }
 0x23a   :  { %v1077_v44 = vunpack.c.l.bf16 %v4523_v59  ;;  %1332 = vmatpush.bf16.msrb.mxu0 %v4524_v4  ;;  %v4525_v28 = vld [vmem:[#allocation30_spill] sm:$0xff]  ;;  %v1078_v56 = vunpack.c.h.bf16 %v4523_v59 }
 0x23b   :  { %v1091_v11 = vmul.f32 0.5, %v1083_v33  ;;  %v1099_v45 = vmul.f32 0.5, %v1084_v29  ;;  %1346 = vmatpush.bf16.msrb.mxu1 %v4525_v28  ;;  %v4529_v59 = vld [vmem:[#allocation38_spill] sm:$0xff] }
 0x23d   :  { %2945 = vtanh.f32 %v1091_v11  ;;  %v4526_v11 = vld [vmem:[#allocation32_spill] sm:$0xff] }
 0x23e   :  { %2947 = vtanh.f32 %v1099_v45  ;;  %1374 = vmatpush.bf16.msrb.mxu3 %v4526_v11  ;;  %v825_v45 = vpack.c.bf16 %v820_v25, %v806_v34  ;;  %1333 = vmatpush.bf16.msrb.mxu0 %v3297_v23 }
 0x23f   :  { %v1056_v33 = vpop.f32.mrf.mxu2  ;;  %v1070_v29 = vpop.f32.mrf.mxu3  ;;  %1347 = vmatpush.bf16.msrb.mxu1 %v3301_v24 }
 0x240   :  { %v1085_v55 = vadd.f32 %v1077_v44, %v1056_v33  ;;  %v1030_v62 = vpop.f32.mrf.mxu0  ;;  %v1044_v58 = vpop.f32.mrf.mxu1  ;;  %v1086_v11 = vadd.f32 %v1078_v56, %v1070_v29  ;;  %v1081_v34 = vunpack.c.l.bf16 %v825_v45 }
 0x241   :  { %v1087_v57 = vadd.f32 %v1079_v9, %v1030_v62  ;;  %v1088_v38 = vadd.f32 %v1080_v40, %v1044_v58  ;;  %v1082_v58 = vunpack.c.h.bf16 %v825_v45 }
 0x242   :  { %2949 = vtanh.f32 %v1085_v55  ;;  %1375 = vmatpush.bf16.msrb.mxu3 %v4527_v13  ;;  %v4528_v55 = vld [vmem:[#allocation37_spill] sm:$0xff] }
 0x243   :  { %v2946_v28 = vpop.eup %2945  ;;  %v1092_v4 = vmul.f32 0.5, %v1087_v57  ;;  %v1100_v50 = vmul.f32 0.5, %v1088_v38  ;;  %1334 = vmatpush.bf16.msrb.mxu0 %v4528_v55  ;;  %1348 = vmatpush.bf16.msrb.mxu1 %v4529_v59  ;;  %v4530_v38 = vld [vmem:[#allocation39_spill] sm:$0xff] }
 0x244   :  { %v2948_v44 = vpop.eup %2947  ;;  %v1095_v33 = vmul.f32 0.5, %v2946_v28  ;;  %1362 = vmatpush.bf16.msrb.mxu2 %v4530_v38  ;;  %v1109_v28 = vmul.f32 0.5, %v1086_v11 }
 0x245   :  { %v1103_v9 = vmul.f32 0.5, %v2948_v44  ;;  %2951 = vtanh.f32 %v1092_v4 }
 0x246   :  { %v1097_v25 = vadd.f32 0.5, %v1095_v33  ;;  %2953 = vtanh.f32 %v1100_v50  ;;  %1376 = vmatpush.bf16.msrb.mxu3 %v4531_v26 }
 0x247   :  { %v1105_v40 = vadd.f32 0.5, %v1103_v9  ;;  %v1058_v57 = vpop.f32.mrf.mxu2  ;;  %v1072_v62 = vpop.f32.mrf.mxu3 }
 0x248   :  { %v2950_v13 = vpop.eup %2949  ;;  %v1089_v56 = vadd.f32 %v1081_v34, %v1058_v57  ;;  %v1090_v29 = vadd.f32 %v1082_v58, %v1072_v62 }
 0x249   :  { %v1117_v4 = vmul.f32 %v1105_v40, %v3700_v36  ;;  %v1119_v50 = vmul.f32 %v2950_v13, %v1097_v25 }
 0x24a   :  { %2955 = vtanh.f32 %v1089_v56  ;;  %v1110_v45 = vmul.f32 0.5, %v1090_v29 }
 0x24b   :  { %v2952_v44 = vpop.eup %2951  ;;  %v3803_v33 = vadd.f32 %v1119_v50, %v1117_v4  ;;  %2957 = vtanh.f32 %v1109_v28 }
 0x24c   :  { %v2954_v59 = vpop.eup %2953  ;;  %v1096_v9 = vmul.f32 0.5, %v2952_v44  ;;  %2959 = vtanh.f32 %v1110_v45 }
 0x24d   :  { %v1104_v55 = vmul.f32 0.5, %v2954_v59  ;;  %2961 = vtanh.f32 %v3803_v33 }
 0x24e   :  { %v1098_v38 = vadd.f32 0.5, %v1096_v9 }
 0x24f   :  { %v1106_v24 = vadd.f32 0.5, %v1104_v55 }
 0x250   :  { %v2956_v26 = vpop.eup %2955 }
 0x251   :  { %v1118_v11 = vmul.f32 %v1106_v24, %v3704_v32  ;;  %v1120_v34 = vmul.f32 %v2956_v26, %v1098_v38  ;;  %v2958_v58 = vpop.eup %2957  ;;  %v4532_v24 = vld [vmem:[#allocation58_spill] sm:$0xff]  ;;  %v4533_v26 = vld [vmem:[#allocation59_spill] sm:$0xff]  ;;  %v4534_v32 = vld [vmem:[#allocation60_spill] sm:$0xff] }
 0x252   :  { %v2960_v57 = vpop.eup %2959  ;;  %v1113_v36 = vmul.f32 0.5, %v2958_v58  ;;  %v4535_v38 = vld [vmem:[#allocation63_spill] sm:$0xff] }
 0x253   :  { %v3807_v13 = vadd.f32 %v1120_v34, %v1118_v11  ;;  %v1114_v25 = vmul.f32 0.5, %v2960_v57  ;;  %v2962_v40 = vpop.eup %2961 }
 0x254   :  { %v1115_v62 = vadd.f32 0.5, %v1113_v36 }
 0x255   :  { %2963 = vtanh.f32 %v3807_v13  ;;  %v1116_v59 = vadd.f32 0.5, %v1114_v25 }
 0x256   :  { %v1125_v56 = vmul.f32 %v2962_v40, %v1115_v62 }
 0x258   :  { %v1149_v4 = vpop.f32.mrf.mxu0  ;;  %v1163_v50 = vpop.f32.mrf.mxu1 }
 0x259   :  { %v1150_v45 = vadd.f32 %v1149_v4, %v3529_v30  ;;  %v1164_v44 = vadd.f32 %v1163_v50, %v3531_v15 }
 0x25b   :  { %v2964_v28 = vpop.eup %2963  ;;  %v3844_v9 = vpack.c.bf16 %v1164_v44, %v1150_v45  ;;  %v2863_v45 = vld [vmem:[%s4257_s0 + $0x28] sm:$0xff]  ;;  %v4540_v44 = vld [vmem:[#allocation16_spill] sm:$0xff] }
 0x25c   :  { %v1126_v55 = vmul.f32 %v2964_v28, %v1116_v59 }
 0x25d   :  { %4536 = vst [vmem:[#allocation65_spill] sm:$0xff] %v3844_v9 }
 0x25e   :  { %v1205_v29 = vpack.c.bf16 %v1126_v55, %v1125_v56 }
 0x25f   :  { %v1177_v11 = vpop.f32.mrf.mxu2  ;;  %v1191_v34 = vpop.f32.mrf.mxu3 }
 0x260   :  { %1214 = vmatmul.bf16.vlgmr.msra.gmra.mxu0 %v1205_v29  ;;  %1228 = vmatmul.bf16.vlgmr.msra.gmra.mxu1 %v1205_v29  ;;  %v1178_v58 = vadd.f32 %v1177_v11, %v3537_v1  ;;  %v1192_v57 = vadd.f32 %v1191_v34, %v3539_v61  ;;  %v1151_v36 = vpop.f32.mrf.mxu0  ;;  %v1165_v25 = vpop.f32.mrf.mxu1  ;;  %v4541_v11 = vld [vmem:[#allocation17_spill] sm:$0xff]  ;;  %v4542_v34 = vld [vmem:[#allocation18_spill] sm:$0xff] }
 0x261   :  { %1242 = vmatmul.bf16.vlgmr.msra.gmra.mxu2 %v1205_v29  ;;  %1256 = vmatmul.bf16.vlgmr.msra.gmra.mxu3 %v1205_v29  ;;  %v1152_v40 = vadd.f32 %v1151_v36, %v3529_v30  ;;  %v1166_v62 = vadd.f32 %v1165_v25, %v3531_v15  ;;  %v4545_v36 = vld [vmem:[#allocation21_spill] sm:$0xff]  ;;  %v4546_v25 = vld [vmem:[#allocation22_spill] sm:$0xff] }
 0x262   :  { %1393 = vmatpush.bf16.msra.mxu0 %v3355_v60  ;;  %1407 = vmatpush.bf16.msra.mxu1 %v3357_v63  ;;  %v3850_v59 = vpack.c.bf16 %v1192_v57, %v1178_v58  ;;  %v4543_v58 = vld [vmem:[#allocation19_spill] sm:$0xff]  ;;  %v4544_v57 = vld [vmem:[#allocation20_spill] sm:$0xff] }
 0x263   :  { %1421 = vmatpush.bf16.msra.mxu2 %v3359_v0  ;;  %1435 = vmatpush.bf16.msra.mxu3 %v3362_v6  ;;  %v3852_v28 = vpack.c.bf16 %v1166_v62, %v1152_v40  ;;  %v4547_v40 = vld [vmem:[#allocation66_spill] sm:$0xff] }
 0x264   :  { %4537 = vst [vmem:[#allocation47_spill] sm:$0xff] %v3850_v59  ;;  %v965_v62 = vadd.f32 %v4547_v40, %v3529_v30 }
 0x265   :  { %4538 = vst [vmem:[#allocation48_spill] sm:$0xff] %v3852_v28  ;;  %v4551_v28 = vld [vmem:[#allocation24_spill] sm:$0xff] }
 0x266   :  { %1394 = vmatpush.bf16.msra.mxu0 %v3371_v20  ;;  %1408 = vmatpush.bf16.msra.mxu1 %v3375_v22 }
 0x267   :  { %1422 = vmatpush.bf16.msra.mxu2 %v3377_v27  ;;  %1436 = vmatpush.bf16.msra.mxu3 %v3380_v35  ;;  %v1179_v56 = vpop.f32.mrf.mxu2  ;;  %v1193_v55 = vpop.f32.mrf.mxu3 }
 0x268   :  { %v1180_v29 = vadd.f32 %v1179_v56, %v3537_v1  ;;  %v1194_v4 = vadd.f32 %v1193_v55, %v3539_v61  ;;  %v4548_v56 = vld [vmem:[#allocation64_spill] sm:$0xff] }
 0x269   :  { %v979_v55 = vadd.f32 %v4548_v56, %v3531_v15  ;;  %v4554_v56 = vld [vmem:[#allocation27_spill] sm:$0xff] }
 0x26a   :  { %1395 = vmatpush.bf16.msra.mxu0 %v3383_v49  ;;  %1409 = vmatpush.bf16.msra.mxu1 %v4455_v41  ;;  %v3856_v50 = vpack.c.bf16 %v1194_v4, %v1180_v29  ;;  %v4549_v29 = vld [vmem:[#allocation61_spill] sm:$0xff] }
 0x26b   :  { %1423 = vmatpush.bf16.msra.mxu2 %v4456_v42  ;;  %1437 = vmatpush.bf16.msra.mxu3 %v4457_v39  ;;  %v1262_v4 = vunpack.c.l.bf16 %v4549_v29  ;;  %v1011_v40 = vpack.c.bf16 %v979_v55, %v965_v62 }
 0x26c   :  { %4539 = vst [vmem:[#allocation49_spill] sm:$0xff] %v3856_v50  ;;  %v4550_v50 = vld [vmem:[#allocation23_spill] sm:$0xff] }
 0x26d   :  { %v1266_v62 = vunpack.c.l.bf16 %v1011_v40  ;;  %v1267_v55 = vunpack.c.h.bf16 %v1011_v40 }
 0x26e   :  { %1396 = vmatpush.bf16.msra.mxu0 %v4458_v51  ;;  %1410 = vmatpush.bf16.msra.mxu1 %v4459_v14 }
 0x26f   :  { %1424 = vmatpush.bf16.msra.mxu2 %v4460_v54  ;;  %1438 = vmatpush.bf16.msra.mxu3 %v4492_v31 }
 0x270   :  { %1335 = vmatmul.bf16.vlgmr.msrb.gmra.mxu0 %v2863_v45  ;;  %1349 = vmatmul.bf16.vlgmr.msrb.gmra.mxu1 %v2863_v45 }
 0x271   :  { %1363 = vmatmul.bf16.vlgmr.msrb.gmra.mxu2 %v2863_v45  ;;  %1377 = vmatmul.bf16.vlgmr.msrb.gmra.mxu3 %v2863_v45  ;;  %v1263_v45 = vunpack.c.h.bf16 %v4549_v29  ;;  %v4556_v29 = vld [vmem:[#allocation67_spill] sm:$0xff] }
 0x272   :  { %1397 = vmatpush.bf16.msra.mxu0 %v4493_v43  ;;  %1411 = vmatpush.bf16.msra.mxu1 %v4494_v18 }
 0x273   :  { %1425 = vmatpush.bf16.msra.mxu2 %v4495_v47  ;;  %1439 = vmatpush.bf16.msra.mxu3 %v4496_v5 }
 0x276   :  { %1398 = vmatpush.bf16.msra.mxu0 %v4497_v53  ;;  %1412 = vmatpush.bf16.msra.mxu1 %v4498_v10 }
 0x277   :  { %1426 = vmatpush.bf16.msra.mxu2 %v4499_v2  ;;  %1440 = vmatpush.bf16.msra.mxu3 %v4500_v37 }
 0x27a   :  { %1399 = vmatpush.bf16.msra.mxu0 %v4501_v19  ;;  %1413 = vmatpush.bf16.msra.mxu1 %v4502_v46 }
 0x27b   :  { %1427 = vmatpush.bf16.msra.mxu2 %v4532_v24  ;;  %1441 = vmatpush.bf16.msra.mxu3 %v4533_v26 }
 0x27e   :  { %1400 = vmatpush.bf16.msra.mxu0 %v4534_v32  ;;  %1414 = vmatpush.bf16.msra.mxu1 %v4475_v52 }
 0x27f   :  { %1428 = vmatpush.bf16.msra.mxu2 %v4476_v48  ;;  %1442 = vmatpush.bf16.msra.mxu3 %v4535_v38 }
 0x282   :  { %1514 = vmatpush.bf16.msrb.mxu0 %v3228_v3  ;;  %1528 = vmatpush.bf16.msrb.mxu1 %v3230_v7 }
 0x283   :  { %1542 = vmatpush.bf16.msrb.mxu2 %v3232_v8  ;;  %1556 = vmatpush.bf16.msrb.mxu3 %v3235_v12  ;;  %v4564_v12 = vld [vmem:[#allocation35_spill] sm:$0xff] }
 0x286   :  { %1515 = vmatpush.bf16.msrb.mxu0 %v3239_v16  ;;  %1529 = vmatpush.bf16.msrb.mxu1 %v3241_v17 }
 0x287   :  { %1543 = vmatpush.bf16.msrb.mxu2 %v3244_v21  ;;  %1557 = vmatpush.bf16.msrb.mxu3 %v4540_v44  ;;  %v4555_v44 = vld [vmem:[#allocation28_spill] sm:$0xff] }
 0x28a   :  { %1516 = vmatpush.bf16.msrb.mxu0 %v4541_v11  ;;  %1530 = vmatpush.bf16.msrb.mxu1 %v4542_v34 }
 0x28b   :  { %1544 = vmatpush.bf16.msrb.mxu2 %v4543_v58  ;;  %1558 = vmatpush.bf16.msrb.mxu3 %v4544_v57  ;;  %v4552_v58 = vld [vmem:[#allocation25_spill] sm:$0xff] }
 0x28e   :  { %1517 = vmatpush.bf16.msrb.mxu0 %v4545_v36  ;;  %1531 = vmatpush.bf16.msrb.mxu1 %v4546_v25  ;;  %v4553_v25 = vld [vmem:[#allocation26_spill] sm:$0xff] }
 0x28f   :  { %1545 = vmatpush.bf16.msrb.mxu2 %v4550_v50  ;;  %1559 = vmatpush.bf16.msrb.mxu3 %v4551_v28  ;;  %v993_v50 = vadd.f32 %v4556_v29, %v3537_v1  ;;  %v4557_v28 = vld [vmem:[#allocation68_spill] sm:$0xff] }
 0x290   :  { %v1007_v21 = vadd.f32 %v4557_v28, %v3539_v61 }
 0x292   :  { %1518 = vmatpush.bf16.msrb.mxu0 %v4552_v58  ;;  %1532 = vmatpush.bf16.msrb.mxu1 %v4553_v25 }
 0x293   :  { %1546 = vmatpush.bf16.msrb.mxu2 %v4554_v56  ;;  %1560 = vmatpush.bf16.msrb.mxu3 %v4555_v44  ;;  %v4561_v56 = vld [vmem:[#allocation31_spill] sm:$0xff] }
 0x297   :  { %1547 = vmatpush.bf16.msrb.mxu2 %v4561_v56  ;;  %v4565_v56 = vld [vmem:[#allocation36_spill] sm:$0xff] }
 0x29b   :  { %1548 = vmatpush.bf16.msrb.mxu2 %v4564_v12  ;;  %v4569_v12 = vld [vmem:[#allocation40_spill] sm:$0xff] }
 0x2dd   :  { %v1215_v59 = vpop.f32.mrf.mxu0  ;;  %v1229_v9 = vpop.f32.mrf.mxu1 }
 0x2de   :  { %v1270_v57 = vadd.f32 %v1262_v4, %v1215_v59  ;;  %v1271_v36 = vadd.f32 %v1263_v45, %v1229_v9  ;;  %v4558_v9 = vld [vmem:[#allocation62_spill] sm:$0xff]  ;;  %v4559_v4 = vld [vmem:[#allocation29_spill] sm:$0xff] }
 0x2df   :  { %v1264_v59 = vunpack.c.l.bf16 %v4558_v9  ;;  %1519 = vmatpush.bf16.msrb.mxu0 %v4559_v4  ;;  %v4560_v45 = vld [vmem:[#allocation30_spill] sm:$0xff]  ;;  %v1265_v17 = vunpack.c.h.bf16 %v4558_v9 }
 0x2e0   :  { %v1278_v34 = vmul.f32 0.5, %v1270_v57  ;;  %v1286_v11 = vmul.f32 0.5, %v1271_v36  ;;  %1533 = vmatpush.bf16.msrb.mxu1 %v4560_v45  ;;  %v4563_v45 = vld [vmem:[#allocation34_spill] sm:$0xff] }
 0x2e1   :  { %v4567_v9 = vld [vmem:[#allocation38_spill] sm:$0xff] }
 0x2e2   :  { %2965 = vtanh.f32 %v1278_v34  ;;  %v4562_v34 = vld [vmem:[#allocation32_spill] sm:$0xff] }
 0x2e3   :  { %2967 = vtanh.f32 %v1286_v11  ;;  %1561 = vmatpush.bf16.msrb.mxu3 %v4562_v34  ;;  %v1012_v11 = vpack.c.bf16 %v1007_v21, %v993_v50  ;;  %1520 = vmatpush.bf16.msrb.mxu0 %v3297_v23 }
 0x2e4   :  { %v1243_v57 = vpop.f32.mrf.mxu2  ;;  %v1257_v36 = vpop.f32.mrf.mxu3  ;;  %1534 = vmatpush.bf16.msrb.mxu1 %v4563_v45 }
 0x2e5   :  { %v1272_v44 = vadd.f32 %v1264_v59, %v1243_v57  ;;  %v1217_v29 = vpop.f32.mrf.mxu0  ;;  %v1231_v25 = vpop.f32.mrf.mxu1  ;;  %v1273_v34 = vadd.f32 %v1265_v17, %v1257_v36  ;;  %v1268_v50 = vunpack.c.l.bf16 %v1012_v11 }
 0x2e6   :  { %v1274_v58 = vadd.f32 %v1266_v62, %v1217_v29  ;;  %v1275_v28 = vadd.f32 %v1267_v55, %v1231_v25  ;;  %v4566_v25 = vld [vmem:[#allocation37_spill] sm:$0xff] }
 0x2e7   :  { %2969 = vtanh.f32 %v1272_v44  ;;  %1562 = vmatpush.bf16.msrb.mxu3 %v4565_v56  ;;  %v1269_v44 = vunpack.c.h.bf16 %v1012_v11  ;;  %1521 = vmatpush.bf16.msrb.mxu0 %v4566_v25 }
 0x2e8   :  { %v2966_v4 = vpop.eup %2965  ;;  %v1279_v16 = vmul.f32 0.5, %v1274_v58  ;;  %v1287_v40 = vmul.f32 0.5, %v1275_v28  ;;  %1535 = vmatpush.bf16.msrb.mxu1 %v4567_v9  ;;  %v4568_v28 = vld [vmem:[#allocation39_spill] sm:$0xff] }
 0x2e9   :  { %v2968_v59 = vpop.eup %2967  ;;  %v1282_v57 = vmul.f32 0.5, %v2966_v4  ;;  %1549 = vmatpush.bf16.msrb.mxu2 %v4568_v28  ;;  %v1296_v4 = vmul.f32 0.5, %v1273_v34 }
 0x2ea   :  { %v1290_v62 = vmul.f32 0.5, %v2968_v59  ;;  %2971 = vtanh.f32 %v1279_v16 }
 0x2eb   :  { %v1284_v21 = vadd.f32 0.5, %v1282_v57  ;;  %2973 = vtanh.f32 %v1287_v40  ;;  %1563 = vmatpush.bf16.msrb.mxu3 %v4569_v12 }
 0x2ec   :  { %v1292_v55 = vadd.f32 0.5, %v1290_v62  ;;  %v1245_v58 = vpop.f32.mrf.mxu2  ;;  %v1259_v29 = vpop.f32.mrf.mxu3 }
 0x2ed   :  { %v2970_v56 = vpop.eup %2969  ;;  %v1276_v17 = vadd.f32 %v1268_v50, %v1245_v58  ;;  %v1277_v36 = vadd.f32 %v1269_v44, %v1259_v29 }
 0x2ee   :  { %v1304_v16 = vmul.f32 %v1292_v55, %v3803_v33  ;;  %v1306_v40 = vmul.f32 %v2970_v56, %v1284_v21 }
 0x2ef   :  { %2975 = vtanh.f32 %v1276_v17  ;;  %v1297_v11 = vmul.f32 0.5, %v1277_v36 }
 0x2f0   :  { %v2972_v59 = vpop.eup %2971  ;;  %v3906_v57 = vadd.f32 %v1306_v40, %v1304_v16  ;;  %2977 = vtanh.f32 %v1296_v4 }
 0x2f1   :  { %v2974_v9 = vpop.eup %2973  ;;  %v1283_v62 = vmul.f32 0.5, %v2972_v59  ;;  %2979 = vtanh.f32 %v1297_v11 }
 0x2f2   :  { %v1291_v25 = vmul.f32 0.5, %v2974_v9  ;;  %2981 = vtanh.f32 %v3906_v57 }
 0x2f3   :  { %v1285_v28 = vadd.f32 0.5, %v1283_v62 }
 0x2f4   :  { %v1293_v45 = vadd.f32 0.5, %v1291_v25  ;;  %v1364_v40 = vpop.f32.mrf.mxu2  ;;  %v1378_v11 = vpop.f32.mrf.mxu3 }
 0x2f5   :  { %v2976_v12 = vpop.eup %2975  ;;  %v1365_v59 = vadd.f32 %v1364_v40, %v3537_v1  ;;  %v1379_v62 = vadd.f32 %v1378_v11, %v3539_v61  ;;  %v4579_v40 = vld [vmem:[#allocation17_spill] sm:$0xff]  ;;  %v4580_v11 = vld [vmem:[#allocation18_spill] sm:$0xff] }
 0x2f6   :  { %v1305_v34 = vmul.f32 %v1293_v45, %v3807_v13  ;;  %v1307_v50 = vmul.f32 %v2976_v12, %v1285_v28  ;;  %v2978_v44 = vpop.eup %2977  ;;  %v1336_v12 = vpop.f32.mrf.mxu0 }
 0x2f7   :  { %v2980_v58 = vpop.eup %2979  ;;  %v1300_v56 = vmul.f32 0.5, %v2978_v44  ;;  %v1350_v13 = vpop.f32.mrf.mxu1  ;;  %v1337_v45 = vadd.f32 %v1336_v12, %v3529_v30  ;;  %v4575_v12 = vld [vmem:[#allocation13_spill] sm:$0xff] }
 0x2f8   :  { %v3910_v33 = vadd.f32 %v1307_v50, %v1305_v34  ;;  %v1301_v21 = vmul.f32 0.5, %v2980_v58  ;;  %v2982_v55 = vpop.eup %2981  ;;  %v1351_v28 = vadd.f32 %v1350_v13, %v3531_v15  ;;  %v4576_v13 = vld [vmem:[#allocation14_spill] sm:$0xff] }
 0x2f9   :  { %v1302_v29 = vadd.f32 0.5, %v1300_v56  ;;  %v3953_v56 = vpack.c.bf16 %v1379_v62, %v1365_v59  ;;  %v4581_v59 = vld [vmem:[#allocation19_spill] sm:$0xff]  ;;  %v4582_v62 = vld [vmem:[#allocation20_spill] sm:$0xff] }
 0x2fa   :  { %2983 = vtanh.f32 %v3910_v33  ;;  %v1303_v9 = vadd.f32 0.5, %v1301_v21  ;;  %v3947_v16 = vpack.c.bf16 %v1351_v28, %v1337_v45  ;;  %v4577_v45 = vld [vmem:[#allocation15_spill] sm:$0xff]  ;;  %v4578_v28 = vld [vmem:[#allocation16_spill] sm:$0xff] }
 0x2fb   :  { %v1312_v17 = vmul.f32 %v2982_v55, %v1302_v29  ;;  %4571 = vst [vmem:[#allocation51_spill] sm:$0xff] %v3953_v56  ;;  %v4588_v56 = vld [vmem:[#allocation25_spill] sm:$0xff] }
 0x2fc   :  { %4570 = vst [vmem:[#allocation50_spill] sm:$0xff] %v3947_v16  ;;  %v1366_v55 = vpop.f32.mrf.mxu2  ;;  %v1380_v29 = vpop.f32.mrf.mxu3  ;;  %v4589_v16 = vld [vmem:[#allocation26_spill] sm:$0xff] }
 0x2fe   :  { %v1338_v34 = vpop.f32.mrf.mxu0 }
 0x2ff   :  { %v1352_v50 = vpop.f32.mrf.mxu1  ;;  %v1339_v44 = vadd.f32 %v1338_v34, %v3529_v30  ;;  %v4583_v34 = vld [vmem:[#allocation21_spill] sm:$0xff] }
 0x300   :  { %v2984_v4 = vpop.eup %2983  ;;  %v1353_v58 = vadd.f32 %v1352_v50, %v3531_v15  ;;  %v4584_v50 = vld [vmem:[#allocation22_spill] sm:$0xff] }
 0x301   :  { %v1313_v25 = vmul.f32 %v2984_v4, %v1303_v9  ;;  %v1367_v9 = vadd.f32 %v1366_v55, %v3537_v1  ;;  %v1381_v4 = vadd.f32 %v1380_v29, %v3539_v61  ;;  %v4586_v29 = vld [vmem:[#allocation23_spill] sm:$0xff] }
 0x302   :  { %v3955_v21 = vpack.c.bf16 %v1353_v58, %v1339_v44  ;;  %v4585_v44 = vld [vmem:[#allocation65_spill] sm:$0xff] }
 0x303   :  { %v1392_v36 = vpack.c.bf16 %v1313_v25, %v1312_v17  ;;  %v3959_v17 = vpack.c.bf16 %v1381_v4, %v1367_v9  ;;  %v2864_v25 = vld [vmem:[%s4257_s0 + $0x30] sm:$0xff]  ;;  %v1449_v58 = vunpack.c.l.bf16 %v4585_v44  ;;  %v1450_v55 = vunpack.c.h.bf16 %v4585_v44  ;;  %v4587_v9 = vld [vmem:[#allocation24_spill] sm:$0xff]  ;;  %v4592_v44 = vld [vmem:[#allocation47_spill] sm:$0xff] }
 0x304   :  { %4572 = vst [vmem:[#allocation52_spill] sm:$0xff] %v3955_v21 }
 0x305   :  { %1401 = vmatmul.bf16.vlgmr.msra.gmra.mxu0 %v1392_v36  ;;  %1415 = vmatmul.bf16.vlgmr.msra.gmra.mxu1 %v1392_v36  ;;  %4573 = vst [vmem:[#allocation53_spill] sm:$0xff] %v3959_v17 }
 0x306   :  { %1429 = vmatmul.bf16.vlgmr.msra.gmra.mxu2 %v1392_v36  ;;  %1443 = vmatmul.bf16.vlgmr.msra.gmra.mxu3 %v1392_v36  ;;  %v4574_v36 = vld [vmem:[#allocation12_spill] sm:$0xff] }
 0x307   :  { %1580 = vmatpush.bf16.msra.mxu0 %v3355_v60  ;;  %1594 = vmatpush.bf16.msra.mxu1 %v3357_v63 }
 0x308   :  { %1608 = vmatpush.bf16.msra.mxu2 %v3359_v0  ;;  %1622 = vmatpush.bf16.msra.mxu3 %v3362_v6 }
 0x30b   :  { %1581 = vmatpush.bf16.msra.mxu0 %v3371_v20  ;;  %1595 = vmatpush.bf16.msra.mxu1 %v3375_v22 }
 0x30c   :  { %1609 = vmatpush.bf16.msra.mxu2 %v3377_v27  ;;  %1623 = vmatpush.bf16.msra.mxu3 %v3380_v35 }
 0x30f   :  { %1582 = vmatpush.bf16.msra.mxu0 %v3383_v49  ;;  %1596 = vmatpush.bf16.msra.mxu1 %v4455_v41 }
 0x310   :  { %1610 = vmatpush.bf16.msra.mxu2 %v4456_v42  ;;  %1624 = vmatpush.bf16.msra.mxu3 %v4457_v39 }
 0x313   :  { %1583 = vmatpush.bf16.msra.mxu0 %v4458_v51  ;;  %1597 = vmatpush.bf16.msra.mxu1 %v4459_v14 }
 0x314   :  { %1611 = vmatpush.bf16.msra.mxu2 %v4460_v54  ;;  %1625 = vmatpush.bf16.msra.mxu3 %v4492_v31 }
 0x315   :  { %1522 = vmatmul.bf16.vlgmr.msrb.gmra.mxu0 %v2864_v25  ;;  %1536 = vmatmul.bf16.vlgmr.msrb.gmra.mxu1 %v2864_v25 }
 0x316   :  { %1550 = vmatmul.bf16.vlgmr.msrb.gmra.mxu2 %v2864_v25  ;;  %1564 = vmatmul.bf16.vlgmr.msrb.gmra.mxu3 %v2864_v25 }
 0x317   :  { %1584 = vmatpush.bf16.msra.mxu0 %v4493_v43  ;;  %1598 = vmatpush.bf16.msra.mxu1 %v4494_v18 }
 0x318   :  { %1612 = vmatpush.bf16.msra.mxu2 %v4495_v47  ;;  %1626 = vmatpush.bf16.msra.mxu3 %v4496_v5 }
 0x31b   :  { %1585 = vmatpush.bf16.msra.mxu0 %v4497_v53  ;;  %1599 = vmatpush.bf16.msra.mxu1 %v4498_v10 }
 0x31c   :  { %1613 = vmatpush.bf16.msra.mxu2 %v4499_v2  ;;  %1627 = vmatpush.bf16.msra.mxu3 %v4500_v37 }
 0x31f   :  { %1586 = vmatpush.bf16.msra.mxu0 %v4501_v19  ;;  %1600 = vmatpush.bf16.msra.mxu1 %v4502_v46 }
 0x320   :  { %1614 = vmatpush.bf16.msra.mxu2 %v4532_v24  ;;  %1628 = vmatpush.bf16.msra.mxu3 %v4533_v26 }
 0x323   :  { %1587 = vmatpush.bf16.msra.mxu0 %v4534_v32  ;;  %1601 = vmatpush.bf16.msra.mxu1 %v4475_v52 }
 0x324   :  { %1615 = vmatpush.bf16.msra.mxu2 %v4476_v48  ;;  %1629 = vmatpush.bf16.msra.mxu3 %v4535_v38 }
 0x327   :  { %1701 = vmatpush.bf16.msrb.mxu0 %v3228_v3  ;;  %1715 = vmatpush.bf16.msrb.mxu1 %v3230_v7 }
 0x328   :  { %1729 = vmatpush.bf16.msrb.mxu2 %v3232_v8  ;;  %1743 = vmatpush.bf16.msrb.mxu3 %v4574_v36 }
 0x32b   :  { %1702 = vmatpush.bf16.msrb.mxu0 %v4575_v12  ;;  %1716 = vmatpush.bf16.msrb.mxu1 %v4576_v13 }
 0x32c   :  { %1730 = vmatpush.bf16.msrb.mxu2 %v4577_v45  ;;  %1744 = vmatpush.bf16.msrb.mxu3 %v4578_v28 }
 0x32f   :  { %1703 = vmatpush.bf16.msrb.mxu0 %v4579_v40  ;;  %1717 = vmatpush.bf16.msrb.mxu1 %v4580_v11  ;;  %v4593_v11 = vld [vmem:[#allocation29_spill] sm:$0xff] }
 0x330   :  { %1731 = vmatpush.bf16.msrb.mxu2 %v4581_v59  ;;  %1745 = vmatpush.bf16.msrb.mxu3 %v4582_v62  ;;  %v4590_v59 = vld [vmem:[#allocation27_spill] sm:$0xff] }
 0x333   :  { %1704 = vmatpush.bf16.msrb.mxu0 %v4583_v34  ;;  %1718 = vmatpush.bf16.msrb.mxu1 %v4584_v50  ;;  %v4591_v50 = vld [vmem:[#allocation28_spill] sm:$0xff] }
 0x334   :  { %1732 = vmatpush.bf16.msrb.mxu2 %v4586_v29  ;;  %1746 = vmatpush.bf16.msrb.mxu3 %v4587_v9  ;;  %v1451_v29 = vunpack.c.l.bf16 %v4592_v44  ;;  %v4594_v9 = vld [vmem:[#allocation30_spill] sm:$0xff] }
 0x337   :  { %1705 = vmatpush.bf16.msrb.mxu0 %v4588_v56  ;;  %1719 = vmatpush.bf16.msrb.mxu1 %v4589_v16 }
 0x338   :  { %1733 = vmatpush.bf16.msrb.mxu2 %v4590_v59  ;;  %1747 = vmatpush.bf16.msrb.mxu3 %v4591_v50 }
 0x33b   :  { %1706 = vmatpush.bf16.msrb.mxu0 %v4593_v11  ;;  %1720 = vmatpush.bf16.msrb.mxu1 %v4594_v9  ;;  %v1452_v11 = vunpack.c.h.bf16 %v4592_v44  ;;  %v4598_v9 = vld [vmem:[#allocation34_spill] sm:$0xff] }
 0x33f   :  { %1707 = vmatpush.bf16.msrb.mxu0 %v3297_v23  ;;  %1721 = vmatpush.bf16.msrb.mxu1 %v4598_v9  ;;  %v4604_v9 = vld [vmem:[#allocation39_spill] sm:$0xff] }
 0x382   :  { %v1402_v4 = vpop.f32.mrf.mxu0  ;;  %v1416_v25 = vpop.f32.mrf.mxu1 }
 0x383   :  { %v1457_v17 = vadd.f32 %v1449_v58, %v1402_v4  ;;  %v1458_v21 = vadd.f32 %v1450_v55, %v1416_v25  ;;  %v4595_v4 = vld [vmem:[#allocation48_spill] sm:$0xff] }
 0x384   :  { %v1453_v25 = vunpack.c.l.bf16 %v4595_v4  ;;  %v1454_v16 = vunpack.c.h.bf16 %v4595_v4  ;;  %v4599_v4 = vld [vmem:[#allocation35_spill] sm:$0xff] }
 0x385   :  { %v1465_v62 = vmul.f32 0.5, %v1457_v17  ;;  %v1473_v34 = vmul.f32 0.5, %v1458_v21  ;;  %v4596_v17 = vld [vmem:[#allocation31_spill] sm:$0xff]  ;;  %v4597_v21 = vld [vmem:[#allocation32_spill] sm:$0xff] }
 0x386   :  { %1734 = vmatpush.bf16.msrb.mxu2 %v4596_v17  ;;  %1748 = vmatpush.bf16.msrb.mxu3 %v4597_v21  ;;  %v4600_v17 = vld [vmem:[#allocation36_spill] sm:$0xff] }
 0x387   :  { %2985 = vtanh.f32 %v1465_v62 }
 0x388   :  { %2987 = vtanh.f32 %v1473_v34 }
 0x389   :  { %v1430_v58 = vpop.f32.mrf.mxu2  ;;  %v1444_v55 = vpop.f32.mrf.mxu3 }
 0x38a   :  { %v1459_v59 = vadd.f32 %v1451_v29, %v1430_v58  ;;  %v1404_v50 = vpop.f32.mrf.mxu0  ;;  %v1418_v62 = vpop.f32.mrf.mxu1  ;;  %1735 = vmatpush.bf16.msrb.mxu2 %v4599_v4  ;;  %1749 = vmatpush.bf16.msrb.mxu3 %v4600_v17  ;;  %v1460_v58 = vadd.f32 %v1452_v11, %v1444_v55  ;;  %v4605_v17 = vld [vmem:[#allocation40_spill] sm:$0xff] }
 0x38b   :  { %v1461_v34 = vadd.f32 %v1453_v25, %v1404_v50  ;;  %v1462_v56 = vadd.f32 %v1454_v16, %v1418_v62  ;;  %v4602_v25 = vld [vmem:[#allocation37_spill] sm:$0xff]  ;;  %v4603_v62 = vld [vmem:[#allocation38_spill] sm:$0xff] }
 0x38c   :  { %2989 = vtanh.f32 %v1459_v59  ;;  %v4601_v59 = vld [vmem:[#allocation49_spill] sm:$0xff]  ;;  %1708 = vmatpush.bf16.msrb.mxu0 %v4602_v25  ;;  %1722 = vmatpush.bf16.msrb.mxu1 %v4603_v62  ;;  %v1483_v11 = vmul.f32 0.5, %v1460_v58 }
 0x38d   :  { %v2986_v40 = vpop.eup %2985  ;;  %v1466_v28 = vmul.f32 0.5, %v1461_v34  ;;  %v1474_v45 = vmul.f32 0.5, %v1462_v56  ;;  %v1455_v50 = vunpack.c.l.bf16 %v4601_v59  ;;  %v1456_v44 = vunpack.c.h.bf16 %v4601_v59 }
 0x38e   :  { %v2988_v21 = vpop.eup %2987  ;;  %v1469_v29 = vmul.f32 0.5, %v2986_v40  ;;  %1736 = vmatpush.bf16.msrb.mxu2 %v4604_v9  ;;  %1750 = vmatpush.bf16.msrb.mxu3 %v4605_v17 }
 0x38f   :  { %v1477_v13 = vmul.f32 0.5, %v2988_v21  ;;  %2991 = vtanh.f32 %v1466_v28 }
 0x390   :  { %v1471_v16 = vadd.f32 0.5, %v1469_v29  ;;  %2993 = vtanh.f32 %v1474_v45 }
 0x391   :  { %v1479_v56 = vadd.f32 0.5, %v1477_v13  ;;  %v1432_v34 = vpop.f32.mrf.mxu2  ;;  %v1446_v4 = vpop.f32.mrf.mxu3 }
 0x392   :  { %v2990_v40 = vpop.eup %2989  ;;  %v1463_v28 = vadd.f32 %v1455_v50, %v1432_v34  ;;  %v1464_v55 = vadd.f32 %v1456_v44, %v1446_v4 }
 0x393   :  { %v1491_v45 = vmul.f32 %v1479_v56, %v3906_v57  ;;  %v1493_v21 = vmul.f32 %v2990_v40, %v1471_v16 }
 0x394   :  { %2995 = vtanh.f32 %v1463_v28  ;;  %v1484_v29 = vmul.f32 0.5, %v1464_v55 }
 0x395   :  { %v2992_v59 = vpop.eup %2991  ;;  %v4005_v25 = vadd.f32 %v1493_v21, %v1491_v45  ;;  %2997 = vtanh.f32 %v1483_v11 }
 0x396   :  { %v2994_v62 = vpop.eup %2993  ;;  %v1470_v13 = vmul.f32 0.5, %v2992_v59  ;;  %2999 = vtanh.f32 %v1484_v29 }
 0x397   :  { %v1478_v23 = vmul.f32 0.5, %v2994_v62  ;;  %3001 = vtanh.f32 %v4005_v25 }
 0x398   :  { %v1472_v9 = vadd.f32 0.5, %v1470_v13 }
 0x399   :  { %v1480_v12 = vadd.f32 0.5, %v1478_v23  ;;  %v1551_v21 = vpop.f32.mrf.mxu2  ;;  %v1565_v29 = vpop.f32.mrf.mxu3 }
 0x39a   :  { %v2996_v17 = vpop.eup %2995  ;;  %v1552_v59 = vadd.f32 %v1551_v21, %v3537_v1  ;;  %v1566_v13 = vadd.f32 %v1565_v29, %v3539_v61  ;;  %v4611_v21 = vld [vmem:[#allocation18_spill] sm:$0xff]  ;;  %v4612_v29 = vld [vmem:[#allocation19_spill] sm:$0xff] }
 0x39b   :  { %v1492_v58 = vmul.f32 %v1480_v12, %v3910_v33  ;;  %v1494_v50 = vmul.f32 %v2996_v17, %v1472_v9  ;;  %v2998_v4 = vpop.eup %2997  ;;  %v1523_v33 = vpop.f32.mrf.mxu0 }
 0x39c   :  { %v3000_v44 = vpop.eup %2999  ;;  %v1487_v16 = vmul.f32 0.5, %v2998_v4  ;;  %v1537_v12 = vpop.f32.mrf.mxu1  ;;  %v1524_v9 = vadd.f32 %v1523_v33, %v3529_v30  ;;  %v4607_v33 = vld [vmem:[#allocation14_spill] sm:$0xff] }
 0x39d   :  { %v4009_v57 = vadd.f32 %v1494_v50, %v1492_v58  ;;  %v1488_v56 = vmul.f32 0.5, %v3000_v44  ;;  %v3002_v34 = vpop.eup %3001  ;;  %v1538_v17 = vadd.f32 %v1537_v12, %v3531_v15  ;;  %v4608_v12 = vld [vmem:[#allocation15_spill] sm:$0xff] }
 0x39e   :  { %v1489_v40 = vadd.f32 0.5, %v1487_v16  ;;  %v4052_v16 = vpack.c.bf16 %v1566_v13, %v1552_v59 }
 0x39f   :  { %3003 = vtanh.f32 %v4009_v57  ;;  %v1490_v62 = vadd.f32 0.5, %v1488_v56  ;;  %v4046_v45 = vpack.c.bf16 %v1538_v17, %v1524_v9  ;;  %v4609_v9 = vld [vmem:[#allocation16_spill] sm:$0xff]  ;;  %v4610_v17 = vld [vmem:[#allocation17_spill] sm:$0xff] }
 0x3a0   :  { %v1499_v28 = vmul.f32 %v3002_v34, %v1489_v40 }
 0x3a1   :  { %v1553_v34 = vpop.f32.mrf.mxu2  ;;  %v1567_v40 = vpop.f32.mrf.mxu3 }
 0x3a3   :  { %v1525_v58 = vpop.f32.mrf.mxu0 }
 0x3a4   :  { %v1539_v50 = vpop.f32.mrf.mxu1  ;;  %v1526_v4 = vadd.f32 %v1525_v58, %v3529_v30  ;;  %v4617_v58 = vld [vmem:[#allocation23_spill] sm:$0xff] }
 0x3a5   :  { %v3004_v11 = vpop.eup %3003  ;;  %v1540_v44 = vadd.f32 %v1539_v50, %v3531_v15  ;;  %v4618_v50 = vld [vmem:[#allocation24_spill] sm:$0xff] }
 0x3a6   :  { %v1500_v23 = vmul.f32 %v3004_v11, %v1490_v62  ;;  %v1554_v62 = vadd.f32 %v1553_v34, %v3537_v1  ;;  %v1568_v11 = vadd.f32 %v1567_v40, %v3539_v61 }
 0x3a7   :  { %v4054_v56 = vpack.c.bf16 %v1540_v44, %v1526_v4 }
 0x3a8   :  { %v1579_v55 = vpack.c.bf16 %v1500_v23, %v1499_v28  ;;  %v4058_v28 = vpack.c.bf16 %v1568_v11, %v1554_v62  ;;  %v2865_v23 = vld [vmem:[%s4257_s0 + $0x38] sm:$0xff]  ;;  %v4619_v62 = vld [vmem:[#allocation25_spill] sm:$0xff]  ;;  %v4620_v11 = vld [vmem:[#allocation26_spill] sm:$0xff] }
 0x3aa   :  { %1588 = vmatmul.bf16.vlgmr.msra.gmra.mxu0 %v1579_v55  ;;  %1602 = vmatmul.bf16.vlgmr.msra.gmra.mxu1 %v1579_v55 }
 0x3ab   :  { %1616 = vmatmul.bf16.vlgmr.msra.gmra.mxu2 %v1579_v55  ;;  %1630 = vmatmul.bf16.vlgmr.msra.gmra.mxu3 %v1579_v55  ;;  %v4606_v55 = vld [vmem:[#allocation13_spill] sm:$0xff] }
 0x3ac   :  { %1767 = vmatpush.bf16.msra.mxu0 %v3355_v60  ;;  %1781 = vmatpush.bf16.msra.mxu1 %v3357_v63 }
 0x3ad   :  { %1795 = vmatpush.bf16.msra.mxu2 %v3359_v0  ;;  %1809 = vmatpush.bf16.msra.mxu3 %v3362_v6 }
 0x3b0   :  { %1768 = vmatpush.bf16.msra.mxu0 %v3371_v20  ;;  %1782 = vmatpush.bf16.msra.mxu1 %v3375_v22 }
 0x3b1   :  { %1796 = vmatpush.bf16.msra.mxu2 %v3377_v27  ;;  %1810 = vmatpush.bf16.msra.mxu3 %v3380_v35 }
 0x3b4   :  { %1769 = vmatpush.bf16.msra.mxu0 %v3383_v49  ;;  %1783 = vmatpush.bf16.msra.mxu1 %v4455_v41 }
 0x3b5   :  { %1797 = vmatpush.bf16.msra.mxu2 %v4456_v42  ;;  %1811 = vmatpush.bf16.msra.mxu3 %v4457_v39 }
 0x3b8   :  { %1770 = vmatpush.bf16.msra.mxu0 %v4458_v51  ;;  %1784 = vmatpush.bf16.msra.mxu1 %v4459_v14 }
 0x3b9   :  { %1798 = vmatpush.bf16.msra.mxu2 %v4460_v54  ;;  %1812 = vmatpush.bf16.msra.mxu3 %v4492_v31 }
 0x3ba   :  { %1709 = vmatmul.bf16.vlgmr.msrb.gmra.mxu0 %v2865_v23  ;;  %1723 = vmatmul.bf16.vlgmr.msrb.gmra.mxu1 %v2865_v23 }
 0x3bb   :  { %1737 = vmatmul.bf16.vlgmr.msrb.gmra.mxu2 %v2865_v23  ;;  %1751 = vmatmul.bf16.vlgmr.msrb.gmra.mxu3 %v2865_v23 }
 0x3bc   :  { %1771 = vmatpush.bf16.msra.mxu0 %v4493_v43  ;;  %1785 = vmatpush.bf16.msra.mxu1 %v4494_v18 }
 0x3bd   :  { %1799 = vmatpush.bf16.msra.mxu2 %v4495_v47  ;;  %1813 = vmatpush.bf16.msra.mxu3 %v4496_v5 }
 0x3c0   :  { %1772 = vmatpush.bf16.msra.mxu0 %v4497_v53  ;;  %1786 = vmatpush.bf16.msra.mxu1 %v4498_v10 }
 0x3c1   :  { %1800 = vmatpush.bf16.msra.mxu2 %v4499_v2  ;;  %1814 = vmatpush.bf16.msra.mxu3 %v4500_v37 }
 0x3c4   :  { %1773 = vmatpush.bf16.msra.mxu0 %v4501_v19  ;;  %1787 = vmatpush.bf16.msra.mxu1 %v4502_v46 }
 0x3c5   :  { %1801 = vmatpush.bf16.msra.mxu2 %v4532_v24  ;;  %1815 = vmatpush.bf16.msra.mxu3 %v4533_v26 }
 0x3c8   :  { %1774 = vmatpush.bf16.msra.mxu0 %v4534_v32  ;;  %1788 = vmatpush.bf16.msra.mxu1 %v4475_v52 }
 0x3c9   :  { %1802 = vmatpush.bf16.msra.mxu2 %v4476_v48  ;;  %1816 = vmatpush.bf16.msra.mxu3 %v4535_v38 }
 0x3cc   :  { %1887 = vmatpush.bf16.msrb.mxu0 %v3228_v3  ;;  %1901 = vmatpush.bf16.msrb.mxu1 %v3230_v7  ;;  %v4613_v3 = vld [vmem:[#allocation20_spill] sm:$0xff]  ;;  %v4614_v7 = vld [vmem:[#allocation21_spill] sm:$0xff] }
 0x3cd   :  { %1915 = vmatpush.bf16.msrb.mxu2 %v3232_v8  ;;  %1929 = vmatpush.bf16.msrb.mxu3 %v4574_v36  ;;  %v4615_v8 = vld [vmem:[#allocation22_spill] sm:$0xff] }
 0x3ce   :  { %v4616_v36 = vld [vmem:[#allocation50_spill] sm:$0xff] }
 0x3cf   :  { %v1636_v59 = vunpack.c.l.bf16 %v4616_v36  ;;  %v1637_v13 = vunpack.c.h.bf16 %v4616_v36 }
 0x3d0   :  { %1888 = vmatpush.bf16.msrb.mxu0 %v4606_v55  ;;  %1902 = vmatpush.bf16.msrb.mxu1 %v4607_v33  ;;  %v4621_v33 = vld [vmem:[#allocation27_spill] sm:$0xff] }
 0x3d1   :  { %1916 = vmatpush.bf16.msrb.mxu2 %v4608_v12  ;;  %1930 = vmatpush.bf16.msrb.mxu3 %v4609_v9  ;;  %v4622_v12 = vld [vmem:[#allocation28_spill] sm:$0xff]  ;;  %v4623_v9 = vld [vmem:[#allocation51_spill] sm:$0xff] }
 0x3d4   :  { %1889 = vmatpush.bf16.msrb.mxu0 %v4610_v17  ;;  %1903 = vmatpush.bf16.msrb.mxu1 %v4611_v21  ;;  %v1638_v17 = vunpack.c.l.bf16 %v4623_v9  ;;  %v4624_v21 = vld [vmem:[#allocation29_spill] sm:$0xff] }
 0x3d5   :  { %1917 = vmatpush.bf16.msrb.mxu2 %v4612_v29  ;;  %1931 = vmatpush.bf16.msrb.mxu3 %v4613_v3  ;;  %v4625_v29 = vld [vmem:[#allocation30_spill] sm:$0xff] }
 0x3d8   :  { %1890 = vmatpush.bf16.msrb.mxu0 %v4614_v7  ;;  %1904 = vmatpush.bf16.msrb.mxu1 %v4615_v8  ;;  %v4626_v8 = vld [vmem:[#allocation52_spill] sm:$0xff] }
 0x3d9   :  { %1918 = vmatpush.bf16.msrb.mxu2 %v4617_v58  ;;  %1932 = vmatpush.bf16.msrb.mxu3 %v4618_v50  ;;  %v1640_v36 = vunpack.c.l.bf16 %v4626_v8  ;;  %v4628_v58 = vld [vmem:[#allocation32_spill] sm:$0xff] }
 0x3dc   :  { %1891 = vmatpush.bf16.msrb.mxu0 %v4619_v62  ;;  %1905 = vmatpush.bf16.msrb.mxu1 %v4620_v11  ;;  %v1639_v62 = vunpack.c.h.bf16 %v4623_v9  ;;  %v4629_v11 = vld [vmem:[#allocation33_spill] sm:$0xff] }
 0x3dd   :  { %1919 = vmatpush.bf16.msrb.mxu2 %v4621_v33  ;;  %1933 = vmatpush.bf16.msrb.mxu3 %v4622_v12 }
 0x3e0   :  { %1892 = vmatpush.bf16.msrb.mxu0 %v4624_v21  ;;  %1906 = vmatpush.bf16.msrb.mxu1 %v4625_v29  ;;  %v4631_v21 = vld [vmem:[#allocation35_spill] sm:$0xff]  ;;  %v4632_v29 = vld [vmem:[#allocation36_spill] sm:$0xff] }
 0x3e1   :  { %1934 = vmatpush.bf16.msrb.mxu3 %v4628_v58 }
 0x3e4   :  { %1893 = vmatpush.bf16.msrb.mxu0 %v4629_v11  ;;  %v4636_v11 = vld [vmem:[#allocation39_spill] sm:$0xff] }
 0x3e5   :  { %1935 = vmatpush.bf16.msrb.mxu3 %v4632_v29 }
 0x427   :  { %v1589_v4 = vpop.f32.mrf.mxu0  ;;  %v1603_v44 = vpop.f32.mrf.mxu1 }
 0x428   :  { %v1644_v34 = vadd.f32 %v1636_v59, %v1589_v4  ;;  %v1645_v40 = vadd.f32 %v1637_v13, %v1603_v44  ;;  %v1641_v59 = vunpack.c.h.bf16 %v4626_v8  ;;  %v4627_v13 = vld [vmem:[#allocation31_spill] sm:$0xff] }
 0x429   :  { %1920 = vmatpush.bf16.msrb.mxu2 %v4627_v13 }
 0x42a   :  { %v1652_v23 = vmul.f32 0.5, %v1644_v34  ;;  %v1660_v55 = vmul.f32 0.5, %v1645_v40 }
 0x42c   :  { %3005 = vtanh.f32 %v1652_v23  ;;  %v4630_v23 = vld [vmem:[#allocation34_spill] sm:$0xff] }
 0x42d   :  { %3007 = vtanh.f32 %v1660_v55  ;;  %1907 = vmatpush.bf16.msrb.mxu1 %v4630_v23  ;;  %1921 = vmatpush.bf16.msrb.mxu2 %v4631_v21  ;;  %v4637_v23 = vld [vmem:[#allocation40_spill] sm:$0xff] }
 0x42e   :  { %v1617_v3 = vpop.f32.mrf.mxu2  ;;  %v1631_v7 = vpop.f32.mrf.mxu3  ;;  %1936 = vmatpush.bf16.msrb.mxu3 %v4637_v23 }
 0x42f   :  { %v1646_v50 = vadd.f32 %v1638_v17, %v1617_v3  ;;  %v1591_v4 = vpop.f32.mrf.mxu0  ;;  %v1605_v44 = vpop.f32.mrf.mxu1  ;;  %v1647_v3 = vadd.f32 %v1639_v62, %v1631_v7 }
 0x430   :  { %v1648_v34 = vadd.f32 %v1640_v36, %v1591_v4  ;;  %v1649_v40 = vadd.f32 %v1641_v59, %v1605_v44  ;;  %v4633_v59 = vld [vmem:[#allocation53_spill] sm:$0xff]  ;;  %v4635_v4 = vld [vmem:[#allocation38_spill] sm:$0xff] }
 0x431   :  { %3009 = vtanh.f32 %v1646_v50  ;;  %v1642_v9 = vunpack.c.l.bf16 %v4633_v59  ;;  %v1643_v58 = vunpack.c.h.bf16 %v4633_v59  ;;  %v4634_v50 = vld [vmem:[#allocation37_spill] sm:$0xff]  ;;  %1908 = vmatpush.bf16.msrb.mxu1 %v4635_v4  ;;  %1922 = vmatpush.bf16.msrb.mxu2 %v4636_v11  ;;  %v1670_v62 = vmul.f32 0.5, %v1647_v3 }
 0x432   :  { %v3006_v55 = vpop.eup %3005  ;;  %v1653_v33 = vmul.f32 0.5, %v1648_v34  ;;  %v1661_v12 = vmul.f32 0.5, %v1649_v40  ;;  %1894 = vmatpush.bf16.msrb.mxu0 %v4634_v50 }
 0x433   :  { %v3008_v8 = vpop.eup %3007  ;;  %v1656_v17 = vmul.f32 0.5, %v3006_v55 }
 0x434   :  { %v1664_v13 = vmul.f32 0.5, %v3008_v8  ;;  %3011 = vtanh.f32 %v1653_v33 }
 0x435   :  { %v1658_v36 = vadd.f32 0.5, %v1656_v17  ;;  %3013 = vtanh.f32 %v1661_v12 }
 0x436   :  { %v1666_v44 = vadd.f32 0.5, %v1664_v13  ;;  %v1619_v34 = vpop.f32.mrf.mxu2  ;;  %v1633_v40 = vpop.f32.mrf.mxu3 }
 0x437   :  { %v3010_v7 = vpop.eup %3009  ;;  %v1650_v55 = vadd.f32 %v1642_v9, %v1619_v34  ;;  %v1651_v33 = vadd.f32 %v1643_v58, %v1633_v40 }
 0x438   :  { %v1678_v12 = vmul.f32 %v1666_v44, %v4005_v25  ;;  %v1680_v21 = vmul.f32 %v3010_v7, %v1658_v36 }
 0x439   :  { %3015 = vtanh.f32 %v1650_v55  ;;  %v1671_v29 = vmul.f32 0.5, %v1651_v33 }
 0x43a   :  { %v3012_v8 = vpop.eup %3011  ;;  %v4104_v17 = vadd.f32 %v1680_v21, %v1678_v12  ;;  %3017 = vtanh.f32 %v1670_v62 }
 0x43b   :  { %v3014_v59 = vpop.eup %3013  ;;  %v1657_v13 = vmul.f32 0.5, %v3012_v8  ;;  %3019 = vtanh.f32 %v1671_v29  ;;  %v1826_v8 = vunpack.c.h.bf16 %v4052_v16 }
 0x43c   :  { %v1665_v50 = vmul.f32 0.5, %v3014_v59  ;;  %3021 = vtanh.f32 %v4104_v17 }
 0x43d   :  { %v1659_v4 = vadd.f32 0.5, %v1657_v13 }
 0x43e   :  { %v1667_v11 = vadd.f32 0.5, %v1665_v50 }
 0x43f   :  { %v3016_v23 = vpop.eup %3015 }
 0x440   :  { %v1679_v3 = vmul.f32 %v1667_v11, %v4009_v57  ;;  %v1681_v9 = vmul.f32 %v3016_v23, %v1659_v4  ;;  %v3018_v58 = vpop.eup %3017 }
 0x441   :  { %v3020_v34 = vpop.eup %3019  ;;  %v1674_v36 = vmul.f32 0.5, %v3018_v58  ;;  %v1830_v58 = vunpack.c.h.bf16 %v4058_v28 }
 0x442   :  { %v4108_v25 = vadd.f32 %v1681_v9, %v1679_v3  ;;  %v1675_v44 = vmul.f32 0.5, %v3020_v34  ;;  %v3022_v40 = vpop.eup %3021 }
 0x443   :  { %v1676_v7 = vadd.f32 0.5, %v1674_v36 }
 0x444   :  { %3023 = vtanh.f32 %v4108_v25  ;;  %v1677_v62 = vadd.f32 0.5, %v1675_v44 }
 0x445   :  { %v1686_v33 = vmul.f32 %v3022_v40, %v1676_v7 }
 0x44a   :  { %v3024_v55 = vpop.eup %3023 }
 0x44b   :  { %v1687_v12 = vmul.f32 %v3024_v55, %v1677_v62 }
 0x44d   :  { %v1766_v21 = vpack.c.bf16 %v1687_v12, %v1686_v33 }
 0x44f   :  { %1775 = vmatmul.bf16.vlgmr.msra.gmra.mxu0 %v1766_v21  ;;  %1789 = vmatmul.bf16.vlgmr.msra.gmra.mxu1 %v1766_v21 }
 0x450   :  { %1803 = vmatmul.bf16.vlgmr.msra.gmra.mxu2 %v1766_v21  ;;  %1817 = vmatmul.bf16.vlgmr.msra.gmra.mxu3 %v1766_v21 }
 0x451   :  { %1952 = vmatpush.bf16.msra.mxu0 %v3355_v60  ;;  %1966 = vmatpush.bf16.msra.mxu1 %v3357_v63  ;;  %v1710_v60 = vpop.f32.mrf.mxu0  ;;  %v1724_v63 = vpop.f32.mrf.mxu1 }
 0x452   :  { %1980 = vmatpush.bf16.msra.mxu2 %v3359_v0  ;;  %1994 = vmatpush.bf16.msra.mxu3 %v3362_v6  ;;  %v1711_v0 = vadd.f32 %v1710_v60, %v3529_v30  ;;  %v1725_v6 = vadd.f32 %v1724_v63, %v3531_v15 }
 0x455   :  { %1953 = vmatpush.bf16.msra.mxu0 %v3371_v20  ;;  %1967 = vmatpush.bf16.msra.mxu1 %v3375_v22  ;;  %v4145_v20 = vpack.c.bf16 %v1725_v6, %v1711_v0  ;;  %v1738_v22 = vpop.f32.mrf.mxu2 }
 0x456   :  { %1981 = vmatpush.bf16.msra.mxu2 %v3377_v27  ;;  %1995 = vmatpush.bf16.msra.mxu3 %v3380_v35  ;;  %v1752_v27 = vpop.f32.mrf.mxu3  ;;  %v1739_v35 = vadd.f32 %v1738_v22, %v3537_v1 }
 0x459   :  { %1954 = vmatpush.bf16.msra.mxu0 %v3383_v49  ;;  %1968 = vmatpush.bf16.msra.mxu1 %v4455_v41  ;;  %v1753_v49 = vadd.f32 %v1752_v27, %v3539_v61  ;;  %v1712_v41 = vpop.f32.mrf.mxu0 }
 0x45a   :  { %1982 = vmatpush.bf16.msra.mxu2 %v4456_v42  ;;  %1996 = vmatpush.bf16.msra.mxu3 %v4457_v39  ;;  %v1726_v42 = vpop.f32.mrf.mxu1  ;;  %v1713_v39 = vadd.f32 %v1712_v41, %v3529_v30  ;;  %v1823_v30 = vunpack.c.l.bf16 %v4046_v45 }
 0x45d   :  { %1955 = vmatpush.bf16.msra.mxu0 %v4458_v51  ;;  %1969 = vmatpush.bf16.msra.mxu1 %v4459_v14  ;;  %v1727_v51 = vadd.f32 %v1726_v42, %v3531_v15  ;;  %v4151_v14 = vpack.c.bf16 %v1753_v49, %v1739_v35  ;;  %v1824_v15 = vunpack.c.h.bf16 %v4046_v45 }
 0x45e   :  { %1983 = vmatpush.bf16.msra.mxu2 %v4460_v54  ;;  %1997 = vmatpush.bf16.msra.mxu3 %v4492_v31 }
 0x45f   :  { %v4153_v54 = vpack.c.bf16 %v1727_v51, %v1713_v39 }
 0x461   :  { %1956 = vmatpush.bf16.msra.mxu0 %v4493_v43  ;;  %1970 = vmatpush.bf16.msra.mxu1 %v4494_v18 }
 0x462   :  { %1984 = vmatpush.bf16.msra.mxu2 %v4495_v47  ;;  %1998 = vmatpush.bf16.msra.mxu3 %v4496_v5  ;;  %v2866_v47 = vld [vmem:[%s4257_s0 + $0x38] sm:$0xff] }
 0x463   :  { %1895 = vmatmul.bf16.vlgmr.msrb.gmra.mxu0 %v2866_v47  ;;  %1909 = vmatmul.bf16.vlgmr.msrb.gmra.mxu1 %v2866_v47 }
 0x464   :  { %1923 = vmatmul.bf16.vlgmr.msrb.gmra.mxu2 %v2866_v47  ;;  %1937 = vmatmul.bf16.vlgmr.msrb.gmra.mxu3 %v2866_v47 }
 0x465   :  { %1957 = vmatpush.bf16.msra.mxu0 %v4497_v53  ;;  %1971 = vmatpush.bf16.msra.mxu1 %v4498_v10 }
 0x466   :  { %1985 = vmatpush.bf16.msra.mxu2 %v4499_v2  ;;  %1999 = vmatpush.bf16.msra.mxu3 %v4500_v37  ;;  %v1825_v37 = vunpack.c.l.bf16 %v4052_v16 }
 0x469   :  { %1958 = vmatpush.bf16.msra.mxu0 %v4501_v19  ;;  %1972 = vmatpush.bf16.msra.mxu1 %v4502_v46 }
 0x46a   :  { %1986 = vmatpush.bf16.msra.mxu2 %v4532_v24  ;;  %2000 = vmatpush.bf16.msra.mxu3 %v4533_v26  ;;  %v1827_v24 = vunpack.c.l.bf16 %v4054_v56  ;;  %v1828_v26 = vunpack.c.h.bf16 %v4054_v56  ;;  %v1829_v56 = vunpack.c.l.bf16 %v4058_v28 }
 0x46d   :  { %1959 = vmatpush.bf16.msra.mxu0 %v4534_v32  ;;  %1973 = vmatpush.bf16.msra.mxu1 %v4475_v52  ;;  %v1740_v52 = vpop.f32.mrf.mxu2 }
 0x46e   :  { %1987 = vmatpush.bf16.msra.mxu2 %v4476_v48  ;;  %2001 = vmatpush.bf16.msra.mxu3 %v4535_v38  ;;  %v1754_v48 = vpop.f32.mrf.mxu3  ;;  %v1741_v31 = vadd.f32 %v1740_v52, %v3537_v1 }
 0x46f   :  { %v1755_v43 = vadd.f32 %v1754_v48, %v3539_v61 }
 0x471   :  { %v4157_v18 = vpack.c.bf16 %v1755_v43, %v1741_v31 }
 0x4cc   :  { %v1776_v5 = vpop.f32.mrf.mxu0  ;;  %v1790_v53 = vpop.f32.mrf.mxu1 }
 0x4cd   :  { %v1831_v10 = vadd.f32 %v1823_v30, %v1776_v5  ;;  %v1832_v1 = vadd.f32 %v1824_v15, %v1790_v53 }
 0x4cf   :  { %v1839_v2 = vmul.f32 0.5, %v1831_v10  ;;  %v1847_v61 = vmul.f32 0.5, %v1832_v1 }
 0x4d1   :  { %3025 = vtanh.f32 %v1839_v2 }
 0x4d2   :  { %3027 = vtanh.f32 %v1847_v61 }
 0x4d3   :  { %v1804_v19 = vpop.f32.mrf.mxu2  ;;  %v1818_v46 = vpop.f32.mrf.mxu3 }
 0x4d4   :  { %v1833_v32 = vadd.f32 %v1825_v37, %v1804_v19  ;;  %v1778_v38 = vpop.f32.mrf.mxu0  ;;  %v1792_v57 = vpop.f32.mrf.mxu1  ;;  %v1834_v23 = vadd.f32 %v1826_v8, %v1818_v46  ;;  %v2874_v19 = vld [vmem:[%s4261_s4 + $0x38] sm:$0xff]  ;;  %v2873_v46 = vld [vmem:[%s4261_s4 + $0x30] sm:$0xff] }
 0x4d5   :  { %v1835_v45 = vadd.f32 %v1827_v24, %v1778_v38  ;;  %v1836_v29 = vadd.f32 %v1828_v26, %v1792_v57  ;;  %2136 = vmatpush.bf16.msrb.mxu0 %v2874_v19  ;;  %v2872_v24 = vld [vmem:[%s4261_s4 + $0x28] sm:$0xff]  ;;  %v2871_v26 = vld [vmem:[%s4261_s4 + $0x20] sm:$0xff]  ;;  %v2869_v38 = vld [vmem:[%s4261_s4 + $0x10] sm:$0xff]  ;;  %v2008_v57 = vunpack.c.l.bf16 %v4145_v20 }
 0x4d6   :  { %3029 = vtanh.f32 %v1833_v32  ;;  %v1857_v7 = vmul.f32 0.5, %v1834_v23  ;;  %v2870_v32 = vld [vmem:[%s4261_s4 + $0x18] sm:$0xff]  ;;  %v2867_v23 = vld [vmem:[%s4261_s4] sm:$0xff] }
 0x4d7   :  { %v3026_v59 = vpop.eup %3025  ;;  %v1840_v13 = vmul.f32 0.5, %v1835_v45  ;;  %v1848_v50 = vmul.f32 0.5, %v1836_v29  ;;  %v2009_v45 = vunpack.c.h.bf16 %v4145_v20  ;;  %v2868_v29 = vld [vmem:[%s4261_s4 + $0x8] sm:$0xff]  ;;  %v2010_v20 = vunpack.c.l.bf16 %v4151_v14 }
 0x4d8   :  { %v3028_v4 = vpop.eup %3027  ;;  %v1843_v11 = vmul.f32 0.5, %v3026_v59 }
 0x4d9   :  { %v1851_v3 = vmul.f32 0.5, %v3028_v4  ;;  %3031 = vtanh.f32 %v1840_v13  ;;  %2137 = vmatpush.bf16.msrb.mxu0 %v2873_v46 }
 0x4da   :  { %v1845_v9 = vadd.f32 0.5, %v1843_v11  ;;  %3033 = vtanh.f32 %v1848_v50 }
 0x4db   :  { %v1853_v34 = vadd.f32 0.5, %v1851_v3  ;;  %v1806_v36 = vpop.f32.mrf.mxu2  ;;  %v1820_v44 = vpop.f32.mrf.mxu3  ;;  %v2011_v3 = vunpack.c.h.bf16 %v4151_v14  ;;  %v2881_v14 = vld [vmem:[%s4263_s6 + $0x30] sm:$0xff] }
 0x4dc   :  { %v3030_v40 = vpop.eup %3029  ;;  %v1837_v16 = vadd.f32 %v1829_v56, %v1806_v36  ;;  %v1838_v62 = vadd.f32 %v1830_v58, %v1820_v44  ;;  %v2012_v58 = vunpack.c.l.bf16 %v4153_v54 }
 0x4dd   :  { %v1865_v55 = vmul.f32 %v1853_v34, %v4104_v17  ;;  %v1867_v33 = vmul.f32 %v3030_v40, %v1845_v9  ;;  %2138 = vmatpush.bf16.msrb.mxu0 %v2872_v24  ;;  %v2013_v34 = vunpack.c.h.bf16 %v4153_v54 }
 0x4de   :  { %3035 = vtanh.f32 %v1837_v16  ;;  %v1858_v12 = vmul.f32 0.5, %v1838_v62  ;;  %v2882_v16 = vld [vmem:[%s4263_s6 + $0x38] sm:$0xff] }
 0x4df   :  { %v3032_v21 = vpop.eup %3031  ;;  %v4171_v60 = vadd.f32 %v1867_v33, %v1865_v55  ;;  %3037 = vtanh.f32 %v1857_v7  ;;  %2221 = vmatpush.bf16.msrb.mxu1 %v2882_v16  ;;  %v3153_v16 = vmov 0.0  }
 0x4e0   :  { %v3034_v63 = vpop.eup %3033  ;;  %v1844_v0 = vmul.f32 0.5, %v3032_v21  ;;  %3039 = vtanh.f32 %v1858_v12  ;;  %v1910_v5 = vpop.f32.mrf.mxu1 }
 0x4e1   :  { %v1852_v6 = vmul.f32 0.5, %v3034_v63  ;;  %3041 = vtanh.f32 %v4171_v60  ;;  %2139 = vmatpush.bf16.msrb.mxu0 %v2871_v26 }
 0x4e2   :  { %v1846_v28 = vadd.f32 0.5, %v1844_v0 }
 0x4e3   :  { %v1854_v22 = vadd.f32 0.5, %v1852_v6  ;;  %2222 = vmatpush.bf16.msrb.mxu1 %v2881_v14 }
 0x4e4   :  { %v3036_v27 = vpop.eup %3035 }
 0x4e5   :  { %v1866_v35 = vmul.f32 %v1854_v22, %v4108_v25  ;;  %v1868_v49 = vmul.f32 %v3036_v27, %v1846_v28  ;;  %v3038_v41 = vpop.eup %3037  ;;  %v1896_v25 = vpop.f32.mrf.mxu0  ;;  %2140 = vmatpush.bf16.msrb.mxu0 %v2870_v32  ;;  %v2014_v22 = vunpack.c.l.bf16 %v4157_v18  ;;  %v2015_v27 = vunpack.c.h.bf16 %v4157_v18  ;;  %v2879_v18 = vld [vmem:[%s4263_s6 + $0x20] sm:$0xff] }
 0x4e6   :  { %v3040_v42 = vpop.eup %3039  ;;  %v1861_v39 = vmul.f32 0.5, %v3038_v41 }
 0x4e7   :  { %v4175_v17 = vadd.f32 %v1868_v49, %v1866_v35  ;;  %v1862_v51 = vmul.f32 0.5, %v3040_v42  ;;  %v3042_v52 = vpop.eup %3041  ;;  %v1924_v53 = vpop.f32.mrf.mxu2  ;;  %v2880_v35 = vld [vmem:[%s4263_s6 + $0x28] sm:$0xff] }
 0x4e8   :  { %v1863_v48 = vadd.f32 0.5, %v1861_v39  ;;  %v1938_v10 = vpop.f32.mrf.mxu3  ;;  %v1912_v2 = vpop.f32.mrf.mxu1  ;;  %2223 = vmatpush.bf16.msrb.mxu1 %v2880_v35 }
 0x4e9   :  { %3043 = vtanh.f32 %v4175_v17  ;;  %v1864_v31 = vadd.f32 0.5, %v1862_v51  ;;  %2141 = vmatpush.bf16.msrb.mxu0 %v2869_v38 }
 0x4ea   :  { %v1873_v47 = vmul.f32 %v3042_v52, %v1863_v48 }
 0x4ec   :  { %2224 = vmatpush.bf16.msrb.mxu1 %v2879_v18 }
 0x4ed   :  { %v1898_v1 = vpop.f32.mrf.mxu0  ;;  %2142 = vmatpush.bf16.msrb.mxu0 %v2868_v29 }
 0x4ef   :  { %v3044_v43 = vpop.eup %3043  ;;  %v1926_v61 = vpop.f32.mrf.mxu2 }
 0x4f0   :  { %v1874_v30 = vmul.f32 %v3044_v43, %v1864_v31  ;;  %v1940_v37 = vpop.f32.mrf.mxu3 }
 0x4f1   :  { %2143 = vmatpush.bf16.msrb.mxu0 %v2867_v23 }
 0x4f2   :  { %v1951_v15 = vpack.c.bf16 %v1874_v30, %v1873_v47 }
 0x4f4   :  { %1960 = vmatmul.bf16.vlgmr.msra.gmra.mxu0 %v1951_v15  ;;  %1974 = vmatmul.bf16.vlgmr.msra.gmra.mxu1 %v1951_v15 }
 0x4f5   :  { %1988 = vmatmul.bf16.vlgmr.msra.gmra.mxu2 %v1951_v15  ;;  %2002 = vmatmul.bf16.vlgmr.msra.gmra.mxu3 %v1951_v15 }
 0x571   :  { %v1961_v8 = vpop.f32.mrf.mxu0  ;;  %v1975_v59 = vpop.f32.mrf.mxu1 }
 0x572   :  { %v2016_v13 = vadd.f32 %v2008_v57, %v1961_v8  ;;  %v2017_v50 = vadd.f32 %v2009_v45, %v1975_v59  ;;  %v2878_v59 = vld [vmem:[%s4263_s6 + $0x18] sm:$0xff] }
 0x573   :  { %2225 = vmatpush.bf16.msrb.mxu1 %v2878_v59 }
 0x574   :  { %v2024_v4 = vmul.f32 0.5, %v2016_v13  ;;  %v2032_v11 = vmul.f32 0.5, %v2017_v50  ;;  %v2876_v13 = vld [vmem:[%s4263_s6 + $0x8] sm:$0xff]  ;;  %v2875_v50 = vld [vmem:[%s4263_s6] sm:$0xff] }
 0x576   :  { %3045 = vtanh.f32 %v2024_v4 }
 0x577   :  { %3047 = vtanh.f32 %v2032_v11  ;;  %v2900_v11 = vld [vmem:[%s4262_s5] ss:$0 sm:$0xff] }
 0x578   :  { %v1989_v9 = vpop.f32.mrf.mxu2  ;;  %v2003_v56 = vpop.f32.mrf.mxu3 }
 0x579   :  { %v2018_v36 = vadd.f32 %v2010_v20, %v1989_v9  ;;  %v2019_v44 = vadd.f32 %v2011_v3, %v2003_v56  ;;  %v1963_v40 = vpop.f32.mrf.mxu0  ;;  %v1977_v7 = vpop.f32.mrf.mxu1 }
 0x57a   :  { %v2020_v62 = vadd.f32 %v2012_v58, %v1963_v40  ;;  %v2021_v55 = vadd.f32 %v2013_v34, %v1977_v7  ;;  %v2235_v34 = vlaneseq }
 0x57b   :  { %3049 = vtanh.f32 %v2018_v36  ;;  %v2042_v33 = vmul.f32 0.5, %v2019_v44  ;;  %v2901_v44 = vld [vmem:[%s4264_s7] ss:$0 sm:$0xff] }
 0x57c   :  { %v3046_v12 = vpop.eup %3045  ;;  %v2025_v21 = vmul.f32 0.5, %v2020_v62  ;;  %v2033_v54 = vmul.f32 0.5, %v2021_v55  ;;  %v2236_v36 = vand.u32 127, %v2235_v34 }
 0x57d   :  { %v3048_v63 = vpop.eup %3047  ;;  %v2028_v0 = vmul.f32 0.5, %v3046_v12  ;;  %3051 = vtanh.f32 %v2042_v33 }
 0x57e   :  { %v2036_v6 = vmul.f32 0.5, %v3048_v63  ;;  %3053 = vtanh.f32 %v2025_v21  ;;  %vm2237_vm0 = vcmp.lt.s32.totalorder %v2236_v36, 32 }
 0x57f   :  { %v2030_v28 = vadd.f32 0.5, %v2028_v0  ;;  %3055 = vtanh.f32 %v2033_v54  ;;  %v2761_v62 = vsel %vm2237_vm0, 1.0, %v3153_v16 }
 0x580   :  { %v2038_v49 = vadd.f32 0.5, %v2036_v6  ;;  %v1991_v41 = vpop.f32.mrf.mxu2  ;;  %v2005_v42 = vpop.f32.mrf.mxu3 }
 0x581   :  { %v3050_v39 = vpop.eup %3049  ;;  %v2022_v51 = vadd.f32 %v2014_v22, %v1991_v41  ;;  %v2023_v52 = vadd.f32 %v2015_v27, %v2005_v42 }
 0x582   :  { %v2050_v48 = vmul.f32 %v2038_v49, %v4171_v60  ;;  %v2052_v31 = vmul.f32 %v3050_v39, %v2030_v28  ;;  %v2890_v39 = vld [vmem:[#allocation9 + $0x38] sm:$0xff] }
 0x583   :  { %v3052_v43 = vpop.eup %3051  ;;  %3057 = vtanh.f32 %v2022_v51  ;;  %v2043_v47 = vmul.f32 0.5, %v2023_v52  ;;  %2367 = vmatpush.bf16.msrb.mxu2 %v2890_v39  ;;  %v2889_v51 = vld [vmem:[#allocation9 + $0x30] sm:$0xff]  ;;  %v2888_v52 = vld [vmem:[#allocation9 + $0x28] sm:$0xff] }
 0x584   :  { %v3054_v30 = vpop.eup %3053  ;;  %v2054_v15 = vadd.f32 %v2052_v31, %v2050_v48  ;;  %v2046_v10 = vmul.f32 0.5, %v3052_v43  ;;  %v2887_v48 = vld [vmem:[#allocation9 + $0x20] sm:$0xff]  ;;  %v2886_v31 = vld [vmem:[#allocation9 + $0x18] sm:$0xff]  ;;  %v2885_v43 = vld [vmem:[#allocation9 + $0x10] sm:$0xff] }
 0x585   :  { %v3056_v25 = vpop.eup %3055  ;;  %v2029_v5 = vmul.f32 0.5, %v3054_v30  ;;  %3059 = vtanh.f32 %v2043_v47  ;;  %v2884_v47 = vld [vmem:[#allocation9 + $0x8] sm:$0xff] }
 0x586   :  { %3061 = vtanh.f32 %v2054_v15  ;;  %v2037_v53 = vmul.f32 0.5, %v3056_v25  ;;  %v2048_v46 = vadd.f32 0.5, %v2046_v10  ;;  %v2883_v15 = vld [vmem:[#allocation9] sm:$0xff] }
 0x587   :  { %v2031_v1 = vadd.f32 0.5, %v2029_v5  ;;  %2368 = vmatpush.bf16.msrb.mxu2 %v2889_v51 }
 0x588   :  { %v2039_v60 = vadd.f32 0.5, %v2037_v53 }
 0x589   :  { %v3058_v2 = vpop.eup %3057 }
 0x58a   :  { %v2051_v61 = vmul.f32 %v2039_v60, %v4175_v17  ;;  %v2053_v37 = vmul.f32 %v3058_v2, %v2031_v1  ;;  %v2877_v17 = vld [vmem:[%s4263_s6 + $0x10] sm:$0xff] }
 0x58b   :  { %v3060_v19 = vpop.eup %3059  ;;  %2226 = vmatpush.bf16.msrb.mxu1 %v2877_v17  ;;  %2369 = vmatpush.bf16.msrb.mxu2 %v2888_v52  ;;  %v2903_v17 = vld [vmem:[%s4266_s9] ss:$0 sm:$0xff] }
 0x58c   :  { %v3062_v24 = vpop.eup %3061  ;;  %v2055_v26 = vadd.f32 %v2053_v37, %v2051_v61  ;;  %v2047_v38 = vmul.f32 0.5, %v3060_v19 }
 0x58d   :  { %v2058_v32 = vmul.f32 %v3062_v24, %v2048_v46 }
 0x58e   :  { %3063 = vtanh.f32 %v2055_v26  ;;  %v2049_v57 = vadd.f32 0.5, %v2047_v38 }
 0x58f   :  { %2227 = vmatpush.bf16.msrb.mxu1 %v2876_v13  ;;  %2370 = vmatpush.bf16.msrb.mxu2 %v2887_v48 }
 0x593   :  { %2228 = vmatpush.bf16.msrb.mxu1 %v2875_v50  ;;  %2371 = vmatpush.bf16.msrb.mxu2 %v2886_v31 }
 0x594   :  { %v3064_v45 = vpop.eup %3063 }
 0x595   :  { %v2059_v29 = vmul.f32 %v3064_v45, %v2049_v57  ;;  %v2902_v45 = vld [vmem:[%s4265_s8] ss:$0 sm:$0xff] }
 0x597   :  { %v2067_v8 = vpack.c.bf16 %v2059_v29, %v2058_v32  ;;  %2372 = vmatpush.bf16.msrb.mxu2 %v2885_v43 }
 0x599   :  { %2144 = vmatmul.bf16.vlgmr.msrb.gmra.mxu0 %v2067_v8 }
 0x59b   :  { %2373 = vmatpush.bf16.msrb.mxu2 %v2884_v47 }
 0x59f   :  { %2374 = vmatpush.bf16.msrb.mxu2 %v2883_v15 }
 0x616   :  { %v2145_v4 = vpop.f32.mrf.mxu0 }
 0x617   :  { %v2146_v23 = vadd.f32 %v2900_v11, %v2145_v4 }
 0x619   :  { %v2150_v9 = vmax.f32 %v2146_v23, 0.0 }
 0x61e   :  { %v2147_v20 = vpop.f32.mrf.mxu0 }
 0x61f   :  { %v2148_v3 = vadd.f32 %v2900_v11, %v2147_v20 }
 0x621   :  { %v2151_v56 = vmax.f32 %v2148_v3, 0.0  ;;  %v2904_v3 = vld [vmem:[%s4268_s11] ss:$0 sm:$0xff] }
 0x623   :  { %v2152_v58 = vpack.c.bf16 %v2151_v56, %v2150_v9 }
 0x625   :  { %2229 = vmatmul.bf16.vlgmr.msrb.gmra.mxu1 %v2152_v58 }
 0x6a2   :  { %v2230_v40 = vpop.f32.mrf.mxu1 }
 0x6a3   :  { %v2231_v7 = vadd.f32 %v2901_v44, %v2230_v40 }
 0x6a5   :  { %v2240_v55 = vadd.f32 %v2231_v7, %v2058_v32 }
 0x6a7   :  { %v2242_v33 = vmul.f32 %v2761_v62, %v2240_v55 }
 0x6a9   :  { %2244 = vadd.xlane.f32.xlu0 %v2242_v33 }
 0x6aa   :  { %v2232_v14 = vpop.f32.mrf.mxu1 }
 0x6ab   :  { %v2233_v12 = vadd.f32 %v2901_v44, %v2232_v14 }
 0x6ad   :  { %v2241_v21 = vadd.f32 %v2233_v12, %v2059_v29 }
 0x6af   :  { %v2243_v54 = vmul.f32 %v2761_v62, %v2241_v21 }
 0x6b1   :  { %2246 = vadd.xlane.f32.xlu0 %v2243_v54 }
 0x71c   :  { %v2245_v63 = vpop.xlane.xlu0 %2244 }
 0x71d   :  { %v2248_v0 = vmul.f32 0.03125, %v2245_v63 }
 0x71f   :  { %v2250_v6 = vsub.f32 %v2242_v33, %v2248_v0 }
 0x721   :  { %v2252_v28 = vmul.f32 %v2761_v62, %v2250_v6 }
 0x723   :  { %v2254_v22 = vmul.f32 %v2252_v28, %v2252_v28 }
 0x724   :  { %v2247_v27 = vpop.xlane.xlu0 %2246 }
 0x725   :  { %v2249_v35 = vmul.f32 0.03125, %v2247_v27  ;;  %2256 = vadd.xlane.f32.xlu1 %v2254_v22 }
 0x727   :  { %v2251_v49 = vsub.f32 %v2243_v54, %v2249_v35 }
 0x729   :  { %v2253_v41 = vmul.f32 %v2761_v62, %v2251_v49 }
 0x72b   :  { %v2255_v42 = vmul.f32 %v2253_v41, %v2253_v41 }
 0x72d   :  { %2258 = vadd.xlane.f32.xlu1 %v2255_v42 }
 0x798   :  { %v2257_v18 = vpop.xlane.xlu1 %2256 }
 0x799   :  { %v2260_v30 = vmul.f32 0.03125, %v2257_v18 }
 0x79b   :  { %v2262_v25 = vadd.f32 1e-12, %v2260_v30 }
 0x79d   :  { %3065 = vrsqrt.f32 %v2262_v25  ;;  %vm2270_vm2 = vweird.f32 %v2262_v25 }
 0x7a0   :  { %v2259_v5 = vpop.xlane.xlu1 %2258 }
 0x7a1   :  { %v2261_v53 = vmul.f32 0.03125, %v2259_v5 }
 0x7a3   :  { %v3066_v10 = vpop.eup %3065  ;;  %v2263_v1 = vadd.f32 1e-12, %v2261_v53 }
 0x7a4   :  { %v2265_v60 = vmul.f32 %v3066_v10, %v2262_v25  ;;  %vm2271_vm1 = vweird.f32 %v3066_v10 }
 0x7a5   :  { %3067 = vrsqrt.f32 %v2263_v1  ;;  %vm2272_vm3 = vmor %vm2270_vm2, %vm2271_vm1  ;;  %vm2280_vm5 = vweird.f32 %v2263_v1 }
 0x7a6   :  { %v2266_v2 = vmul.f32 %v3066_v10, %v2265_v60 }
 0x7a8   :  { %v2267_v61 = vmul.f32 0.5, %v2266_v2 }
 0x7aa   :  { %v2268_v37 = vsub.f32 1.5, %v2267_v61 }
 0x7ab   :  { %v3068_v19 = vpop.eup %3067 }
 0x7ac   :  { %v2269_v46 = vmul.f32 %v3066_v10, %v2268_v37  ;;  %v2275_v24 = vmul.f32 %v3068_v19, %v2263_v1  ;;  %vm2281_vm4 = vweird.f32 %v3068_v19 }
 0x7ad   :  { %vm2282_vm6 = vmor %vm2280_vm5, %vm2281_vm4 }
 0x7ae   :  { %v2276_v26 = vmul.f32 %v3068_v19, %v2275_v24  ;;  %v2273_v32 = vsel %vm2272_vm3, %v3066_v10, %v2269_v46 }
 0x7af   :  { %v2284_v29 = vmul.f32 %v2273_v32, %v2252_v28 }
 0x7b0   :  { %v2277_v38 = vmul.f32 0.5, %v2276_v26 }
 0x7b1   :  { %v2290_v13 = vmul.f32 %v2902_v45, %v2284_v29 }
 0x7b2   :  { %v2278_v57 = vsub.f32 1.5, %v2277_v38 }
 0x7b3   :  { %v2296_v11 = vadd.f32 %v2903_v17, %v2290_v13 }
 0x7b4   :  { %v2279_v8 = vmul.f32 %v3068_v19, %v2278_v57 }
 0x7b6   :  { %v2283_v59 = vsel %vm2282_vm6, %v3068_v19, %v2279_v8 }
 0x7b7   :  { %v2285_v50 = vmul.f32 %v2283_v59, %v2253_v41 }
 0x7b9   :  { %v2291_v4 = vmul.f32 %v2902_v45, %v2285_v50 }
 0x7bb   :  { %v2297_v23 = vadd.f32 %v2903_v17, %v2291_v4 }
 0x7bd   :  { %v2298_v20 = vpack.c.bf16 %v2297_v23, %v2296_v11 }
 0x7bf   :  { %2375 = vmatmul.bf16.vlgmr.msrb.gmra.mxu2 %v2298_v20 }
 0x842   :  { %v2376_v9 = vpop.f32.mrf.mxu2 }
 0x843   :  { %v2377_v56 = vadd.f32 %v2904_v3, %v2376_v9 }
 0x845   :  { %2381 = vst [vmem:[%s4269_s12] sm:$0xff] %v2377_v56 }
 0x84a   :  { %v2378_v58 = vpop.f32.mrf.mxu2 }
 0x84b   :  { %v2379_v34 = vadd.f32 %v2904_v3, %v2378_v58 }
 0x84d   :  { %2382 = vst [vmem:[%s4269_s12 + $0x8] sm:$0xff] %v2379_v34 }
 0x84e   :  { %2387 = vsyncpa [#allocation6], 1 }
 0x84f   :  { %2388 = vsyncpa [#allocation8], 1 }

</bundles_post_ra>
